<compile_context>
chip_gen: v7x
topology: tpu7x:2x2x1
jax: 0.10.0
libtpu: 0.0.40
codegen_flags: <defaults>
</compile_context>

<pallas_src>
import numpy as np

import jax
import jax.numpy as jnp
from jax.experimental import pallas as pl
from jax.experimental.pallas import tpu as pltpu

# ----------------------------- configuration -------------------------------
B_DEF = 2              # batch
IMG = 64               # input image spatial size (H = W)
IN_CH = 3              # RGB
PATCH = 16             # ViT patch size  -> 4x4 = 16 tokens
EMB_H = EMB_W = IMG // PATCH
SEQ = EMB_H * EMB_W
VIT_DIM = 32           # ViT width
NUM_HEADS = 2
HEAD_DIM = VIT_DIM // NUM_HEADS
MLP_DIM = 64           # ViT MLP hidden
EMBED_DIM = 32         # prompt/decoder embedding dim
DEC_MLP = 64
NUM_MASK_TOKENS = 4    # num_multimask_outputs(3) + 1
NUM_TOKENS = 1 + NUM_MASK_TOKENS + 2   # iou + mask tokens + 2 box corners
D1 = EMBED_DIM // 2    # 1st transposed-conv output channels (16)
D2 = EMBED_DIM // 4    # 2nd transposed-conv output channels (8)
LOW = 4 * EMB_H        # low-res mask size (16)


# ------------------------- in-kernel math helpers ---------------------------
def _mm(a, b):
    """MXU matmul: bf16 operands, f32 accumulation."""
    return jnp.dot(a.astype(jnp.bfloat16), b.astype(jnp.bfloat16),
                   preferred_element_type=jnp.float32)


def _mm_t(a, b):
    """a @ b.T (contract last dims): bf16 operands, f32 accumulation."""
    return jax.lax.dot_general(a.astype(jnp.bfloat16), b.astype(jnp.bfloat16),
                               (((1,), (1,)), ((), ())),
                               preferred_element_type=jnp.float32)


def _softmax(s):
    s = s - jnp.max(s, axis=-1, keepdims=True)
    p = jnp.exp(s)
    return p * pl.reciprocal(jnp.sum(p, axis=-1, keepdims=True), approx=True)


def _ln(x, g, b, eps=1e-6):
    mu = jnp.mean(x, axis=-1, keepdims=True)
    var = jnp.mean((x - mu) ** 2, axis=-1, keepdims=True)
    return (x - mu) * jax.lax.rsqrt(var + eps) * g + b


def _gelu(x):
    c = 0.7978845608028654  # sqrt(2/pi)
    return 0.5 * x * (1.0 + jnp.tanh(c * (x + 0.044715 * x * x * x)))


# ------------------------------- weight slabs --------------------------------
def _round_up(n, m):
    return (n + m - 1) // m * m


class _Slab:
    """Packs many small weights into one (rows, 128) array; static offsets."""

    def __init__(self, dtype, row_align):
        self.dtype = dtype
        self.align = row_align
        self.entries = []          # (name, rows, cols, padded_rows)
        self.offsets = {}
        self.shapes = {}
        self.total = 0

    def reserve(self, name, rows, cols):
        assert cols <= 128
        pr = _round_up(rows, self.align)
        self.offsets[name] = self.total
        self.shapes[name] = (rows, cols)
        self.entries.append((name, rows, cols, pr))
        self.total += pr

    def build(self, tensors):
        parts = []
        for name, rows, cols, pr in self.entries:
            a = jnp.asarray(tensors[name], self.dtype).reshape(rows, cols)
            parts.append(jnp.pad(a, ((0, pr - rows), (0, 128 - cols))))
        return jnp.concatenate(parts, axis=0)

    def read(self, ref, name):
        off = self.offsets[name]
        rows, cols = self.shapes[name]
        return ref[off:off + rows, :cols]


# ---------------- host-precomputed mask-head / resize constants --------------
def _bilinear_matrix(in_size, out_size):
    """F.interpolate(mode='bilinear', align_corners=False) as a matrix."""
    scale = in_size / out_size
    dst = np.arange(out_size, dtype=np.float64)
    src = np.maximum((dst + 0.5) * scale - 0.5, 0.0)
    i0 = np.minimum(np.floor(src).astype(np.int64), in_size - 1)
    i1 = np.minimum(i0 + 1, in_size - 1)
    w1 = (src - i0).astype(np.float32)
    w0 = 1.0 - w1
    Mx = np.zeros((out_size, in_size), dtype=np.float32)
    Mx[np.arange(out_size), i0] += w0
    Mx[np.arange(out_size), i1] += w1
    return Mx


def _mask_head_consts():
    # phase p = 8a + 4b + 2c + d ; low-res pixel = (4i + 2a + c, 4j + 2b + d)
    R = _bilinear_matrix(LOW, IMG)                      # (IMG, LOW) row resize
    C = _bilinear_matrix(LOW, IMG)                      # (IMG, LOW) col resize
    rowoff = np.array([2 * ((p >> 3) & 1) + ((p >> 1) & 1) for p in range(16)])
    coloff = np.array([2 * ((p >> 2) & 1) + (p & 1) for p in range(16)])
    # ctjt[j*IMG + c, p] = C[c, 4j + coloff(p)]  -> column-side resize per phase
    ctjt = np.concatenate([C[:, 4 * j + coloff] for j in range(EMB_W)], axis=0)
    # rcat[r, 16i + p] = R[r, 4i + rowoff(p)]    -> row-side resize per phase
    rcat = np.zeros((IMG, 4 * 16), np.float32)
    for i in range(EMB_H):
        rcat[:, 16 * i:16 * (i + 1)] = R[:, 4 * i + rowoff]
    # group-sum over the D2 channels of each phase
    gsum = np.kron(np.eye(16, dtype=np.float32), np.ones((D2, 1), np.float32))
    return {"ctjt": ctjt, "rcat_even": rcat[0::2], "rcat_odd": rcat[1::2],
            "gsum": gsum}


_CONSTS = _mask_head_consts()

# ------------------------------ slab layouts ---------------------------------
_BF = _Slab(jnp.bfloat16, 16)     # matmul operands
_F32 = _Slab(jnp.float32, 8)      # biases / LN params / additive & ewise consts

_BF.reserve("patch_w", PATCH * PATCH * IN_CH, VIT_DIM)
_BF.reserve("qkv_w", VIT_DIM, 3 * VIT_DIM)
_BF.reserve("proj_w", VIT_DIM, VIT_DIM)
_BF.reserve("mlp_w1", VIT_DIM, MLP_DIM)
_BF.reserve("mlp_w2", MLP_DIM, VIT_DIM)
_BF.reserve("neck_w", VIT_DIM, EMBED_DIM)
for _blk in ("sa", "ca1", "ca2"):
    for _pj in ("q", "k", "v", "o"):
        _BF.reserve(f"{_blk}_{_pj}_w", EMBED_DIM, EMBED_DIM)
_BF.reserve("dec_mlp_w1", EMBED_DIM, DEC_MLP)
_BF.reserve("dec_mlp_w2", DEC_MLP, EMBED_DIM)
_BF.reserve("up1_w", EMBED_DIM, 4 * D1)
_BF.reserve("bd2_w", 4 * D1, 16 * D2)          # block-diagonal 2nd upscale
_BF.reserve("hyper_w1", EMBED_DIM, EMBED_DIM)
_BF.reserve("hyper_w2t", EMBED_DIM, 16 * D2)   # tiled over the 16 phases
_BF.reserve("gsum", 16 * D2, 16)
_BF.reserve("rcat_even", IMG // 2, 64)
_BF.reserve("rcat_odd", IMG // 2, 64)

_F32.reserve("patch_b", 1, VIT_DIM)
_F32.reserve("pos_embed", SEQ, VIT_DIM)
_F32.reserve("ln1_g", 1, VIT_DIM)
_F32.reserve("ln1_b", 1, VIT_DIM)
_F32.reserve("qkv_b", 1, 3 * VIT_DIM)
_F32.reserve("proj_b", 1, VIT_DIM)
_F32.reserve("ln2_g", 1, VIT_DIM)
_F32.reserve("ln2_b", 1, VIT_DIM)
_F32.reserve("mlp_b1", 1, MLP_DIM)
_F32.reserve("mlp_b2", 1, VIT_DIM)
_F32.reserve("neck_g", 1, EMBED_DIM)
_F32.reserve("neck_b", 1, EMBED_DIM)
_F32.reserve("pe", SEQ, EMBED_DIM)
_F32.reserve("nme", 1, EMBED_DIM)
for _blk in ("sa", "ca1", "ca2"):
    for _pj in ("q", "k", "v", "o"):
        _F32.reserve(f"{_blk}_{_pj}_b", 1, EMBED_DIM)
for _i in (1, 2, 3, 4):
    _F32.reserve(f"dln{_i}_g", 1, EMBED_DIM)
    _F32.reserve(f"dln{_i}_b", 1, EMBED_DIM)
_F32.reserve("dec_mlp_b1", 1, DEC_MLP)
_F32.reserve("dec_mlp_b2", 1, EMBED_DIM)
_F32.reserve("up1_b", 1, 4 * D1)
_F32.reserve("bd2_b", 1, 16 * D2)
_F32.reserve("hyper_b1", 1, EMBED_DIM)
_F32.reserve("hyper_b2t", 1, 16 * D2)
_F32.reserve("ctjt", 4 * IMG, 16)


# ----------------------------- parameter init -------------------------------
def init_params(key):
    ks = iter(jax.random.split(key, 64))

    def w(shape, scale=0.02):
        return scale * jax.random.normal(next(ks), shape, jnp.float32)

    def zeros(shape):
        return jnp.zeros(shape, jnp.float32)

    def ones(shape):
        return jnp.ones(shape, jnp.float32)

    p = {}
    # --- image encoder (ViT-lite) ---
    p["patch_w"] = w((PATCH * PATCH * IN_CH, VIT_DIM))
    p["patch_b"] = zeros((VIT_DIM,))
    p["pos_embed"] = w((SEQ, VIT_DIM))
    p["ln1_g"], p["ln1_b"] = ones((VIT_DIM,)), zeros((VIT_DIM,))
    p["qkv_w"], p["qkv_b"] = w((VIT_DIM, 3 * VIT_DIM)), zeros((3 * VIT_DIM,))
    p["proj_w"], p["proj_b"] = w((VIT_DIM, VIT_DIM)), zeros((VIT_DIM,))
    p["ln2_g"], p["ln2_b"] = ones((VIT_DIM,)), zeros((VIT_DIM,))
    p["mlp_w1"], p["mlp_b1"] = w((VIT_DIM, MLP_DIM)), zeros((MLP_DIM,))
    p["mlp_w2"], p["mlp_b2"] = w((MLP_DIM, VIT_DIM)), zeros((VIT_DIM,))
    p["neck_w"] = w((VIT_DIM, EMBED_DIM))
    p["neck_ln_g"], p["neck_ln_b"] = ones((EMBED_DIM,)), zeros((EMBED_DIM,))
    # --- prompt encoder (frozen: requires_grad=False in PyTorch) ---
    p["pe_gaussian"] = jax.random.normal(next(ks), (2, EMBED_DIM // 2), jnp.float32)
    p["point_embed_2"] = w((EMBED_DIM,))
    p["point_embed_3"] = w((EMBED_DIM,))
    p["no_mask_embed"] = w((EMBED_DIM,))
    # --- mask decoder ---
    p["iou_token"] = w((1, EMBED_DIM))
    p["mask_tokens"] = w((NUM_MASK_TOKENS, EMBED_DIM))
    for name in ("sa", "ca1", "ca2"):
        for proj in ("q", "k", "v", "o"):
            p[f"{name}_{proj}_w"] = w((EMBED_DIM, EMBED_DIM))
            p[f"{name}_{proj}_b"] = zeros((EMBED_DIM,))
    for i in (1, 2, 3, 4):
        p[f"dec_ln{i}_g"], p[f"dec_ln{i}_b"] = ones((EMBED_DIM,)), zeros((EMBED_DIM,))
    p["dec_mlp_w1"], p["dec_mlp_b1"] = w((EMBED_DIM, DEC_MLP)), zeros((DEC_MLP,))
    p["dec_mlp_w2"], p["dec_mlp_b2"] = w((DEC_MLP, EMBED_DIM)), zeros((EMBED_DIM,))
    p["up1_w"], p["up1_b"] = w((EMBED_DIM, 4 * D1)), zeros((4 * D1,))
    p["up2_w"], p["up2_b"] = w((D1, 4 * D2)), zeros((4 * D2,))
    p["hyper_w1"], p["hyper_b1"] = w((EMBED_DIM, EMBED_DIM)), zeros((EMBED_DIM,))
    p["hyper_w2"], p["hyper_b2"] = w((EMBED_DIM, D2)), zeros((D2,))
    return p


# ----------------------------- prompt encoder (JAX glue) ---------------------
def _pe_encoding(params, coords01):
    c = 2.0 * coords01 - 1.0
    c = c @ params["pe_gaussian"]
    c = 2.0 * jnp.pi * c
    return jnp.concatenate([jnp.sin(c), jnp.cos(c)], axis=-1)


def prompt_encoder_sparse(params, boxes, input_image_size):
    """boxes: (B, 1, 4) xyxy pixels (frozen / no-grad path) -> (B, 2, D)."""
    B = boxes.shape[0]
    coords = boxes.reshape(B, 2, 2) + 0.5
    coords = coords / jnp.array(
        [input_image_size[1], input_image_size[0]], jnp.float32)
    corner = _pe_encoding(params, coords)
    corner = corner.at[:, 0, :].add(params["point_embed_2"])
    corner = corner.at[:, 1, :].add(params["point_embed_3"])
    return corner


def get_dense_pe(params):
    ys = (jnp.arange(EMB_H, dtype=jnp.float32) + 0.5) / EMB_H
    xs = (jnp.arange(EMB_W, dtype=jnp.float32) + 0.5) / EMB_W
    X, Y = jnp.meshgrid(xs, ys, indexing="xy")
    grid = jnp.stack([X, Y], axis=-1)
    return _pe_encoding(params, grid).reshape(SEQ, EMBED_DIM)


# ------------------------------ fused kernel ---------------------------------
def _fused_kernel(x_ref, tok_ref, wb_ref, wf_ref, o_ref):
    W = lambda n: _BF.read(wb_ref, n)      # bf16 matmul operands
    Vv = lambda n: _F32.read(wf_ref, n)    # f32 biases / LN / constants

    # ---------------- image encoder (ViT-lite) ----------------
    x = _mm(x_ref[0], W("patch_w")) + Vv("patch_b")                  # (SEQ, D)
    x = x + Vv("pos_embed")

    h = _ln(x, Vv("ln1_g"), Vv("ln1_b"))
    qkv = _mm(h, W("qkv_w")) + Vv("qkv_b")                           # (SEQ, 3D)
    proj_w = W("proj_w")
    attn_out = jnp.zeros_like(x)
    scale = 1.0 / np.sqrt(HEAD_DIM)
    for hd in range(NUM_HEADS):
        q = qkv[:, hd * HEAD_DIM:(hd + 1) * HEAD_DIM]
        k = qkv[:, VIT_DIM + hd * HEAD_DIM:VIT_DIM + (hd + 1) * HEAD_DIM]
        v = qkv[:, 2 * VIT_DIM + hd * HEAD_DIM:2 * VIT_DIM + (hd + 1) * HEAD_DIM]
        p = _softmax(_mm_t(q, k) * scale)
        attn_out = attn_out + _mm(_mm(p, v),
                                  proj_w[hd * HEAD_DIM:(hd + 1) * HEAD_DIM, :])
    x = x + attn_out + Vv("proj_b")

    h = _ln(x, Vv("ln2_g"), Vv("ln2_b"))
    h = _gelu(_mm(h, W("mlp_w1")) + Vv("mlp_b1"))
    x = x + _mm(h, W("mlp_w2")) + Vv("mlp_b2")

    src = _ln(_mm(x, W("neck_w")), Vv("neck_g"), Vv("neck_b"))       # (SEQ, D)

    # ---------------- mask decoder (two-way attention) ----------------
    # TODO(synk): full SAM TwoWayTransformer has 2 blocks + final token->image
    # attention + IoU head; a single two-way block is implemented here.
    tokens = tok_ref[0]                                              # (7, D)
    src = src + Vv("nme")                                            # dense (no-mask) embedding
    srcpos = src + Vv("pe")
    dscale = 1.0 / np.sqrt(EMBED_DIM)

    def lin(xx, name):
        return _mm(xx, W(name + "_w")) + Vv(name + "_b")

    def attn(q, k, v):
        return _mm(_softmax(_mm_t(q, k) * dscale), v)

    def dln(xx, i):
        return _ln(xx, Vv(f"dln{i}_g"), Vv(f"dln{i}_b"))

    a = attn(lin(tokens, "sa_q"), lin(tokens, "sa_k"), lin(tokens, "sa_v"))
    tokens = dln(tokens + lin(a, "sa_o"), 1)
    a = attn(lin(tokens, "ca1_q"), lin(srcpos, "ca1_k"), lin(src, "ca1_v"))
    tokens = dln(tokens + lin(a, "ca1_o"), 2)
    m = jnp.maximum(_mm(tokens, W("dec_mlp_w1")) + Vv("dec_mlp_b1"), 0.0)
    tokens = dln(tokens + _mm(m, W("dec_mlp_w2")) + Vv("dec_mlp_b2"), 3)
    a = attn(lin(srcpos, "ca2_q"), lin(tokens, "ca2_k"), lin(tokens, "ca2_v"))
    src = dln(src + lin(a, "ca2_o"), 4)

    # -------- mask head: upscale + hyper dot + fused bilinear resize --------
    # hypernetwork for mask token 0 only (multimask_output=False in forward)
    mt0 = tokens[1:2, :]
    hyp = jnp.maximum(_mm(mt0, W("hyper_w1")) + Vv("hyper_b1"), 0.0)
    h_tiled = _mm(hyp, W("hyper_w2t")) + Vv("hyper_b2t")             # (1, 128)

    s1 = _gelu(_mm(src, W("up1_w")) + Vv("up1_b"))                   # (16, 64)
    s2 = _gelu(_mm(s1, W("bd2_w")) + Vv("bd2_b"))                    # (16, 128)
    lowp = _mm(s2 * h_tiled, W("gsum"))                              # (16, 16): rows=4i+j, cols=phase

    # column-side resize fused with the transposed-conv pixel shuffle
    ct = Vv("ctjt")                                                  # (4*IMG, 16)
    vblocks = []
    for i in range(EMB_H):
        acc = ct[0:IMG, :] * lowp[EMB_W * i:EMB_W * i + 1, :]
        for j in range(1, EMB_W):
            acc = acc + (ct[j * IMG:(j + 1) * IMG, :]
                         * lowp[EMB_W * i + j:EMB_W * i + j + 1, :])
        vblocks.append(acc)                                          # (IMG, 16)
    vmat = jnp.concatenate(vblocks, axis=1)                          # (IMG, 64)

    # row-side resize; even/odd output rows packed along lanes -> (32, 128)
    packed = jnp.concatenate(
        [_mm_t(W("rcat_even"), vmat), _mm_t(W("rcat_odd"), vmat)], axis=1)
    o_ref[0] = packed


# ------------------------------ slab data ------------------------------------
def _build_slabs(params):
    bf = {
        "patch_w": params["patch_w"], "qkv_w": params["qkv_w"],
        "proj_w": params["proj_w"], "mlp_w1": params["mlp_w1"],
        "mlp_w2": params["mlp_w2"], "neck_w": params["neck_w"],
        "dec_mlp_w1": params["dec_mlp_w1"], "dec_mlp_w2": params["dec_mlp_w2"],
        "up1_w": params["up1_w"], "hyper_w1": params["hyper_w1"],
        "bd2_w": jnp.kron(jnp.eye(4, dtype=jnp.float32), params["up2_w"]),
        "hyper_w2t": jnp.tile(params["hyper_w2"], (1, 16)),
        "gsum": _CONSTS["gsum"],
        "rcat_even": _CONSTS["rcat_even"], "rcat_odd": _CONSTS["rcat_odd"],
    }
    for blk in ("sa", "ca1", "ca2"):
        for pj in ("q", "k", "v", "o"):
            bf[f"{blk}_{pj}_w"] = params[f"{blk}_{pj}_w"]

    f32 = {
        "patch_b": params["patch_b"], "pos_embed": params["pos_embed"],
        "ln1_g": params["ln1_g"], "ln1_b": params["ln1_b"],
        "qkv_b": params["qkv_b"], "proj_b": params["proj_b"],
        "ln2_g": params["ln2_g"], "ln2_b": params["ln2_b"],
        "mlp_b1": params["mlp_b1"], "mlp_b2": params["mlp_b2"],
        "neck_g": params["neck_ln_g"], "neck_b": params["neck_ln_b"],
        "pe": get_dense_pe(params), "nme": params["no_mask_embed"],
        "dec_mlp_b1": params["dec_mlp_b1"], "dec_mlp_b2": params["dec_mlp_b2"],
        "up1_b": params["up1_b"],
        "bd2_b": jnp.tile(params["up2_b"], (4,)),
        "hyper_b1": params["hyper_b1"],
        "hyper_b2t": jnp.tile(params["hyper_b2"], (16,)),
        "ctjt": _CONSTS["ctjt"],
    }
    for blk in ("sa", "ca1", "ca2"):
        for pj in ("q", "k", "v", "o"):
            f32[f"{blk}_{pj}_b"] = params[f"{blk}_{pj}_b"]
    for i in (1, 2, 3, 4):
        f32[f"dln{i}_g"] = params[f"dec_ln{i}_g"]
        f32[f"dln{i}_b"] = params[f"dec_ln{i}_b"]

    return _BF.build(bf), _F32.build(f32)


# ----------------------------- MedSAM.forward --------------------------------
def medsam_forward(params, image, box):
    """image: (B, 3, H, W) float32 NCHW; box: (B, 4) xyxy -> (B, 1, H, W)."""
    B, C, H, Wd = image.shape
    assert (C, H, Wd) == (IN_CH, IMG, IMG), "kernel specialised to synthetic dims"

    # patch extraction (layout plumbing, outside the kernel)
    x = image.reshape(B, C, EMB_H, PATCH, EMB_W, PATCH)
    x = x.transpose(0, 2, 4, 3, 5, 1).reshape(B, SEQ, PATCH * PATCH * C)
    x = x.astype(jnp.float32)

    # prompt encoder runs under torch.no_grad() in PyTorch (frozen params)
    box = jnp.asarray(box, jnp.float32)
    if box.ndim == 2:
        box = box[:, None, :]
    sparse = prompt_encoder_sparse(params, box, (H, Wd))             # (B, 2, D)
    output_tokens = jnp.concatenate([params["iou_token"], params["mask_tokens"]], 0)
    tokens = jnp.concatenate(
        [jnp.broadcast_to(output_tokens[None], (B,) + output_tokens.shape),
         sparse.astype(jnp.float32)], axis=1)                        # (B, 7, D)

    wb, wf = _build_slabs(params)

    packed = pl.pallas_call(
        _fused_kernel,
        grid=(B,),
        in_specs=[
            pl.BlockSpec((1, SEQ, PATCH * PATCH * IN_CH), lambda b: (b, 0, 0)),
            pl.BlockSpec((1, NUM_TOKENS, EMBED_DIM), lambda b: (b, 0, 0)),
            pl.BlockSpec(wb.shape, lambda b: (0, 0)),
            pl.BlockSpec(wf.shape, lambda b: (0, 0)),
        ],
        out_specs=pl.BlockSpec((1, IMG // 2, 2 * IMG), lambda b: (b, 0, 0)),
        out_shape=jax.ShapeDtypeStruct((B, IMG // 2, 2 * IMG), jnp.float32),
        compiler_params=pltpu.CompilerParams(dimension_semantics=("parallel",)),
    )(x, tokens, wb, wf)

    # (B, 32, 128) -> (B, 1, 64, 64): even/odd rows were lane-packed, so this
    # row-major reshape restores the image (pure metadata, no data movement).
    return packed.reshape(B, 1, IMG, IMG)


# ----------------------------------- main ------------------------------------
if __name__ == "__main__":
    key = jax.random.PRNGKey(0)
    k_img, _ = jax.random.split(key)
    image = jax.random.normal(k_img, (B_DEF, IN_CH, IMG, IMG), jnp.float32)
    box = jnp.array([[8.0, 8.0, 40.0, 48.0],
                     [4.0, 12.0, 56.0, 60.0]], jnp.float32)   # (B, 4) xyxy

    params = init_params(jax.random.PRNGKey(42))

    fwd = jax.jit(medsam_forward)
    out = jax.block_until_ready(fwd(params, image, box))
    assert out.shape == (B_DEF, 1, IMG, IMG), out.shape
    assert bool(jnp.all(jnp.isfinite(out)))
    print("KERNEL_OK")
</pallas_src>

<mosaic_0001>
module attributes {stable_mosaic.version = 11 : i64} {
  func.func @_fused_kernel(%arg0: i32, %arg1: memref<1x16x768xf32, #tpu.memory_space<vmem>>, %arg2: memref<1x7x32xf32, #tpu.memory_space<vmem>>, %arg3: memref<1792x128xbf16, #tpu.memory_space<vmem>>, %arg4: memref<592x128xf32, #tpu.memory_space<vmem>>, %arg5: memref<1x32x128xf32, #tpu.memory_space<vmem>>) attributes {dimension_semantics = [#tpu.dimension_semantics<parallel>], iteration_bounds = array<i64: 2>, scalar_prefetch = 0 : i64, scratch_operands = 0 : i64, tpu.core_type = #tpu.core_type<tc>, window_params = [{transform_indices = @transform_0, window_bounds = array<i64: 1, 16, 768>}, {transform_indices = @transform_1, window_bounds = array<i64: 1, 7, 32>}, {pipeline_mode = #tpu.pipeline_mode<synchronous>, transform_indices = @transform_2, window_bounds = array<i64: 1792, 128>}, {pipeline_mode = #tpu.pipeline_mode<synchronous>, transform_indices = @transform_3, window_bounds = array<i64: 592, 128>}, {transform_indices = @transform_4, window_bounds = array<i64: 1, 32, 128>}]} {
    %c0 = arith.constant 0 : index
    %c0_0 = arith.constant 0 : index
    %c0_1 = arith.constant 0 : index
    %0 = vector.load %arg1[%c0, %c0_0, %c0_1] : memref<1x16x768xf32, #tpu.memory_space<vmem>>, vector<1x16x768xf32>
    %1 = vector.shape_cast %0 : vector<1x16x768xf32> to vector<16x768xf32>
    %c0_2 = arith.constant 0 : index
    %c0_3 = arith.constant 0 : index
    %2 = vector.load %arg3[%c0_2, %c0_3] : memref<1792x128xbf16, #tpu.memory_space<vmem>>, vector<768x32xbf16>
    %3 = arith.truncf %1 : vector<16x768xf32> to vector<16x768xbf16>
    %cst = arith.constant dense<0.000000e+00> : vector<16x32xf32>
    %4 = tpu.matmul %3, %2, %cst {dimension_numbers = #tpu.dot_dimension_numbers<[1], [0], [0], [1], [0, 0, 1, 1], [], []>} : vector<16x768xbf16>, vector<768x32xbf16>, vector<16x32xf32> -> vector<16x32xf32>
    %c0_4 = arith.constant 0 : index
    %c0_5 = arith.constant 0 : index
    %5 = vector.load %arg4[%c0_4, %c0_5] : memref<592x128xf32, #tpu.memory_space<vmem>>, vector<1x32xf32>
    %6 = vector.broadcast %5 : vector<1x32xf32> to vector<16x32xf32>
    %7 = arith.addf %4, %6 : vector<16x32xf32>
    %c8 = arith.constant 8 : index
    %c0_6 = arith.constant 0 : index
    %8 = vector.load %arg4[%c8, %c0_6] : memref<592x128xf32, #tpu.memory_space<vmem>>, vector<16x32xf32>
    %9 = arith.addf %7, %8 : vector<16x32xf32>
    %c24 = arith.constant 24 : index
    %c0_7 = arith.constant 0 : index
    %10 = vector.load %arg4[%c24, %c0_7] : memref<592x128xf32, #tpu.memory_space<vmem>>, vector<1x32xf32>
    %c32 = arith.constant 32 : index
    %c0_8 = arith.constant 0 : index
    %11 = vector.load %arg4[%c32, %c0_8] : memref<592x128xf32, #tpu.memory_space<vmem>>, vector<1x32xf32>
    %cst_9 = arith.constant dense<0.000000e+00> : vector<16xf32>
    %12 = vector.multi_reduction <add>, %9, %cst_9 [1] : vector<16x32xf32> to vector<16xf32>
    %13 = vector.shape_cast %12 : vector<16xf32> to vector<16x1xf32>
    %cst_10 = arith.constant 3.200000e+01 : f32
    %14 = vector.broadcast %cst_10 : f32 to vector<16x1xf32>
    %15 = arith.divf %13, %14 : vector<16x1xf32>
    %16 = vector.broadcast %15 : vector<16x1xf32> to vector<16x32xf32>
    %17 = arith.subf %9, %16 : vector<16x32xf32>
    %18 = arith.mulf %17, %17 : vector<16x32xf32>
    %cst_11 = arith.constant dense<0.000000e+00> : vector<16xf32>
    %19 = vector.multi_reduction <add>, %18, %cst_11 [1] : vector<16x32xf32> to vector<16xf32>
    %20 = vector.shape_cast %19 : vector<16xf32> to vector<16x1xf32>
    %cst_12 = arith.constant 3.200000e+01 : f32
    %21 = vector.broadcast %cst_12 : f32 to vector<16x1xf32>
    %22 = arith.divf %20, %21 : vector<16x1xf32>
    %23 = vector.broadcast %15 : vector<16x1xf32> to vector<16x32xf32>
    %24 = arith.subf %9, %23 : vector<16x32xf32>
    %cst_13 = arith.constant 9.99999997E-7 : f32
    %25 = vector.broadcast %cst_13 : f32 to vector<16x1xf32>
    %26 = arith.addf %22, %25 : vector<16x1xf32>
    %27 = math.rsqrt %26 : vector<16x1xf32>
    %28 = vector.broadcast %27 : vector<16x1xf32> to vector<16x32xf32>
    %29 = arith.mulf %24, %28 : vector<16x32xf32>
    %30 = vector.broadcast %10 : vector<1x32xf32> to vector<16x32xf32>
    %31 = arith.mulf %29, %30 : vector<16x32xf32>
    %32 = vector.broadcast %11 : vector<1x32xf32> to vector<16x32xf32>
    %33 = arith.addf %31, %32 : vector<16x32xf32>
    %c768 = arith.constant 768 : index
    %c0_14 = arith.constant 0 : index
    %34 = vector.load %arg3[%c768, %c0_14] : memref<1792x128xbf16, #tpu.memory_space<vmem>>, vector<32x96xbf16>
    %35 = arith.truncf %33 : vector<16x32xf32> to vector<16x32xbf16>
    %cst_15 = arith.constant dense<0.000000e+00> : vector<16x96xf32>
    %36 = tpu.matmul %35, %34, %cst_15 {dimension_numbers = #tpu.dot_dimension_numbers<[1], [0], [0], [1], [0, 0, 1, 1], [], []>} : vector<16x32xbf16>, vector<32x96xbf16>, vector<16x96xf32> -> vector<16x96xf32>
    %c40 = arith.constant 40 : index
    %c0_16 = arith.constant 0 : index
    %37 = vector.load %arg4[%c40, %c0_16] : memref<592x128xf32, #tpu.memory_space<vmem>>, vector<1x96xf32>
    %38 = vector.broadcast %37 : vector<1x96xf32> to vector<16x96xf32>
    %39 = arith.addf %36, %38 : vector<16x96xf32>
    %c800 = arith.constant 800 : index
    %c0_17 = arith.constant 0 : index
    %40 = vector.load %arg3[%c800, %c0_17] : memref<1792x128xbf16, #tpu.memory_space<vmem>>, vector<32x32xbf16>
    %cst_18 = arith.constant 0.000000e+00 : f32
    %41 = vector.broadcast %cst_18 : f32 to vector<16x32xf32>
    %42 = vector.extract_strided_slice %39 {offsets = [0, 0], sizes = [16, 16], strides = [1, 1]} : vector<16x96xf32> to vector<16x16xf32>
    %43 = vector.extract_strided_slice %39 {offsets = [0, 32], sizes = [16, 16], strides = [1, 1]} : vector<16x96xf32> to vector<16x16xf32>
    %44 = vector.extract_strided_slice %39 {offsets = [0, 64], sizes = [16, 16], strides = [1, 1]} : vector<16x96xf32> to vector<16x16xf32>
    %45 = arith.truncf %42 : vector<16x16xf32> to vector<16x16xbf16>
    %46 = arith.truncf %43 : vector<16x16xf32> to vector<16x16xbf16>
    %cst_19 = arith.constant dense<0.000000e+00> : vector<16x16xf32>
    %47 = tpu.matmul %45, %46, %cst_19 {dimension_numbers = #tpu.dot_dimension_numbers<[1], [1], [0], [0], [0, 0, 1, 0], [], []>} : vector<16x16xbf16>, vector<16x16xbf16>, vector<16x16xf32> -> vector<16x16xf32>
    %cst_20 = arith.constant 2.500000e-01 : f32
    %48 = vector.broadcast %cst_20 : f32 to vector<16x16xf32>
    %49 = arith.mulf %47, %48 : vector<16x16xf32>
    %cst_21 = arith.constant dense<0xFF800000> : vector<16xf32>
    %50 = vector.multi_reduction <maximumf>, %49, %cst_21 [1] : vector<16x16xf32> to vector<16xf32>
    %51 = vector.shape_cast %50 : vector<16xf32> to vector<16x1xf32>
    %52 = vector.broadcast %51 : vector<16x1xf32> to vector<16x16xf32>
    %53 = arith.subf %49, %52 : vector<16x16xf32>
    %54 = math.exp %53 : vector<16x16xf32>
    %cst_22 = arith.constant dense<0.000000e+00> : vector<16xf32>
    %55 = vector.multi_reduction <add>, %54, %cst_22 [1] : vector<16x16xf32> to vector<16xf32>
    %56 = vector.shape_cast %55 : vector<16xf32> to vector<16x1xf32>
    %57 = tpu.reciprocal %56 {approx = true} : vector<16x1xf32> -> vector<16x1xf32>
    %58 = vector.broadcast %57 : vector<16x1xf32> to vector<16x16xf32>
    %59 = arith.mulf %54, %58 : vector<16x16xf32>
    %60 = arith.truncf %59 : vector<16x16xf32> to vector<16x16xbf16>
    %61 = arith.truncf %44 : vector<16x16xf32> to vector<16x16xbf16>
    %cst_23 = arith.constant dense<0.000000e+00> : vector<16x16xf32>
    %62 = tpu.matmul %60, %61, %cst_23 {dimension_numbers = #tpu.dot_dimension_numbers<[1], [0], [0], [1], [0, 0, 1, 1], [], []>} : vector<16x16xbf16>, vector<16x16xbf16>, vector<16x16xf32> -> vector<16x16xf32>
    %63 = vector.extract_strided_slice %40 {offsets = [0, 0], sizes = [16, 32], strides = [1, 1]} : vector<32x32xbf16> to vector<16x32xbf16>
    %64 = arith.truncf %62 : vector<16x16xf32> to vector<16x16xbf16>
    %cst_24 = arith.constant dense<0.000000e+00> : vector<16x32xf32>
    %65 = tpu.matmul %64, %63, %cst_24 {dimension_numbers = #tpu.dot_dimension_numbers<[1], [0], [0], [1], [0, 0, 1, 1], [], []>} : vector<16x16xbf16>, vector<16x32xbf16>, vector<16x32xf32> -> vector<16x32xf32>
    %66 = arith.addf %41, %65 : vector<16x32xf32>
    %67 = vector.extract_strided_slice %39 {offsets = [0, 16], sizes = [16, 16], strides = [1, 1]} : vector<16x96xf32> to vector<16x16xf32>
    %68 = vector.extract_strided_slice %39 {offsets = [0, 48], sizes = [16, 16], strides = [1, 1]} : vector<16x96xf32> to vector<16x16xf32>
    %69 = vector.extract_strided_slice %39 {offsets = [0, 80], sizes = [16, 16], strides = [1, 1]} : vector<16x96xf32> to vector<16x16xf32>
    %70 = arith.truncf %67 : vector<16x16xf32> to vector<16x16xbf16>
    %71 = arith.truncf %68 : vector<16x16xf32> to vector<16x16xbf16>
    %cst_25 = arith.constant dense<0.000000e+00> : vector<16x16xf32>
    %72 = tpu.matmul %70, %71, %cst_25 {dimension_numbers = #tpu.dot_dimension_numbers<[1], [1], [0], [0], [0, 0, 1, 0], [], []>} : vector<16x16xbf16>, vector<16x16xbf16>, vector<16x16xf32> -> vector<16x16xf32>
    %cst_26 = arith.constant 2.500000e-01 : f32
    %73 = vector.broadcast %cst_26 : f32 to vector<16x16xf32>
    %74 = arith.mulf %72, %73 : vector<16x16xf32>
    %cst_27 = arith.constant dense<0xFF800000> : vector<16xf32>
    %75 = vector.multi_reduction <maximumf>, %74, %cst_27 [1] : vector<16x16xf32> to vector<16xf32>
    %76 = vector.shape_cast %75 : vector<16xf32> to vector<16x1xf32>
    %77 = vector.broadcast %76 : vector<16x1xf32> to vector<16x16xf32>
    %78 = arith.subf %74, %77 : vector<16x16xf32>
    %79 = math.exp %78 : vector<16x16xf32>
    %cst_28 = arith.constant dense<0.000000e+00> : vector<16xf32>
    %80 = vector.multi_reduction <add>, %79, %cst_28 [1] : vector<16x16xf32> to vector<16xf32>
    %81 = vector.shape_cast %80 : vector<16xf32> to vector<16x1xf32>
    %82 = tpu.reciprocal %81 {approx = true} : vector<16x1xf32> -> vector<16x1xf32>
    %83 = vector.broadcast %82 : vector<16x1xf32> to vector<16x16xf32>
    %84 = arith.mulf %79, %83 : vector<16x16xf32>
    %85 = arith.truncf %84 : vector<16x16xf32> to vector<16x16xbf16>
    %86 = arith.truncf %69 : vector<16x16xf32> to vector<16x16xbf16>
    %cst_29 = arith.constant dense<0.000000e+00> : vector<16x16xf32>
    %87 = tpu.matmul %85, %86, %cst_29 {dimension_numbers = #tpu.dot_dimension_numbers<[1], [0], [0], [1], [0, 0, 1, 1], [], []>} : vector<16x16xbf16>, vector<16x16xbf16>, vector<16x16xf32> -> vector<16x16xf32>
    %88 = vector.extract_strided_slice %40 {offsets = [16, 0], sizes = [16, 32], strides = [1, 1]} : vector<32x32xbf16> to vector<16x32xbf16>
    %89 = arith.truncf %87 : vector<16x16xf32> to vector<16x16xbf16>
    %cst_30 = arith.constant dense<0.000000e+00> : vector<16x32xf32>
    %90 = tpu.matmul %89, %88, %cst_30 {dimension_numbers = #tpu.dot_dimension_numbers<[1], [0], [0], [1], [0, 0, 1, 1], [], []>} : vector<16x16xbf16>, vector<16x32xbf16>, vector<16x32xf32> -> vector<16x32xf32>
    %91 = arith.addf %66, %90 : vector<16x32xf32>
    %92 = arith.addf %9, %91 : vector<16x32xf32>
    %c48 = arith.constant 48 : index
    %c0_31 = arith.constant 0 : index
    %93 = vector.load %arg4[%c48, %c0_31] : memref<592x128xf32, #tpu.memory_space<vmem>>, vector<1x32xf32>
    %94 = vector.broadcast %93 : vector<1x32xf32> to vector<16x32xf32>
    %95 = arith.addf %92, %94 : vector<16x32xf32>
    %c56 = arith.constant 56 : index
    %c0_32 = arith.constant 0 : index
    %96 = vector.load %arg4[%c56, %c0_32] : memref<592x128xf32, #tpu.memory_space<vmem>>, vector<1x32xf32>
    %c64 = arith.constant 64 : index
    %c0_33 = arith.constant 0 : index
    %97 = vector.load %arg4[%c64, %c0_33] : memref<592x128xf32, #tpu.memory_space<vmem>>, vector<1x32xf32>
    %cst_34 = arith.constant dense<0.000000e+00> : vector<16xf32>
    %98 = vector.multi_reduction <add>, %95, %cst_34 [1] : vector<16x32xf32> to vector<16xf32>
    %99 = vector.shape_cast %98 : vector<16xf32> to vector<16x1xf32>
    %cst_35 = arith.constant 3.200000e+01 : f32
    %100 = vector.broadcast %cst_35 : f32 to vector<16x1xf32>
    %101 = arith.divf %99, %100 : vector<16x1xf32>
    %102 = vector.broadcast %101 : vector<16x1xf32> to vector<16x32xf32>
    %103 = arith.subf %95, %102 : vector<16x32xf32>
    %104 = arith.mulf %103, %103 : vector<16x32xf32>
    %cst_36 = arith.constant dense<0.000000e+00> : vector<16xf32>
    %105 = vector.multi_reduction <add>, %104, %cst_36 [1] : vector<16x32xf32> to vector<16xf32>
    %106 = vector.shape_cast %105 : vector<16xf32> to vector<16x1xf32>
    %cst_37 = arith.constant 3.200000e+01 : f32
    %107 = vector.broadcast %cst_37 : f32 to vector<16x1xf32>
    %108 = arith.divf %106, %107 : vector<16x1xf32>
    %109 = vector.broadcast %101 : vector<16x1xf32> to vector<16x32xf32>
    %110 = arith.subf %95, %109 : vector<16x32xf32>
    %cst_38 = arith.constant 9.99999997E-7 : f32
    %111 = vector.broadcast %cst_38 : f32 to vector<16x1xf32>
    %112 = arith.addf %108, %111 : vector<16x1xf32>
    %113 = math.rsqrt %112 : vector<16x1xf32>
    %114 = vector.broadcast %113 : vector<16x1xf32> to vector<16x32xf32>
    %115 = arith.mulf %110, %114 : vector<16x32xf32>
    %116 = vector.broadcast %96 : vector<1x32xf32> to vector<16x32xf32>
    %117 = arith.mulf %115, %116 : vector<16x32xf32>
    %118 = vector.broadcast %97 : vector<1x32xf32> to vector<16x32xf32>
    %119 = arith.addf %117, %118 : vector<16x32xf32>
    %c832 = arith.constant 832 : index
    %c0_39 = arith.constant 0 : index
    %120 = vector.load %arg3[%c832, %c0_39] : memref<1792x128xbf16, #tpu.memory_space<vmem>>, vector<32x64xbf16>
    %121 = arith.truncf %119 : vector<16x32xf32> to vector<16x32xbf16>
    %cst_40 = arith.constant dense<0.000000e+00> : vector<16x64xf32>
    %122 = tpu.matmul %121, %120, %cst_40 {dimension_numbers = #tpu.dot_dimension_numbers<[1], [0], [0], [1], [0, 0, 1, 1], [], []>} : vector<16x32xbf16>, vector<32x64xbf16>, vector<16x64xf32> -> vector<16x64xf32>
    %c72 = arith.constant 72 : index
    %c0_41 = arith.constant 0 : index
    %123 = vector.load %arg4[%c72, %c0_41] : memref<592x128xf32, #tpu.memory_space<vmem>>, vector<1x64xf32>
    %124 = vector.broadcast %123 : vector<1x64xf32> to vector<16x64xf32>
    %125 = arith.addf %122, %124 : vector<16x64xf32>
    %cst_42 = arith.constant 5.000000e-01 : f32
    %126 = vector.broadcast %cst_42 : f32 to vector<16x64xf32>
    %127 = arith.mulf %126, %125 : vector<16x64xf32>
    %cst_43 = arith.constant 4.471500e-02 : f32
    %128 = vector.broadcast %cst_43 : f32 to vector<16x64xf32>
    %129 = arith.mulf %128, %125 : vector<16x64xf32>
    %130 = arith.mulf %129, %125 : vector<16x64xf32>
    %131 = arith.mulf %130, %125 : vector<16x64xf32>
    %132 = arith.addf %125, %131 : vector<16x64xf32>
    %cst_44 = arith.constant 0.797884583 : f32
    %133 = vector.broadcast %cst_44 : f32 to vector<16x64xf32>
    %134 = arith.mulf %133, %132 : vector<16x64xf32>
    %135 = math.tanh %134 : vector<16x64xf32>
    %cst_45 = arith.constant 1.000000e+00 : f32
    %136 = vector.broadcast %cst_45 : f32 to vector<16x64xf32>
    %137 = arith.addf %136, %135 : vector<16x64xf32>
    %138 = arith.mulf %127, %137 : vector<16x64xf32>
    %c864 = arith.constant 864 : index
    %c0_46 = arith.constant 0 : index
    %139 = vector.load %arg3[%c864, %c0_46] : memref<1792x128xbf16, #tpu.memory_space<vmem>>, vector<64x32xbf16>
    %140 = arith.truncf %138 : vector<16x64xf32> to vector<16x64xbf16>
    %cst_47 = arith.constant dense<0.000000e+00> : vector<16x32xf32>
    %141 = tpu.matmul %140, %139, %cst_47 {dimension_numbers = #tpu.dot_dimension_numbers<[1], [0], [0], [1], [0, 0, 1, 1], [], []>} : vector<16x64xbf16>, vector<64x32xbf16>, vector<16x32xf32> -> vector<16x32xf32>
    %142 = arith.addf %95, %141 : vector<16x32xf32>
    %c80 = arith.constant 80 : index
    %c0_48 = arith.constant 0 : index
    %143 = vector.load %arg4[%c80, %c0_48] : memref<592x128xf32, #tpu.memory_space<vmem>>, vector<1x32xf32>
    %144 = vector.broadcast %143 : vector<1x32xf32> to vector<16x32xf32>
    %145 = arith.addf %142, %144 : vector<16x32xf32>
    %c928 = arith.constant 928 : index
    %c0_49 = arith.constant 0 : index
    %146 = vector.load %arg3[%c928, %c0_49] : memref<1792x128xbf16, #tpu.memory_space<vmem>>, vector<32x32xbf16>
    %147 = arith.truncf %145 : vector<16x32xf32> to vector<16x32xbf16>
    %cst_50 = arith.constant dense<0.000000e+00> : vector<16x32xf32>
    %148 = tpu.matmul %147, %146, %cst_50 {dimension_numbers = #tpu.dot_dimension_numbers<[1], [0], [0], [1], [0, 0, 1, 1], [], []>} : vector<16x32xbf16>, vector<32x32xbf16>, vector<16x32xf32> -> vector<16x32xf32>
    %c88 = arith.constant 88 : index
    %c0_51 = arith.constant 0 : index
    %149 = vector.load %arg4[%c88, %c0_51] : memref<592x128xf32, #tpu.memory_space<vmem>>, vector<1x32xf32>
    %c96 = arith.constant 96 : index
    %c0_52 = arith.constant 0 : index
    %150 = vector.load %arg4[%c96, %c0_52] : memref<592x128xf32, #tpu.memory_space<vmem>>, vector<1x32xf32>
    %cst_53 = arith.constant dense<0.000000e+00> : vector<16xf32>
    %151 = vector.multi_reduction <add>, %148, %cst_53 [1] : vector<16x32xf32> to vector<16xf32>
    %152 = vector.shape_cast %151 : vector<16xf32> to vector<16x1xf32>
    %cst_54 = arith.constant 3.200000e+01 : f32
    %153 = vector.broadcast %cst_54 : f32 to vector<16x1xf32>
    %154 = arith.divf %152, %153 : vector<16x1xf32>
    %155 = vector.broadcast %154 : vector<16x1xf32> to vector<16x32xf32>
    %156 = arith.subf %148, %155 : vector<16x32xf32>
    %157 = arith.mulf %156, %156 : vector<16x32xf32>
    %cst_55 = arith.constant dense<0.000000e+00> : vector<16xf32>
    %158 = vector.multi_reduction <add>, %157, %cst_55 [1] : vector<16x32xf32> to vector<16xf32>
    %159 = vector.shape_cast %158 : vector<16xf32> to vector<16x1xf32>
    %cst_56 = arith.constant 3.200000e+01 : f32
    %160 = vector.broadcast %cst_56 : f32 to vector<16x1xf32>
    %161 = arith.divf %159, %160 : vector<16x1xf32>
    %162 = vector.broadcast %154 : vector<16x1xf32> to vector<16x32xf32>
    %163 = arith.subf %148, %162 : vector<16x32xf32>
    %cst_57 = arith.constant 9.99999997E-7 : f32
    %164 = vector.broadcast %cst_57 : f32 to vector<16x1xf32>
    %165 = arith.addf %161, %164 : vector<16x1xf32>
    %166 = math.rsqrt %165 : vector<16x1xf32>
    %167 = vector.broadcast %166 : vector<16x1xf32> to vector<16x32xf32>
    %168 = arith.mulf %163, %167 : vector<16x32xf32>
    %169 = vector.broadcast %149 : vector<1x32xf32> to vector<16x32xf32>
    %170 = arith.mulf %168, %169 : vector<16x32xf32>
    %171 = vector.broadcast %150 : vector<1x32xf32> to vector<16x32xf32>
    %172 = arith.addf %170, %171 : vector<16x32xf32>
    %c0_58 = arith.constant 0 : index
    %c0_59 = arith.constant 0 : index
    %c0_60 = arith.constant 0 : index
    %173 = vector.load %arg2[%c0_58, %c0_59, %c0_60] : memref<1x7x32xf32, #tpu.memory_space<vmem>>, vector<1x7x32xf32>
    %174 = vector.shape_cast %173 : vector<1x7x32xf32> to vector<7x32xf32>
    %c120 = arith.constant 120 : index
    %c0_61 = arith.constant 0 : index
    %175 = vector.load %arg4[%c120, %c0_61] : memref<592x128xf32, #tpu.memory_space<vmem>>, vector<1x32xf32>
    %176 = vector.broadcast %175 : vector<1x32xf32> to vector<16x32xf32>
    %177 = arith.addf %172, %176 : vector<16x32xf32>
    %c104 = arith.constant 104 : index
    %c0_62 = arith.constant 0 : index
    %178 = vector.load %arg4[%c104, %c0_62] : memref<592x128xf32, #tpu.memory_space<vmem>>, vector<16x32xf32>
    %179 = arith.addf %177, %178 : vector<16x32xf32>
    %c960 = arith.constant 960 : index
    %c0_63 = arith.constant 0 : index
    %180 = vector.load %arg3[%c960, %c0_63] : memref<1792x128xbf16, #tpu.memory_space<vmem>>, vector<32x32xbf16>
    %181 = arith.truncf %174 : vector<7x32xf32> to vector<7x32xbf16>
    %cst_64 = arith.constant dense<0.000000e+00> : vector<7x32xf32>
    %182 = tpu.matmul %181, %180, %cst_64 {dimension_numbers = #tpu.dot_dimension_numbers<[1], [0], [0], [1], [0, 0, 1, 1], [], []>} : vector<7x32xbf16>, vector<32x32xbf16>, vector<7x32xf32> -> vector<7x32xf32>
    %c128 = arith.constant 128 : index
    %c0_65 = arith.constant 0 : index
    %183 = vector.load %arg4[%c128, %c0_65] : memref<592x128xf32, #tpu.memory_space<vmem>>, vector<1x32xf32>
    %184 = vector.broadcast %183 : vector<1x32xf32> to vector<7x32xf32>
    %185 = arith.addf %182, %184 : vector<7x32xf32>
    %c992 = arith.constant 992 : index
    %c0_66 = arith.constant 0 : index
    %186 = vector.load %arg3[%c992, %c0_66] : memref<1792x128xbf16, #tpu.memory_space<vmem>>, vector<32x32xbf16>
    %187 = arith.truncf %174 : vector<7x32xf32> to vector<7x32xbf16>
    %cst_67 = arith.constant dense<0.000000e+00> : vector<7x32xf32>
    %188 = tpu.matmul %187, %186, %cst_67 {dimension_numbers = #tpu.dot_dimension_numbers<[1], [0], [0], [1], [0, 0, 1, 1], [], []>} : vector<7x32xbf16>, vector<32x32xbf16>, vector<7x32xf32> -> vector<7x32xf32>
    %c136 = arith.constant 136 : index
    %c0_68 = arith.constant 0 : index
    %189 = vector.load %arg4[%c136, %c0_68] : memref<592x128xf32, #tpu.memory_space<vmem>>, vector<1x32xf32>
    %190 = vector.broadcast %189 : vector<1x32xf32> to vector<7x32xf32>
    %191 = arith.addf %188, %190 : vector<7x32xf32>
    %c1024 = arith.constant 1024 : index
    %c0_69 = arith.constant 0 : index
    %192 = vector.load %arg3[%c1024, %c0_69] : memref<1792x128xbf16, #tpu.memory_space<vmem>>, vector<32x32xbf16>
    %193 = arith.truncf %174 : vector<7x32xf32> to vector<7x32xbf16>
    %cst_70 = arith.constant dense<0.000000e+00> : vector<7x32xf32>
    %194 = tpu.matmul %193, %192, %cst_70 {dimension_numbers = #tpu.dot_dimension_numbers<[1], [0], [0], [1], [0, 0, 1, 1], [], []>} : vector<7x32xbf16>, vector<32x32xbf16>, vector<7x32xf32> -> vector<7x32xf32>
    %c144 = arith.constant 144 : index
    %c0_71 = arith.constant 0 : index
    %195 = vector.load %arg4[%c144, %c0_71] : memref<592x128xf32, #tpu.memory_space<vmem>>, vector<1x32xf32>
    %196 = vector.broadcast %195 : vector<1x32xf32> to vector<7x32xf32>
    %197 = arith.addf %194, %196 : vector<7x32xf32>
    %198 = arith.truncf %185 : vector<7x32xf32> to vector<7x32xbf16>
    %199 = arith.truncf %191 : vector<7x32xf32> to vector<7x32xbf16>
    %cst_72 = arith.constant dense<0.000000e+00> : vector<7x7xf32>
    %200 = tpu.matmul %198, %199, %cst_72 {dimension_numbers = #tpu.dot_dimension_numbers<[1], [1], [0], [0], [0, 0, 1, 0], [], []>} : vector<7x32xbf16>, vector<7x32xbf16>, vector<7x7xf32> -> vector<7x7xf32>
    %cst_73 = arith.constant 0.176776692 : f32
    %201 = vector.broadcast %cst_73 : f32 to vector<7x7xf32>
    %202 = arith.mulf %200, %201 : vector<7x7xf32>
    %cst_74 = arith.constant dense<0xFF800000> : vector<7xf32>
    %203 = vector.multi_reduction <maximumf>, %202, %cst_74 [1] : vector<7x7xf32> to vector<7xf32>
    %204 = vector.shape_cast %203 : vector<7xf32> to vector<7x1xf32>
    %205 = vector.broadcast %204 : vector<7x1xf32> to vector<7x7xf32>
    %206 = arith.subf %202, %205 : vector<7x7xf32>
    %207 = math.exp %206 : vector<7x7xf32>
    %cst_75 = arith.constant dense<0.000000e+00> : vector<7xf32>
    %208 = vector.multi_reduction <add>, %207, %cst_75 [1] : vector<7x7xf32> to vector<7xf32>
    %209 = vector.shape_cast %208 : vector<7xf32> to vector<7x1xf32>
    %210 = tpu.reciprocal %209 {approx = true} : vector<7x1xf32> -> vector<7x1xf32>
    %211 = vector.broadcast %210 : vector<7x1xf32> to vector<7x7xf32>
    %212 = arith.mulf %207, %211 : vector<7x7xf32>
    %213 = arith.truncf %212 : vector<7x7xf32> to vector<7x7xbf16>
    %214 = arith.truncf %197 : vector<7x32xf32> to vector<7x32xbf16>
    %cst_76 = arith.constant dense<0.000000e+00> : vector<7x32xf32>
    %215 = tpu.matmul %213, %214, %cst_76 {dimension_numbers = #tpu.dot_dimension_numbers<[1], [0], [0], [1], [0, 0, 1, 1], [], []>} : vector<7x7xbf16>, vector<7x32xbf16>, vector<7x32xf32> -> vector<7x32xf32>
    %c1056 = arith.constant 1056 : index
    %c0_77 = arith.constant 0 : index
    %216 = vector.load %arg3[%c1056, %c0_77] : memref<1792x128xbf16, #tpu.memory_space<vmem>>, vector<32x32xbf16>
    %217 = arith.truncf %215 : vector<7x32xf32> to vector<7x32xbf16>
    %cst_78 = arith.constant dense<0.000000e+00> : vector<7x32xf32>
    %218 = tpu.matmul %217, %216, %cst_78 {dimension_numbers = #tpu.dot_dimension_numbers<[1], [0], [0], [1], [0, 0, 1, 1], [], []>} : vector<7x32xbf16>, vector<32x32xbf16>, vector<7x32xf32> -> vector<7x32xf32>
    %c152 = arith.constant 152 : index
    %c0_79 = arith.constant 0 : index
    %219 = vector.load %arg4[%c152, %c0_79] : memref<592x128xf32, #tpu.memory_space<vmem>>, vector<1x32xf32>
    %220 = vector.broadcast %219 : vector<1x32xf32> to vector<7x32xf32>
    %221 = arith.addf %218, %220 : vector<7x32xf32>
    %222 = arith.addf %174, %221 : vector<7x32xf32>
    %c224 = arith.constant 224 : index
    %c0_80 = arith.constant 0 : index
    %223 = vector.load %arg4[%c224, %c0_80] : memref<592x128xf32, #tpu.memory_space<vmem>>, vector<1x32xf32>
    %c232 = arith.constant 232 : index
    %c0_81 = arith.constant 0 : index
    %224 = vector.load %arg4[%c232, %c0_81] : memref<592x128xf32, #tpu.memory_space<vmem>>, vector<1x32xf32>
    %cst_82 = arith.constant dense<0.000000e+00> : vector<7xf32>
    %225 = vector.multi_reduction <add>, %222, %cst_82 [1] : vector<7x32xf32> to vector<7xf32>
    %226 = vector.shape_cast %225 : vector<7xf32> to vector<7x1xf32>
    %cst_83 = arith.constant 3.200000e+01 : f32
    %227 = vector.broadcast %cst_83 : f32 to vector<7x1xf32>
    %228 = arith.divf %226, %227 : vector<7x1xf32>
    %229 = vector.broadcast %228 : vector<7x1xf32> to vector<7x32xf32>
    %230 = arith.subf %222, %229 : vector<7x32xf32>
    %231 = arith.mulf %230, %230 : vector<7x32xf32>
    %cst_84 = arith.constant dense<0.000000e+00> : vector<7xf32>
    %232 = vector.multi_reduction <add>, %231, %cst_84 [1] : vector<7x32xf32> to vector<7xf32>
    %233 = vector.shape_cast %232 : vector<7xf32> to vector<7x1xf32>
    %cst_85 = arith.constant 3.200000e+01 : f32
    %234 = vector.broadcast %cst_85 : f32 to vector<7x1xf32>
    %235 = arith.divf %233, %234 : vector<7x1xf32>
    %236 = vector.broadcast %228 : vector<7x1xf32> to vector<7x32xf32>
    %237 = arith.subf %222, %236 : vector<7x32xf32>
    %cst_86 = arith.constant 9.99999997E-7 : f32
    %238 = vector.broadcast %cst_86 : f32 to vector<7x1xf32>
    %239 = arith.addf %235, %238 : vector<7x1xf32>
    %240 = math.rsqrt %239 : vector<7x1xf32>
    %241 = vector.broadcast %240 : vector<7x1xf32> to vector<7x32xf32>
    %242 = arith.mulf %237, %241 : vector<7x32xf32>
    %243 = vector.broadcast %223 : vector<1x32xf32> to vector<7x32xf32>
    %244 = arith.mulf %242, %243 : vector<7x32xf32>
    %245 = vector.broadcast %224 : vector<1x32xf32> to vector<7x32xf32>
    %246 = arith.addf %244, %245 : vector<7x32xf32>
    %c1088 = arith.constant 1088 : index
    %c0_87 = arith.constant 0 : index
    %247 = vector.load %arg3[%c1088, %c0_87] : memref<1792x128xbf16, #tpu.memory_space<vmem>>, vector<32x32xbf16>
    %248 = arith.truncf %246 : vector<7x32xf32> to vector<7x32xbf16>
    %cst_88 = arith.constant dense<0.000000e+00> : vector<7x32xf32>
    %249 = tpu.matmul %248, %247, %cst_88 {dimension_numbers = #tpu.dot_dimension_numbers<[1], [0], [0], [1], [0, 0, 1, 1], [], []>} : vector<7x32xbf16>, vector<32x32xbf16>, vector<7x32xf32> -> vector<7x32xf32>
    %c160 = arith.constant 160 : index
    %c0_89 = arith.constant 0 : index
    %250 = vector.load %arg4[%c160, %c0_89] : memref<592x128xf32, #tpu.memory_space<vmem>>, vector<1x32xf32>
    %251 = vector.broadcast %250 : vector<1x32xf32> to vector<7x32xf32>
    %252 = arith.addf %249, %251 : vector<7x32xf32>
    %c1120 = arith.constant 1120 : index
    %c0_90 = arith.constant 0 : index
    %253 = vector.load %arg3[%c1120, %c0_90] : memref<1792x128xbf16, #tpu.memory_space<vmem>>, vector<32x32xbf16>
    %254 = arith.truncf %179 : vector<16x32xf32> to vector<16x32xbf16>
    %cst_91 = arith.constant dense<0.000000e+00> : vector<16x32xf32>
    %255 = tpu.matmul %254, %253, %cst_91 {dimension_numbers = #tpu.dot_dimension_numbers<[1], [0], [0], [1], [0, 0, 1, 1], [], []>} : vector<16x32xbf16>, vector<32x32xbf16>, vector<16x32xf32> -> vector<16x32xf32>
    %c168 = arith.constant 168 : index
    %c0_92 = arith.constant 0 : index
    %256 = vector.load %arg4[%c168, %c0_92] : memref<592x128xf32, #tpu.memory_space<vmem>>, vector<1x32xf32>
    %257 = vector.broadcast %256 : vector<1x32xf32> to vector<16x32xf32>
    %258 = arith.addf %255, %257 : vector<16x32xf32>
    %c1152 = arith.constant 1152 : index
    %c0_93 = arith.constant 0 : index
    %259 = vector.load %arg3[%c1152, %c0_93] : memref<1792x128xbf16, #tpu.memory_space<vmem>>, vector<32x32xbf16>
    %260 = arith.truncf %177 : vector<16x32xf32> to vector<16x32xbf16>
    %cst_94 = arith.constant dense<0.000000e+00> : vector<16x32xf32>
    %261 = tpu.matmul %260, %259, %cst_94 {dimension_numbers = #tpu.dot_dimension_numbers<[1], [0], [0], [1], [0, 0, 1, 1], [], []>} : vector<16x32xbf16>, vector<32x32xbf16>, vector<16x32xf32> -> vector<16x32xf32>
    %c176 = arith.constant 176 : index
    %c0_95 = arith.constant 0 : index
    %262 = vector.load %arg4[%c176, %c0_95] : memref<592x128xf32, #tpu.memory_space<vmem>>, vector<1x32xf32>
    %263 = vector.broadcast %262 : vector<1x32xf32> to vector<16x32xf32>
    %264 = arith.addf %261, %263 : vector<16x32xf32>
    %265 = arith.truncf %252 : vector<7x32xf32> to vector<7x32xbf16>
    %266 = arith.truncf %258 : vector<16x32xf32> to vector<16x32xbf16>
    %cst_96 = arith.constant dense<0.000000e+00> : vector<7x16xf32>
    %267 = tpu.matmul %265, %266, %cst_96 {dimension_numbers = #tpu.dot_dimension_numbers<[1], [1], [0], [0], [0, 0, 1, 0], [], []>} : vector<7x32xbf16>, vector<16x32xbf16>, vector<7x16xf32> -> vector<7x16xf32>
    %cst_97 = arith.constant 0.176776692 : f32
    %268 = vector.broadcast %cst_97 : f32 to vector<7x16xf32>
    %269 = arith.mulf %267, %268 : vector<7x16xf32>
    %cst_98 = arith.constant dense<0xFF800000> : vector<7xf32>
    %270 = vector.multi_reduction <maximumf>, %269, %cst_98 [1] : vector<7x16xf32> to vector<7xf32>
    %271 = vector.shape_cast %270 : vector<7xf32> to vector<7x1xf32>
    %272 = vector.broadcast %271 : vector<7x1xf32> to vector<7x16xf32>
    %273 = arith.subf %269, %272 : vector<7x16xf32>
    %274 = math.exp %273 : vector<7x16xf32>
    %cst_99 = arith.constant dense<0.000000e+00> : vector<7xf32>
    %275 = vector.multi_reduction <add>, %274, %cst_99 [1] : vector<7x16xf32> to vector<7xf32>
    %276 = vector.shape_cast %275 : vector<7xf32> to vector<7x1xf32>
    %277 = tpu.reciprocal %276 {approx = true} : vector<7x1xf32> -> vector<7x1xf32>
    %278 = vector.broadcast %277 : vector<7x1xf32> to vector<7x16xf32>
    %279 = arith.mulf %274, %278 : vector<7x16xf32>
    %280 = arith.truncf %279 : vector<7x16xf32> to vector<7x16xbf16>
    %281 = arith.truncf %264 : vector<16x32xf32> to vector<16x32xbf16>
    %cst_100 = arith.constant dense<0.000000e+00> : vector<7x32xf32>
    %282 = tpu.matmul %280, %281, %cst_100 {dimension_numbers = #tpu.dot_dimension_numbers<[1], [0], [0], [1], [0, 0, 1, 1], [], []>} : vector<7x16xbf16>, vector<16x32xbf16>, vector<7x32xf32> -> vector<7x32xf32>
    %c1184 = arith.constant 1184 : index
    %c0_101 = arith.constant 0 : index
    %283 = vector.load %arg3[%c1184, %c0_101] : memref<1792x128xbf16, #tpu.memory_space<vmem>>, vector<32x32xbf16>
    %284 = arith.truncf %282 : vector<7x32xf32> to vector<7x32xbf16>
    %cst_102 = arith.constant dense<0.000000e+00> : vector<7x32xf32>
    %285 = tpu.matmul %284, %283, %cst_102 {dimension_numbers = #tpu.dot_dimension_numbers<[1], [0], [0], [1], [0, 0, 1, 1], [], []>} : vector<7x32xbf16>, vector<32x32xbf16>, vector<7x32xf32> -> vector<7x32xf32>
    %c184 = arith.constant 184 : index
    %c0_103 = arith.constant 0 : index
    %286 = vector.load %arg4[%c184, %c0_103] : memref<592x128xf32, #tpu.memory_space<vmem>>, vector<1x32xf32>
    %287 = vector.broadcast %286 : vector<1x32xf32> to vector<7x32xf32>
    %288 = arith.addf %285, %287 : vector<7x32xf32>
    %289 = arith.addf %246, %288 : vector<7x32xf32>
    %c240 = arith.constant 240 : index
    %c0_104 = arith.constant 0 : index
    %290 = vector.load %arg4[%c240, %c0_104] : memref<592x128xf32, #tpu.memory_space<vmem>>, vector<1x32xf32>
    %c248 = arith.constant 248 : index
    %c0_105 = arith.constant 0 : index
    %291 = vector.load %arg4[%c248, %c0_105] : memref<592x128xf32, #tpu.memory_space<vmem>>, vector<1x32xf32>
    %cst_106 = arith.constant dense<0.000000e+00> : vector<7xf32>
    %292 = vector.multi_reduction <add>, %289, %cst_106 [1] : vector<7x32xf32> to vector<7xf32>
    %293 = vector.shape_cast %292 : vector<7xf32> to vector<7x1xf32>
    %cst_107 = arith.constant 3.200000e+01 : f32
    %294 = vector.broadcast %cst_107 : f32 to vector<7x1xf32>
    %295 = arith.divf %293, %294 : vector<7x1xf32>
    %296 = vector.broadcast %295 : vector<7x1xf32> to vector<7x32xf32>
    %297 = arith.subf %289, %296 : vector<7x32xf32>
    %298 = arith.mulf %297, %297 : vector<7x32xf32>
    %cst_108 = arith.constant dense<0.000000e+00> : vector<7xf32>
    %299 = vector.multi_reduction <add>, %298, %cst_108 [1] : vector<7x32xf32> to vector<7xf32>
    %300 = vector.shape_cast %299 : vector<7xf32> to vector<7x1xf32>
    %cst_109 = arith.constant 3.200000e+01 : f32
    %301 = vector.broadcast %cst_109 : f32 to vector<7x1xf32>
    %302 = arith.divf %300, %301 : vector<7x1xf32>
    %303 = vector.broadcast %295 : vector<7x1xf32> to vector<7x32xf32>
    %304 = arith.subf %289, %303 : vector<7x32xf32>
    %cst_110 = arith.constant 9.99999997E-7 : f32
    %305 = vector.broadcast %cst_110 : f32 to vector<7x1xf32>
    %306 = arith.addf %302, %305 : vector<7x1xf32>
    %307 = math.rsqrt %306 : vector<7x1xf32>
    %308 = vector.broadcast %307 : vector<7x1xf32> to vector<7x32xf32>
    %309 = arith.mulf %304, %308 : vector<7x32xf32>
    %310 = vector.broadcast %290 : vector<1x32xf32> to vector<7x32xf32>
    %311 = arith.mulf %309, %310 : vector<7x32xf32>
    %312 = vector.broadcast %291 : vector<1x32xf32> to vector<7x32xf32>
    %313 = arith.addf %311, %312 : vector<7x32xf32>
    %c1344 = arith.constant 1344 : index
    %c0_111 = arith.constant 0 : index
    %314 = vector.load %arg3[%c1344, %c0_111] : memref<1792x128xbf16, #tpu.memory_space<vmem>>, vector<32x64xbf16>
    %315 = arith.truncf %313 : vector<7x32xf32> to vector<7x32xbf16>
    %cst_112 = arith.constant dense<0.000000e+00> : vector<7x64xf32>
    %316 = tpu.matmul %315, %314, %cst_112 {dimension_numbers = #tpu.dot_dimension_numbers<[1], [0], [0], [1], [0, 0, 1, 1], [], []>} : vector<7x32xbf16>, vector<32x64xbf16>, vector<7x64xf32> -> vector<7x64xf32>
    %c288 = arith.constant 288 : index
    %c0_113 = arith.constant 0 : index
    %317 = vector.load %arg4[%c288, %c0_113] : memref<592x128xf32, #tpu.memory_space<vmem>>, vector<1x64xf32>
    %318 = vector.broadcast %317 : vector<1x64xf32> to vector<7x64xf32>
    %319 = arith.addf %316, %318 : vector<7x64xf32>
    %cst_114 = arith.constant 0.000000e+00 : f32
    %320 = vector.broadcast %cst_114 : f32 to vector<7x64xf32>
    %321 = arith.maximumf %319, %320 : vector<7x64xf32>
    %c1376 = arith.constant 1376 : index
    %c0_115 = arith.constant 0 : index
    %322 = vector.load %arg3[%c1376, %c0_115] : memref<1792x128xbf16, #tpu.memory_space<vmem>>, vector<64x32xbf16>
    %323 = arith.truncf %321 : vector<7x64xf32> to vector<7x64xbf16>
    %cst_116 = arith.constant dense<0.000000e+00> : vector<7x32xf32>
    %324 = tpu.matmul %323, %322, %cst_116 {dimension_numbers = #tpu.dot_dimension_numbers<[1], [0], [0], [1], [0, 0, 1, 1], [], []>} : vector<7x64xbf16>, vector<64x32xbf16>, vector<7x32xf32> -> vector<7x32xf32>
    %325 = arith.addf %313, %324 : vector<7x32xf32>
    %c296 = arith.constant 296 : index
    %c0_117 = arith.constant 0 : index
    %326 = vector.load %arg4[%c296, %c0_117] : memref<592x128xf32, #tpu.memory_space<vmem>>, vector<1x32xf32>
    %327 = vector.broadcast %326 : vector<1x32xf32> to vector<7x32xf32>
    %328 = arith.addf %325, %327 : vector<7x32xf32>
    %c256 = arith.constant 256 : index
    %c0_118 = arith.constant 0 : index
    %329 = vector.load %arg4[%c256, %c0_118] : memref<592x128xf32, #tpu.memory_space<vmem>>, vector<1x32xf32>
    %c264 = arith.constant 264 : index
    %c0_119 = arith.constant 0 : index
    %330 = vector.load %arg4[%c264, %c0_119] : memref<592x128xf32, #tpu.memory_space<vmem>>, vector<1x32xf32>
    %cst_120 = arith.constant dense<0.000000e+00> : vector<7xf32>
    %331 = vector.multi_reduction <add>, %328, %cst_120 [1] : vector<7x32xf32> to vector<7xf32>
    %332 = vector.shape_cast %331 : vector<7xf32> to vector<7x1xf32>
    %cst_121 = arith.constant 3.200000e+01 : f32
    %333 = vector.broadcast %cst_121 : f32 to vector<7x1xf32>
    %334 = arith.divf %332, %333 : vector<7x1xf32>
    %335 = vector.broadcast %334 : vector<7x1xf32> to vector<7x32xf32>
    %336 = arith.subf %328, %335 : vector<7x32xf32>
    %337 = arith.mulf %336, %336 : vector<7x32xf32>
    %cst_122 = arith.constant dense<0.000000e+00> : vector<7xf32>
    %338 = vector.multi_reduction <add>, %337, %cst_122 [1] : vector<7x32xf32> to vector<7xf32>
    %339 = vector.shape_cast %338 : vector<7xf32> to vector<7x1xf32>
    %cst_123 = arith.constant 3.200000e+01 : f32
    %340 = vector.broadcast %cst_123 : f32 to vector<7x1xf32>
    %341 = arith.divf %339, %340 : vector<7x1xf32>
    %342 = vector.broadcast %334 : vector<7x1xf32> to vector<7x32xf32>
    %343 = arith.subf %328, %342 : vector<7x32xf32>
    %cst_124 = arith.constant 9.99999997E-7 : f32
    %344 = vector.broadcast %cst_124 : f32 to vector<7x1xf32>
    %345 = arith.addf %341, %344 : vector<7x1xf32>
    %346 = math.rsqrt %345 : vector<7x1xf32>
    %347 = vector.broadcast %346 : vector<7x1xf32> to vector<7x32xf32>
    %348 = arith.mulf %343, %347 : vector<7x32xf32>
    %349 = vector.broadcast %329 : vector<1x32xf32> to vector<7x32xf32>
    %350 = arith.mulf %348, %349 : vector<7x32xf32>
    %351 = vector.broadcast %330 : vector<1x32xf32> to vector<7x32xf32>
    %352 = arith.addf %350, %351 : vector<7x32xf32>
    %c1216 = arith.constant 1216 : index
    %c0_125 = arith.constant 0 : index
    %353 = vector.load %arg3[%c1216, %c0_125] : memref<1792x128xbf16, #tpu.memory_space<vmem>>, vector<32x32xbf16>
    %354 = arith.truncf %179 : vector<16x32xf32> to vector<16x32xbf16>
    %cst_126 = arith.constant dense<0.000000e+00> : vector<16x32xf32>
    %355 = tpu.matmul %354, %353, %cst_126 {dimension_numbers = #tpu.dot_dimension_numbers<[1], [0], [0], [1], [0, 0, 1, 1], [], []>} : vector<16x32xbf16>, vector<32x32xbf16>, vector<16x32xf32> -> vector<16x32xf32>
    %c192 = arith.constant 192 : index
    %c0_127 = arith.constant 0 : index
    %356 = vector.load %arg4[%c192, %c0_127] : memref<592x128xf32, #tpu.memory_space<vmem>>, vector<1x32xf32>
    %357 = vector.broadcast %356 : vector<1x32xf32> to vector<16x32xf32>
    %358 = arith.addf %355, %357 : vector<16x32xf32>
    %c1248 = arith.constant 1248 : index
    %c0_128 = arith.constant 0 : index
    %359 = vector.load %arg3[%c1248, %c0_128] : memref<1792x128xbf16, #tpu.memory_space<vmem>>, vector<32x32xbf16>
    %360 = arith.truncf %352 : vector<7x32xf32> to vector<7x32xbf16>
    %cst_129 = arith.constant dense<0.000000e+00> : vector<7x32xf32>
    %361 = tpu.matmul %360, %359, %cst_129 {dimension_numbers = #tpu.dot_dimension_numbers<[1], [0], [0], [1], [0, 0, 1, 1], [], []>} : vector<7x32xbf16>, vector<32x32xbf16>, vector<7x32xf32> -> vector<7x32xf32>
    %c200 = arith.constant 200 : index
    %c0_130 = arith.constant 0 : index
    %362 = vector.load %arg4[%c200, %c0_130] : memref<592x128xf32, #tpu.memory_space<vmem>>, vector<1x32xf32>
    %363 = vector.broadcast %362 : vector<1x32xf32> to vector<7x32xf32>
    %364 = arith.addf %361, %363 : vector<7x32xf32>
    %c1280 = arith.constant 1280 : index
    %c0_131 = arith.constant 0 : index
    %365 = vector.load %arg3[%c1280, %c0_131] : memref<1792x128xbf16, #tpu.memory_space<vmem>>, vector<32x32xbf16>
    %366 = arith.truncf %352 : vector<7x32xf32> to vector<7x32xbf16>
    %cst_132 = arith.constant dense<0.000000e+00> : vector<7x32xf32>
    %367 = tpu.matmul %366, %365, %cst_132 {dimension_numbers = #tpu.dot_dimension_numbers<[1], [0], [0], [1], [0, 0, 1, 1], [], []>} : vector<7x32xbf16>, vector<32x32xbf16>, vector<7x32xf32> -> vector<7x32xf32>
    %c208 = arith.constant 208 : index
    %c0_133 = arith.constant 0 : index
    %368 = vector.load %arg4[%c208, %c0_133] : memref<592x128xf32, #tpu.memory_space<vmem>>, vector<1x32xf32>
    %369 = vector.broadcast %368 : vector<1x32xf32> to vector<7x32xf32>
    %370 = arith.addf %367, %369 : vector<7x32xf32>
    %371 = arith.truncf %358 : vector<16x32xf32> to vector<16x32xbf16>
    %372 = arith.truncf %364 : vector<7x32xf32> to vector<7x32xbf16>
    %cst_134 = arith.constant dense<0.000000e+00> : vector<16x7xf32>
    %373 = tpu.matmul %371, %372, %cst_134 {dimension_numbers = #tpu.dot_dimension_numbers<[1], [1], [0], [0], [0, 0, 1, 0], [], []>} : vector<16x32xbf16>, vector<7x32xbf16>, vector<16x7xf32> -> vector<16x7xf32>
    %cst_135 = arith.constant 0.176776692 : f32
    %374 = vector.broadcast %cst_135 : f32 to vector<16x7xf32>
    %375 = arith.mulf %373, %374 : vector<16x7xf32>
    %cst_136 = arith.constant dense<0xFF800000> : vector<16xf32>
    %376 = vector.multi_reduction <maximumf>, %375, %cst_136 [1] : vector<16x7xf32> to vector<16xf32>
    %377 = vector.shape_cast %376 : vector<16xf32> to vector<16x1xf32>
    %378 = vector.broadcast %377 : vector<16x1xf32> to vector<16x7xf32>
    %379 = arith.subf %375, %378 : vector<16x7xf32>
    %380 = math.exp %379 : vector<16x7xf32>
    %cst_137 = arith.constant dense<0.000000e+00> : vector<16xf32>
    %381 = vector.multi_reduction <add>, %380, %cst_137 [1] : vector<16x7xf32> to vector<16xf32>
    %382 = vector.shape_cast %381 : vector<16xf32> to vector<16x1xf32>
    %383 = tpu.reciprocal %382 {approx = true} : vector<16x1xf32> -> vector<16x1xf32>
    %384 = vector.broadcast %383 : vector<16x1xf32> to vector<16x7xf32>
    %385 = arith.mulf %380, %384 : vector<16x7xf32>
    %386 = arith.truncf %385 : vector<16x7xf32> to vector<16x7xbf16>
    %387 = arith.truncf %370 : vector<7x32xf32> to vector<7x32xbf16>
    %cst_138 = arith.constant dense<0.000000e+00> : vector<16x32xf32>
    %388 = tpu.matmul %386, %387, %cst_138 {dimension_numbers = #tpu.dot_dimension_numbers<[1], [0], [0], [1], [0, 0, 1, 1], [], []>} : vector<16x7xbf16>, vector<7x32xbf16>, vector<16x32xf32> -> vector<16x32xf32>
    %c1312 = arith.constant 1312 : index
    %c0_139 = arith.constant 0 : index
    %389 = vector.load %arg3[%c1312, %c0_139] : memref<1792x128xbf16, #tpu.memory_space<vmem>>, vector<32x32xbf16>
    %390 = arith.truncf %388 : vector<16x32xf32> to vector<16x32xbf16>
    %cst_140 = arith.constant dense<0.000000e+00> : vector<16x32xf32>
    %391 = tpu.matmul %390, %389, %cst_140 {dimension_numbers = #tpu.dot_dimension_numbers<[1], [0], [0], [1], [0, 0, 1, 1], [], []>} : vector<16x32xbf16>, vector<32x32xbf16>, vector<16x32xf32> -> vector<16x32xf32>
    %c216 = arith.constant 216 : index
    %c0_141 = arith.constant 0 : index
    %392 = vector.load %arg4[%c216, %c0_141] : memref<592x128xf32, #tpu.memory_space<vmem>>, vector<1x32xf32>
    %393 = vector.broadcast %392 : vector<1x32xf32> to vector<16x32xf32>
    %394 = arith.addf %391, %393 : vector<16x32xf32>
    %395 = arith.addf %177, %394 : vector<16x32xf32>
    %c272 = arith.constant 272 : index
    %c0_142 = arith.constant 0 : index
    %396 = vector.load %arg4[%c272, %c0_142] : memref<592x128xf32, #tpu.memory_space<vmem>>, vector<1x32xf32>
    %c280 = arith.constant 280 : index
    %c0_143 = arith.constant 0 : index
    %397 = vector.load %arg4[%c280, %c0_143] : memref<592x128xf32, #tpu.memory_space<vmem>>, vector<1x32xf32>
    %cst_144 = arith.constant dense<0.000000e+00> : vector<16xf32>
    %398 = vector.multi_reduction <add>, %395, %cst_144 [1] : vector<16x32xf32> to vector<16xf32>
    %399 = vector.shape_cast %398 : vector<16xf32> to vector<16x1xf32>
    %cst_145 = arith.constant 3.200000e+01 : f32
    %400 = vector.broadcast %cst_145 : f32 to vector<16x1xf32>
    %401 = arith.divf %399, %400 : vector<16x1xf32>
    %402 = vector.broadcast %401 : vector<16x1xf32> to vector<16x32xf32>
    %403 = arith.subf %395, %402 : vector<16x32xf32>
    %404 = arith.mulf %403, %403 : vector<16x32xf32>
    %cst_146 = arith.constant dense<0.000000e+00> : vector<16xf32>
    %405 = vector.multi_reduction <add>, %404, %cst_146 [1] : vector<16x32xf32> to vector<16xf32>
    %406 = vector.shape_cast %405 : vector<16xf32> to vector<16x1xf32>
    %cst_147 = arith.constant 3.200000e+01 : f32
    %407 = vector.broadcast %cst_147 : f32 to vector<16x1xf32>
    %408 = arith.divf %406, %407 : vector<16x1xf32>
    %409 = vector.broadcast %401 : vector<16x1xf32> to vector<16x32xf32>
    %410 = arith.subf %395, %409 : vector<16x32xf32>
    %cst_148 = arith.constant 9.99999997E-7 : f32
    %411 = vector.broadcast %cst_148 : f32 to vector<16x1xf32>
    %412 = arith.addf %408, %411 : vector<16x1xf32>
    %413 = math.rsqrt %412 : vector<16x1xf32>
    %414 = vector.broadcast %413 : vector<16x1xf32> to vector<16x32xf32>
    %415 = arith.mulf %410, %414 : vector<16x32xf32>
    %416 = vector.broadcast %396 : vector<1x32xf32> to vector<16x32xf32>
    %417 = arith.mulf %415, %416 : vector<16x32xf32>
    %418 = vector.broadcast %397 : vector<1x32xf32> to vector<16x32xf32>
    %419 = arith.addf %417, %418 : vector<16x32xf32>
    %420 = vector.extract_strided_slice %352 {offsets = [1, 0], sizes = [1, 32], strides = [1, 1]} : vector<7x32xf32> to vector<1x32xf32>
    %c1536 = arith.constant 1536 : index
    %c0_149 = arith.constant 0 : index
    %421 = vector.load %arg3[%c1536, %c0_149] : memref<1792x128xbf16, #tpu.memory_space<vmem>>, vector<32x32xbf16>
    %422 = arith.truncf %420 : vector<1x32xf32> to vector<1x32xbf16>
    %cst_150 = arith.constant dense<0.000000e+00> : vector<1x32xf32>
    %423 = tpu.matmul %422, %421, %cst_150 {dimension_numbers = #tpu.dot_dimension_numbers<[1], [0], [0], [1], [0, 0, 1, 1], [], []>} : vector<1x32xbf16>, vector<32x32xbf16>, vector<1x32xf32> -> vector<1x32xf32>
    %c320 = arith.constant 320 : index
    %c0_151 = arith.constant 0 : index
    %424 = vector.load %arg4[%c320, %c0_151] : memref<592x128xf32, #tpu.memory_space<vmem>>, vector<1x32xf32>
    %425 = arith.addf %423, %424 : vector<1x32xf32>
    %cst_152 = arith.constant 0.000000e+00 : f32
    %426 = vector.broadcast %cst_152 : f32 to vector<1x32xf32>
    %427 = arith.maximumf %425, %426 : vector<1x32xf32>
    %c1568 = arith.constant 1568 : index
    %c0_153 = arith.constant 0 : index
    %428 = vector.load %arg3[%c1568, %c0_153] : memref<1792x128xbf16, #tpu.memory_space<vmem>>, vector<32x128xbf16>
    %429 = arith.truncf %427 : vector<1x32xf32> to vector<1x32xbf16>
    %cst_154 = arith.constant dense<0.000000e+00> : vector<1x128xf32>
    %430 = tpu.matmul %429, %428, %cst_154 {dimension_numbers = #tpu.dot_dimension_numbers<[1], [0], [0], [1], [0, 0, 1, 1], [], []>} : vector<1x32xbf16>, vector<32x128xbf16>, vector<1x128xf32> -> vector<1x128xf32>
    %c328 = arith.constant 328 : index
    %c0_155 = arith.constant 0 : index
    %431 = vector.load %arg4[%c328, %c0_155] : memref<592x128xf32, #tpu.memory_space<vmem>>, vector<1x128xf32>
    %432 = arith.addf %430, %431 : vector<1x128xf32>
    %c1440 = arith.constant 1440 : index
    %c0_156 = arith.constant 0 : index
    %433 = vector.load %arg3[%c1440, %c0_156] : memref<1792x128xbf16, #tpu.memory_space<vmem>>, vector<32x64xbf16>
    %434 = arith.truncf %419 : vector<16x32xf32> to vector<16x32xbf16>
    %cst_157 = arith.constant dense<0.000000e+00> : vector<16x64xf32>
    %435 = tpu.matmul %434, %433, %cst_157 {dimension_numbers = #tpu.dot_dimension_numbers<[1], [0], [0], [1], [0, 0, 1, 1], [], []>} : vector<16x32xbf16>, vector<32x64xbf16>, vector<16x64xf32> -> vector<16x64xf32>
    %c304 = arith.constant 304 : index
    %c0_158 = arith.constant 0 : index
    %436 = vector.load %arg4[%c304, %c0_158] : memref<592x128xf32, #tpu.memory_space<vmem>>, vector<1x64xf32>
    %437 = vector.broadcast %436 : vector<1x64xf32> to vector<16x64xf32>
    %438 = arith.addf %435, %437 : vector<16x64xf32>
    %cst_159 = arith.constant 5.000000e-01 : f32
    %439 = vector.broadcast %cst_159 : f32 to vector<16x64xf32>
    %440 = arith.mulf %439, %438 : vector<16x64xf32>
    %cst_160 = arith.constant 4.471500e-02 : f32
    %441 = vector.broadcast %cst_160 : f32 to vector<16x64xf32>
    %442 = arith.mulf %441, %438 : vector<16x64xf32>
    %443 = arith.mulf %442, %438 : vector<16x64xf32>
    %444 = arith.mulf %443, %438 : vector<16x64xf32>
    %445 = arith.addf %438, %444 : vector<16x64xf32>
    %cst_161 = arith.constant 0.797884583 : f32
    %446 = vector.broadcast %cst_161 : f32 to vector<16x64xf32>
    %447 = arith.mulf %446, %445 : vector<16x64xf32>
    %448 = math.tanh %447 : vector<16x64xf32>
    %cst_162 = arith.constant 1.000000e+00 : f32
    %449 = vector.broadcast %cst_162 : f32 to vector<16x64xf32>
    %450 = arith.addf %449, %448 : vector<16x64xf32>
    %451 = arith.mulf %440, %450 : vector<16x64xf32>
    %c1472 = arith.constant 1472 : index
    %c0_163 = arith.constant 0 : index
    %452 = vector.load %arg3[%c1472, %c0_163] : memref<1792x128xbf16, #tpu.memory_space<vmem>>, vector<64x128xbf16>
    %453 = arith.truncf %451 : vector<16x64xf32> to vector<16x64xbf16>
    %cst_164 = arith.constant dense<0.000000e+00> : vector<16x128xf32>
    %454 = tpu.matmul %453, %452, %cst_164 {dimension_numbers = #tpu.dot_dimension_numbers<[1], [0], [0], [1], [0, 0, 1, 1], [], []>} : vector<16x64xbf16>, vector<64x128xbf16>, vector<16x128xf32> -> vector<16x128xf32>
    %c312 = arith.constant 312 : index
    %c0_165 = arith.constant 0 : index
    %455 = vector.load %arg4[%c312, %c0_165] : memref<592x128xf32, #tpu.memory_space<vmem>>, vector<1x128xf32>
    %456 = vector.broadcast %455 : vector<1x128xf32> to vector<16x128xf32>
    %457 = arith.addf %454, %456 : vector<16x128xf32>
    %cst_166 = arith.constant 5.000000e-01 : f32
    %458 = vector.broadcast %cst_166 : f32 to vector<16x128xf32>
    %459 = arith.mulf %458, %457 : vector<16x128xf32>
    %cst_167 = arith.constant 4.471500e-02 : f32
    %460 = vector.broadcast %cst_167 : f32 to vector<16x128xf32>
    %461 = arith.mulf %460, %457 : vector<16x128xf32>
    %462 = arith.mulf %461, %457 : vector<16x128xf32>
    %463 = arith.mulf %462, %457 : vector<16x128xf32>
    %464 = arith.addf %457, %463 : vector<16x128xf32>
    %cst_168 = arith.constant 0.797884583 : f32
    %465 = vector.broadcast %cst_168 : f32 to vector<16x128xf32>
    %466 = arith.mulf %465, %464 : vector<16x128xf32>
    %467 = math.tanh %466 : vector<16x128xf32>
    %cst_169 = arith.constant 1.000000e+00 : f32
    %468 = vector.broadcast %cst_169 : f32 to vector<16x128xf32>
    %469 = arith.addf %468, %467 : vector<16x128xf32>
    %470 = arith.mulf %459, %469 : vector<16x128xf32>
    %471 = vector.broadcast %432 : vector<1x128xf32> to vector<16x128xf32>
    %472 = arith.mulf %470, %471 : vector<16x128xf32>
    %c1600 = arith.constant 1600 : index
    %c0_170 = arith.constant 0 : index
    %473 = vector.load %arg3[%c1600, %c0_170] : memref<1792x128xbf16, #tpu.memory_space<vmem>>, vector<128x16xbf16>
    %474 = arith.truncf %472 : vector<16x128xf32> to vector<16x128xbf16>
    %cst_171 = arith.constant dense<0.000000e+00> : vector<16x16xf32>
    %475 = tpu.matmul %474, %473, %cst_171 {dimension_numbers = #tpu.dot_dimension_numbers<[1], [0], [0], [1], [0, 0, 1, 1], [], []>} : vector<16x128xbf16>, vector<128x16xbf16>, vector<16x16xf32> -> vector<16x16xf32>
    %c336 = arith.constant 336 : index
    %c0_172 = arith.constant 0 : index
    %476 = vector.load %arg4[%c336, %c0_172] : memref<592x128xf32, #tpu.memory_space<vmem>>, vector<256x16xf32>
    %477 = vector.extract_strided_slice %476 {offsets = [0, 0], sizes = [64, 16], strides = [1, 1]} : vector<256x16xf32> to vector<64x16xf32>
    %478 = vector.extract_strided_slice %475 {offsets = [0, 0], sizes = [1, 16], strides = [1, 1]} : vector<16x16xf32> to vector<1x16xf32>
    %479 = vector.broadcast %478 : vector<1x16xf32> to vector<64x16xf32>
    %480 = arith.mulf %477, %479 : vector<64x16xf32>
    %481 = vector.extract_strided_slice %476 {offsets = [64, 0], sizes = [64, 16], strides = [1, 1]} : vector<256x16xf32> to vector<64x16xf32>
    %482 = vector.extract_strided_slice %475 {offsets = [1, 0], sizes = [1, 16], strides = [1, 1]} : vector<16x16xf32> to vector<1x16xf32>
    %483 = vector.broadcast %482 : vector<1x16xf32> to vector<64x16xf32>
    %484 = arith.mulf %481, %483 : vector<64x16xf32>
    %485 = arith.addf %480, %484 : vector<64x16xf32>
    %486 = vector.extract_strided_slice %476 {offsets = [128, 0], sizes = [64, 16], strides = [1, 1]} : vector<256x16xf32> to vector<64x16xf32>
    %487 = vector.extract_strided_slice %475 {offsets = [2, 0], sizes = [1, 16], strides = [1, 1]} : vector<16x16xf32> to vector<1x16xf32>
    %488 = vector.broadcast %487 : vector<1x16xf32> to vector<64x16xf32>
    %489 = arith.mulf %486, %488 : vector<64x16xf32>
    %490 = arith.addf %485, %489 : vector<64x16xf32>
    %491 = vector.extract_strided_slice %476 {offsets = [192, 0], sizes = [64, 16], strides = [1, 1]} : vector<256x16xf32> to vector<64x16xf32>
    %492 = vector.extract_strided_slice %475 {offsets = [3, 0], sizes = [1, 16], strides = [1, 1]} : vector<16x16xf32> to vector<1x16xf32>
    %493 = vector.broadcast %492 : vector<1x16xf32> to vector<64x16xf32>
    %494 = arith.mulf %491, %493 : vector<64x16xf32>
    %495 = arith.addf %490, %494 : vector<64x16xf32>
    %496 = vector.extract_strided_slice %476 {offsets = [0, 0], sizes = [64, 16], strides = [1, 1]} : vector<256x16xf32> to vector<64x16xf32>
    %497 = vector.extract_strided_slice %475 {offsets = [4, 0], sizes = [1, 16], strides = [1, 1]} : vector<16x16xf32> to vector<1x16xf32>
    %498 = vector.broadcast %497 : vector<1x16xf32> to vector<64x16xf32>
    %499 = arith.mulf %496, %498 : vector<64x16xf32>
    %500 = vector.extract_strided_slice %476 {offsets = [64, 0], sizes = [64, 16], strides = [1, 1]} : vector<256x16xf32> to vector<64x16xf32>
    %501 = vector.extract_strided_slice %475 {offsets = [5, 0], sizes = [1, 16], strides = [1, 1]} : vector<16x16xf32> to vector<1x16xf32>
    %502 = vector.broadcast %501 : vector<1x16xf32> to vector<64x16xf32>
    %503 = arith.mulf %500, %502 : vector<64x16xf32>
    %504 = arith.addf %499, %503 : vector<64x16xf32>
    %505 = vector.extract_strided_slice %476 {offsets = [128, 0], sizes = [64, 16], strides = [1, 1]} : vector<256x16xf32> to vector<64x16xf32>
    %506 = vector.extract_strided_slice %475 {offsets = [6, 0], sizes = [1, 16], strides = [1, 1]} : vector<16x16xf32> to vector<1x16xf32>
    %507 = vector.broadcast %506 : vector<1x16xf32> to vector<64x16xf32>
    %508 = arith.mulf %505, %507 : vector<64x16xf32>
    %509 = arith.addf %504, %508 : vector<64x16xf32>
    %510 = vector.extract_strided_slice %476 {offsets = [192, 0], sizes = [64, 16], strides = [1, 1]} : vector<256x16xf32> to vector<64x16xf32>
    %511 = vector.extract_strided_slice %475 {offsets = [7, 0], sizes = [1, 16], strides = [1, 1]} : vector<16x16xf32> to vector<1x16xf32>
    %512 = vector.broadcast %511 : vector<1x16xf32> to vector<64x16xf32>
    %513 = arith.mulf %510, %512 : vector<64x16xf32>
    %514 = arith.addf %509, %513 : vector<64x16xf32>
    %515 = vector.extract_strided_slice %476 {offsets = [0, 0], sizes = [64, 16], strides = [1, 1]} : vector<256x16xf32> to vector<64x16xf32>
    %516 = vector.extract_strided_slice %475 {offsets = [8, 0], sizes = [1, 16], strides = [1, 1]} : vector<16x16xf32> to vector<1x16xf32>
    %517 = vector.broadcast %516 : vector<1x16xf32> to vector<64x16xf32>
    %518 = arith.mulf %515, %517 : vector<64x16xf32>
    %519 = vector.extract_strided_slice %476 {offsets = [64, 0], sizes = [64, 16], strides = [1, 1]} : vector<256x16xf32> to vector<64x16xf32>
    %520 = vector.extract_strided_slice %475 {offsets = [9, 0], sizes = [1, 16], strides = [1, 1]} : vector<16x16xf32> to vector<1x16xf32>
    %521 = vector.broadcast %520 : vector<1x16xf32> to vector<64x16xf32>
    %522 = arith.mulf %519, %521 : vector<64x16xf32>
    %523 = arith.addf %518, %522 : vector<64x16xf32>
    %524 = vector.extract_strided_slice %476 {offsets = [128, 0], sizes = [64, 16], strides = [1, 1]} : vector<256x16xf32> to vector<64x16xf32>
    %525 = vector.extract_strided_slice %475 {offsets = [10, 0], sizes = [1, 16], strides = [1, 1]} : vector<16x16xf32> to vector<1x16xf32>
    %526 = vector.broadcast %525 : vector<1x16xf32> to vector<64x16xf32>
    %527 = arith.mulf %524, %526 : vector<64x16xf32>
    %528 = arith.addf %523, %527 : vector<64x16xf32>
    %529 = vector.extract_strided_slice %476 {offsets = [192, 0], sizes = [64, 16], strides = [1, 1]} : vector<256x16xf32> to vector<64x16xf32>
    %530 = vector.extract_strided_slice %475 {offsets = [11, 0], sizes = [1, 16], strides = [1, 1]} : vector<16x16xf32> to vector<1x16xf32>
    %531 = vector.broadcast %530 : vector<1x16xf32> to vector<64x16xf32>
    %532 = arith.mulf %529, %531 : vector<64x16xf32>
    %533 = arith.addf %528, %532 : vector<64x16xf32>
    %534 = vector.extract_strided_slice %476 {offsets = [0, 0], sizes = [64, 16], strides = [1, 1]} : vector<256x16xf32> to vector<64x16xf32>
    %535 = vector.extract_strided_slice %475 {offsets = [12, 0], sizes = [1, 16], strides = [1, 1]} : vector<16x16xf32> to vector<1x16xf32>
    %536 = vector.broadcast %535 : vector<1x16xf32> to vector<64x16xf32>
    %537 = arith.mulf %534, %536 : vector<64x16xf32>
    %538 = vector.extract_strided_slice %476 {offsets = [64, 0], sizes = [64, 16], strides = [1, 1]} : vector<256x16xf32> to vector<64x16xf32>
    %539 = vector.extract_strided_slice %475 {offsets = [13, 0], sizes = [1, 16], strides = [1, 1]} : vector<16x16xf32> to vector<1x16xf32>
    %540 = vector.broadcast %539 : vector<1x16xf32> to vector<64x16xf32>
    %541 = arith.mulf %538, %540 : vector<64x16xf32>
    %542 = arith.addf %537, %541 : vector<64x16xf32>
    %543 = vector.extract_strided_slice %476 {offsets = [128, 0], sizes = [64, 16], strides = [1, 1]} : vector<256x16xf32> to vector<64x16xf32>
    %544 = vector.extract_strided_slice %475 {offsets = [14, 0], sizes = [1, 16], strides = [1, 1]} : vector<16x16xf32> to vector<1x16xf32>
    %545 = vector.broadcast %544 : vector<1x16xf32> to vector<64x16xf32>
    %546 = arith.mulf %543, %545 : vector<64x16xf32>
    %547 = arith.addf %542, %546 : vector<64x16xf32>
    %548 = vector.extract_strided_slice %476 {offsets = [192, 0], sizes = [64, 16], strides = [1, 1]} : vector<256x16xf32> to vector<64x16xf32>
    %549 = vector.extract_strided_slice %475 {offsets = [15, 0], sizes = [1, 16], strides = [1, 1]} : vector<16x16xf32> to vector<1x16xf32>
    %550 = vector.broadcast %549 : vector<1x16xf32> to vector<64x16xf32>
    %551 = arith.mulf %548, %550 : vector<64x16xf32>
    %552 = arith.addf %547, %551 : vector<64x16xf32>
    %553 = tpu.concatenate %495, %514, %533, %552 in 1 : vector<64x16xf32>, vector<64x16xf32>, vector<64x16xf32>, vector<64x16xf32> -> vector<64x64xf32>
    %c1728 = arith.constant 1728 : index
    %c0_173 = arith.constant 0 : index
    %554 = vector.load %arg3[%c1728, %c0_173] : memref<1792x128xbf16, #tpu.memory_space<vmem>>, vector<32x64xbf16>
    %555 = arith.truncf %553 : vector<64x64xf32> to vector<64x64xbf16>
    %cst_174 = arith.constant dense<0.000000e+00> : vector<32x64xf32>
    %556 = tpu.matmul %554, %555, %cst_174 {dimension_numbers = #tpu.dot_dimension_numbers<[1], [1], [0], [0], [0, 0, 1, 0], [], []>} : vector<32x64xbf16>, vector<64x64xbf16>, vector<32x64xf32> -> vector<32x64xf32>
    %c1760 = arith.constant 1760 : index
    %c0_175 = arith.constant 0 : index
    %557 = vector.load %arg3[%c1760, %c0_175] : memref<1792x128xbf16, #tpu.memory_space<vmem>>, vector<32x64xbf16>
    %558 = arith.truncf %553 : vector<64x64xf32> to vector<64x64xbf16>
    %cst_176 = arith.constant dense<0.000000e+00> : vector<32x64xf32>
    %559 = tpu.matmul %557, %558, %cst_176 {dimension_numbers = #tpu.dot_dimension_numbers<[1], [1], [0], [0], [0, 0, 1, 0], [], []>} : vector<32x64xbf16>, vector<64x64xbf16>, vector<32x64xf32> -> vector<32x64xf32>
    %560 = tpu.concatenate %556, %559 in 1 : vector<32x64xf32>, vector<32x64xf32> -> vector<32x128xf32>
    %c0_177 = arith.constant 0 : index
    %c0_178 = arith.constant 0 : index
    %c0_179 = arith.constant 0 : index
    %561 = vector.load %arg5[%c0_177, %c0_178, %c0_179] : memref<1x32x128xf32, #tpu.memory_space<vmem>>, vector<1x32x128xf32>
    %562 = vector.shape_cast %561 : vector<1x32x128xf32> to vector<32x128xf32>
    %563 = vector.shape_cast %560 : vector<32x128xf32> to vector<1x32x128xf32>
    tpu.vector_store %arg5[%c0_177, %c0_178, %c0_179], %563 {strides = array<i32>} : memref<1x32x128xf32, #tpu.memory_space<vmem>>, vector<1x32x128xf32>,
    return
  }
  func.func @transform_0(%arg0: i32) -> (i32, i32, i32) {
    %c0_i32 = arith.constant 0 : i32
    %c0_i32_0 = arith.constant 0 : i32
    %c0_i32_1 = arith.constant 0 : i32
    return %arg0, %c0_i32, %c0_i32_0 : i32, i32, i32
  }
  func.func @transform_1(%arg0: i32) -> (i32, i32, i32) {
    %c0_i32 = arith.constant 0 : i32
    %c0_i32_0 = arith.constant 0 : i32
    %c0_i32_1 = arith.constant 0 : i32
    return %arg0, %c0_i32, %c0_i32_0 : i32, i32, i32
  }
  func.func @transform_2(%arg0: i32) -> (i32, i32) {
    %c0_i32 = arith.constant 0 : i32
    %c0_i32_0 = arith.constant 0 : i32
    %c0_i32_1 = arith.constant 0 : i32
    return %c0_i32, %c0_i32_0 : i32, i32
  }
  func.func @transform_3(%arg0: i32) -> (i32, i32) {
    %c0_i32 = arith.constant 0 : i32
    %c0_i32_0 = arith.constant 0 : i32
    %c0_i32_1 = arith.constant 0 : i32
    return %c0_i32, %c0_i32_0 : i32, i32
  }
  func.func @transform_4(%arg0: i32) -> (i32, i32, i32) {
    %c0_i32 = arith.constant 0 : i32
    %c0_i32_0 = arith.constant 0 : i32
    %c0_i32_1 = arith.constant 0 : i32
    return %arg0, %c0_i32, %c0_i32_0 : i32, i32, i32
  }
}

</mosaic_0001>

<bundles_post_ra>
// kernel: tile.23
= control target key start
LH: loop header
LB: loop body
LE: loop exit
PB: predicated region body
PF: predicated region fallthrough
CT: control target
= control target key end

     0   :  { %2 = vsyncpa [#allocation1], 0  ;;  %s44_s6 = smov [#allocation0]   ;;  %s70_s0 = inlined_call_operand.hbm [shape: f32[32], index: 0, kind: input, shape index: {}]   ;;  %s71_s1 = inlined_call_operand.vmem [shape: f32[4,32], index: 1, kind: output, shape index: {}]  }
   0x1   :  { %s9_s7 = sshll.u32 %s44_s6, 4  ;;  %s20_s10 = scalar_lea.hbm %s70_s0, 16  ;;  %s10_s7 = int_to_ptr.vmem [resolvable:$true] %s9_s7 }
   0x2   :  { %p21_p0 = scmp.ne.s32.totalorder %s70_s0, %s20_s10  ;;  %p24_p1 = scmp.lt.u32.totalorder %s20_s10, %s70_s0 }
   0x4   :  { %p26_p2 = pnand %p24_p1, %p21_p0 }
   0x6   :  { %29 = shalt.err (!%p26_p2)
}
   0x7   :  { %s30_s15 = scalar_lea.vmem %s10_s7, 16  ;;  %s34_s16 = scalar_lea.vmem %s10_s7, 32 }
   0x8   :  { %p31_p3 = scmp.ne.s32.totalorder %s10_s7, %s30_s15  ;;  %p35_p4 = scmp.lt.s32.totalorder %s10_s7, %s10_s7 }
   0x9   :  { %p36_p5 = scmp.lt.s32.totalorder %s34_s16, %s30_s15 }
   0xb   :  { %p37_p6 = por %p36_p5, %p35_p4 }
   0xd   :  { %p38_p7 = pnand %p37_p6, %p31_p3 }
   0xf   :  { %41 = shalt.err (!%p38_p7)
}
  0x10   :  { %12 = dma.hbm_to_vmem [thread:$0]  %s70_s0, 16, %s10_s7, [#allocation1]  }
  0x11   :  { %42 = dma.done.wait [#allocation1], 16  }
  0x12   :  { %43 = vsyncadd [#allocation1], 4294967280  ;;  %v16_v0 = vld [vmem:[#allocation0] ss:$0 sm:$0xff] }
  0x13   :  { %17 = vst [vmem:[%s71_s1] sm:$0xf] %v16_v0 }
  0x14   :  { %18 = vsyncpa [#allocation1], 1 }

// kernel: tile.28
= control target key start
LH: loop header
LB: loop body
LE: loop exit
PB: predicated region body
PF: predicated region fallthrough
CT: control target
= control target key end

     0   :  { %vm7_vm0 = vcmask 261120   ;;  %s37_s8 = smov 32   ;;  %s38_s9 = smov 64   ;;  %vm13_vm1 = vcmask 1048320   ;;  %vm19_vm2 = vcmask 785920   ;;  %vm25_vm3 = vcmask 523520   ;;  %s55_s0 = inlined_call_operand.vmem [shape: f32[4,32], index: 0, kind: input, shape index: {}]   ;;  %s56_s1 = inlined_call_operand.vmem [shape: f32[1,128], index: 1, kind: output, shape index: {}]  }
   0x1   :  { %v4_v0 = vld [vmem:[%s55_s0] sm:$0xf]  ;;  %s36_s0 = smov 96  }
   0x2   :  { %5 = vst [vmem:[#allocation1] sm:$0xf] %v4_v0 }
   0x9   :  { %v10_v1 = vld [vmem:[#allocation1 + $0x3] sm:$0x1]   ;;  %v22_v2 = vld [vmem:[#allocation1 + $0x1] sm:$0x1]   ;;  %v6_v3 = vld [vmem:[#allocation1] sm:$0x1]  }
   0xa   :  { %11 = vrot.lane.b32.xlu0 %v10_v1, %s36_s0  ;;  %23 = vrot.lane.b32.xlu1 %v22_v2, %s37_s8  ;;  %v16_v4 = vld [vmem:[#allocation1 + $0x2] sm:$0x1]   ;;  %8 = vst.msk [vmem:[#allocation0] sm:$0x1] %vm7_vm0, %v6_v3  }
   0xe   :  { %17 = vrot.lane.b32.xlu0 %v16_v4, %s38_s9 }
  0x7c   :  { %v12_v5 = vpop.permute.xlu0 %11   ;;  %v24_v6 = vpop.permute.xlu1 %23  }
  0x7d   :  { %14 = vst.msk [vmem:[#allocation0] sm:$0x1] %vm13_vm1, %v12_v5  }
  0x80   :  { %v18_v7 = vpop.permute.xlu0 %17  }
  0x81   :  { %20 = vst.msk [vmem:[#allocation0] sm:$0x1] %vm19_vm2, %v18_v7  }
  0x82   :  { %26 = vst.msk [vmem:[#allocation0] sm:$0x1] %vm25_vm3, %v24_v6  }
  0x89   :  { %v30_v8 = vld [vmem:[#allocation0] sm:$0x1] }
  0x8a   :  { %32 = vst [vmem:[%s56_s1] sm:$0x1] %v30_v8 }

// kernel: tile.27
= control target key start
LH: loop header
LB: loop body
LE: loop exit
PB: predicated region body
PF: predicated region fallthrough
CT: control target
= control target key end

     0   :  { %2 = vsyncpa [#allocation1], 0  ;;  %s47_s6 = smov [#allocation0]   ;;  %s76_s0 = inlined_call_operand.hbm [shape: f32[8], index: 0, kind: input, shape index: {}]   ;;  %s77_s1 = inlined_call_operand.vmem [shape: f32[16,8], index: 1, kind: output, shape index: {}]  }
   0x1   :  { %s9_s7 = sshll.u32 %s47_s6, 4  ;;  %s23_s10 = scalar_lea.hbm %s76_s0, 16  ;;  %s10_s7 = int_to_ptr.vmem [resolvable:$true] %s9_s7 }
   0x2   :  { %p24_p0 = scmp.ne.s32.totalorder %s76_s0, %s23_s10  ;;  %p27_p1 = scmp.lt.u32.totalorder %s23_s10, %s76_s0 }
   0x4   :  { %p29_p2 = pnand %p27_p1, %p24_p0 }
   0x6   :  { %32 = shalt.err (!%p29_p2)
}
   0x7   :  { %s33_s15 = scalar_lea.vmem %s10_s7, 16  ;;  %s37_s16 = scalar_lea.vmem %s10_s7, 32 }
   0x8   :  { %p34_p3 = scmp.ne.s32.totalorder %s10_s7, %s33_s15  ;;  %p38_p4 = scmp.lt.s32.totalorder %s10_s7, %s10_s7 }
   0x9   :  { %p39_p5 = scmp.lt.s32.totalorder %s37_s16, %s33_s15 }
   0xb   :  { %p40_p6 = por %p39_p5, %p38_p4 }
   0xd   :  { %p41_p7 = pnand %p40_p6, %p34_p3 }
   0xf   :  { %44 = shalt.err (!%p41_p7)
}
  0x10   :  { %12 = dma.hbm_to_vmem [thread:$0]  %s76_s0, 16, %s10_s7, [#allocation1]  }
  0x11   :  { %45 = dma.done.wait [#allocation1], 16  }
  0x12   :  { %46 = vsyncadd [#allocation1], 4294967280  ;;  %v16_v0 = vld [vmem:[#allocation0] ss:$0 sm:$0xff] }
  0x13   :  { %17 = vst [vmem:[%s77_s1] sm:$0xff] %v16_v0  ;;  %21 = vst [vmem:[%s77_s1 + $0x8] sm:$0xff] %v16_v0 }
  0x14   :  { %20 = vsyncpa [#allocation1], 1 }

// kernel: tile.29
= control target key start
LH: loop header
LB: loop body
LE: loop exit
PB: predicated region body
PF: predicated region fallthrough
CT: control target
= control target key end

     0   :  { %s131_s10 = smov 120   ;;  %s132_s11 = smov 104   ;;  %vm3_vm0 = vcmask 64512   ;;  %vm9_vm1 = vcmask 1048512   ;;  %vm15_vm2 = vcmask 982912   ;;  %vm21_vm3 = vcmask 917312   ;;  %s207_s0 = inlined_call_operand.vmem [shape: f32[16,8], index: 0, kind: input, shape index: {}]   ;;  %s208_s1 = inlined_call_operand.vmem [shape: f32[1,128], index: 1, kind: output, shape index: {}]  }
   0x1   :  { %v101_v0 = vld [vmem:[%s207_s0 + $0xf] sm:$0x1]   ;;  %v103_v1 = vld [vmem:[%s207_s0 + $0xd] sm:$0x1]   ;;  %v102_v2 = vld [vmem:[%s207_s0 + $0xe] sm:$0x1]  }
   0x2   :  { %7 = vrot.lane.b32.xlu0 %v101_v0, %s131_s10  ;;  %19 = vrot.lane.b32.xlu1 %v103_v1, %s132_s11  ;;  %v104_v3 = vld [vmem:[%s207_s0 + $0xc] sm:$0x1]   ;;  %s133_s16 = smov 112   ;;  %s134_s17 = smov 96   ;;  %v105_v4 = vld [vmem:[%s207_s0 + $0xb] sm:$0x1]  }
   0x3   :  { %v106_v5 = vld [vmem:[%s207_s0 + $0xa] sm:$0x1]   ;;  %v2_v6 = vld [vmem:[%s207_s0] sm:$0x1]   ;;  %s135_s24 = smov 88   ;;  %s136_s25 = smov 80  }
   0x4   :  { %4 = vst.msk [vmem:[#allocation0] sm:$0x1] %vm3_vm0, %v2_v6   ;;  %v107_v7 = vld [vmem:[%s207_s0 + $0x9] sm:$0x1]   ;;  %v108_v8 = vld [vmem:[%s207_s0 + $0x8] sm:$0x1]  }
   0x5   :  { %s137_s30 = smov 72   ;;  %s138_s2 = smov 64   ;;  %v109_v9 = vld [vmem:[%s207_s0 + $0x7] sm:$0x1]   ;;  %v110_v10 = vld [vmem:[%s207_s0 + $0x6] sm:$0x1]  }
   0x6   :  { %13 = vrot.lane.b32.xlu0 %v102_v2, %s133_s16  ;;  %25 = vrot.lane.b32.xlu1 %v104_v3, %s134_s17  ;;  %s139_s7 = smov 56   ;;  %s140_s8 = smov 48   ;;  %v111_v11 = vld [vmem:[%s207_s0 + $0x5] sm:$0x1]   ;;  %v112_v12 = vld [vmem:[%s207_s0 + $0x4] sm:$0x1]  }
   0x7   :  { %s141_s13 = smov 40   ;;  %s142_s14 = smov 32   ;;  %v113_v13 = vld [vmem:[%s207_s0 + $0x3] sm:$0x1]   ;;  %v114_v14 = vld [vmem:[%s207_s0 + $0x2] sm:$0x1]  }
   0x8   :  { %s143_s19 = smov 24   ;;  %s144_s20 = smov 16   ;;  %v115_v15 = vld [vmem:[%s207_s0 + $0x1] sm:$0x1]   ;;  %vm27_vm4 = vcmask 851712   ;;  %vm33_vm5 = vcmask 786112  }
   0x9   :  { %s145_s0 = smov 8   ;;  %vm39_vm6 = vcmask 720512   ;;  %vm45_vm7 = vcmask 654912   ;;  %vm51_vm8 = vcmask 589312   ;;  %vm57_vm9 = vcmask 523712  }
   0xa   :  { %31 = vrot.lane.b32.xlu0 %v105_v4, %s135_s24  ;;  %37 = vrot.lane.b32.xlu1 %v106_v5, %s136_s25  ;;  %vm63_vm10 = vcmask 458112   ;;  %vm69_vm11 = vcmask 392512   ;;  %vm75_vm12 = vcmask 326912   ;;  %vm81_vm13 = vcmask 261312  }
   0xb   :  { %vm87_vm14 = vcmask 195712   ;;  %vm93_vm15 = vcmask 130112  }
   0xe   :  { %43 = vrot.lane.b32.xlu0 %v107_v7, %s137_s30  ;;  %49 = vrot.lane.b32.xlu1 %v108_v8, %s138_s2 }
  0x12   :  { %55 = vrot.lane.b32.xlu0 %v109_v9, %s139_s7  ;;  %61 = vrot.lane.b32.xlu1 %v110_v10, %s140_s8 }
  0x16   :  { %67 = vrot.lane.b32.xlu0 %v111_v11, %s141_s13  ;;  %73 = vrot.lane.b32.xlu1 %v112_v12, %s142_s14 }
  0x1a   :  { %79 = vrot.lane.b32.xlu0 %v113_v13, %s143_s19  ;;  %85 = vrot.lane.b32.xlu1 %v114_v14, %s144_s20 }
  0x1e   :  { %91 = vrot.lane.b32.xlu0 %v115_v15, %s145_s0 }
  0x74   :  { %v8_v16 = vpop.permute.xlu0 %7   ;;  %v20_v17 = vpop.permute.xlu1 %19  }
  0x75   :  { %10 = vst.msk [vmem:[#allocation0] sm:$0x1] %vm9_vm1, %v8_v16  }
  0x78   :  { %v14_v18 = vpop.permute.xlu0 %13   ;;  %v26_v19 = vpop.permute.xlu1 %25  }
  0x79   :  { %16 = vst.msk [vmem:[#allocation0] sm:$0x1] %vm15_vm2, %v14_v18  }
  0x7a   :  { %22 = vst.msk [vmem:[#allocation0] sm:$0x1] %vm21_vm3, %v20_v17  }
  0x7b   :  { %28 = vst.msk [vmem:[#allocation0] sm:$0x1] %vm27_vm4, %v26_v19  }
  0x7c   :  { %v32_v20 = vpop.permute.xlu0 %31   ;;  %v38_v21 = vpop.permute.xlu1 %37  }
  0x7d   :  { %34 = vst.msk [vmem:[#allocation0] sm:$0x1] %vm33_vm5, %v32_v20  }
  0x7e   :  { %40 = vst.msk [vmem:[#allocation0] sm:$0x1] %vm39_vm6, %v38_v21  }
  0x80   :  { %v44_v22 = vpop.permute.xlu0 %43   ;;  %v50_v23 = vpop.permute.xlu1 %49  }
  0x81   :  { %46 = vst.msk [vmem:[#allocation0] sm:$0x1] %vm45_vm7, %v44_v22  }
  0x82   :  { %52 = vst.msk [vmem:[#allocation0] sm:$0x1] %vm51_vm8, %v50_v23  }
  0x84   :  { %v56_v24 = vpop.permute.xlu0 %55   ;;  %v62_v25 = vpop.permute.xlu1 %61  }
  0x85   :  { %58 = vst.msk [vmem:[#allocation0] sm:$0x1] %vm57_vm9, %v56_v24  }
  0x86   :  { %64 = vst.msk [vmem:[#allocation0] sm:$0x1] %vm63_vm10, %v62_v25  }
  0x88   :  { %v68_v26 = vpop.permute.xlu0 %67   ;;  %v74_v27 = vpop.permute.xlu1 %73  }
  0x89   :  { %70 = vst.msk [vmem:[#allocation0] sm:$0x1] %vm69_vm11, %v68_v26  }
  0x8a   :  { %76 = vst.msk [vmem:[#allocation0] sm:$0x1] %vm75_vm12, %v74_v27  }
  0x8c   :  { %v80_v28 = vpop.permute.xlu0 %79   ;;  %v86_v29 = vpop.permute.xlu1 %85  }
  0x8d   :  { %82 = vst.msk [vmem:[#allocation0] sm:$0x1] %vm81_vm13, %v80_v28  }
  0x8e   :  { %88 = vst.msk [vmem:[#allocation0] sm:$0x1] %vm87_vm14, %v86_v29  }
  0x90   :  { %v92_v30 = vpop.permute.xlu0 %91  }
  0x91   :  { %94 = vst.msk [vmem:[#allocation0] sm:$0x1] %vm93_vm15, %v92_v30  }
  0x98   :  { %v98_v31 = vld [vmem:[#allocation0] sm:$0x1] }
  0x99   :  { %100 = vst [vmem:[%s208_s1] sm:$0x1] %v98_v31 }

// kernel: medsam_forward.1
= control target key start
LH: loop header
LB: loop body
LE: loop exit
PB: predicated region body
PF: predicated region fallthrough
CT: control target
= control target key end

     0   :  { %s5022_s15 = smov 0   ;;  %s6339_s0 = inlined_call_operand.vmem [shape: f32[2,16,768], index: 0, kind: input, shape index: {}]   ;;  %s6340_s1 = inlined_call_operand.vmem [shape: f32[2,7,32], index: 1, kind: input, shape index: {}]   ;;  %s6341_s2 = inlined_call_operand.vmem [shape: bf16[1792,128], index: 2, kind: input, shape index: {}]   ;;  %s6342_s3 = inlined_call_operand.vmem [shape: f32[592,128], index: 3, kind: input, shape index: {}]   ;;  %s6343_s4 = inlined_call_operand.vmem [shape: f32[2,32,128], index: 4, kind: output, shape index: {}]  }
   0x1 LB: > { %s4029_s16 = sadd.s32 4294967295, %s4985_s15   ;;  %p4033_p0 = scmp.ge.s32.totalorder %s4985_s15, 1  ;;  %s4985_s15 = sphi %s5022_s15, %s14_s15  }
   0x2   : > { %p171_p1 = scmp.lt.s32.totalorder %s4985_s15, 3 }
   0x4   : > { %p172_p2 = pnand %p4033_p0, %p171_p1 }
   0x6   : > { %175 = sbr.rel (%p172_p2) target bundleno = 9712 (0x25f0), region = 36 }
   0xd   : > { %v4801_v0 = vld [vmem:[%s6341_s2 + $0x40] sm:$0xff]   ;;  %v4805_v4 = vld [vmem:[%s6341_s2 + $0x48] sm:$0xff]   ;;  %v4809_v8 = vld [vmem:[%s6341_s2 + $0x50] sm:$0xff]   ;;  %p201_p3 = scmp.lt.s32.totalorder %s4029_s16, 1  ;;  %vm752_vm0 = vcmask 261120   ;;  %vm4988_vm1 = vmmov 0  }
   0xe   : > { %v4802_v1 = vld [vmem:[%s6341_s2] sm:$0xff]   ;;  %4227 = vmatprep.subr.bf16.mxu0 %v4801_v0  ;;  %v4806_v5 = vld [vmem:[%s6341_s2 + $0x8] sm:$0xff]   ;;  %v4810_v9 = vld [vmem:[%s6341_s2 + $0x10] sm:$0xff]   ;;  %s4989_s12 = smov 96   ;;  %s4990_s13 = smov 80   ;;  %vm866_vm2 = vcmask 130048  }
   0xf   : > { %v4803_v2 = vld [vmem:[%s6341_s2 + $0xc0] sm:$0xff]   ;;  %4228 = vmatpush3.bf16.msra.mxu0 %v4802_v1  ;;  %v4807_v6 = vld [vmem:[%s6341_s2 + $0xc8] sm:$0xff]   ;;  %v4811_v10 = vld [vmem:[%s6341_s2 + $0xd0] sm:$0xff]   ;;  %s6351_s16 = smov (!%p201_p3, %s4029_s16), 1  ;;  %s4991_s14 = smov 112   ;;  %vm1377_vm3 = vcmask 523264  }
  0x10   : > { %v4804_v3 = vld [vmem:[%s6341_s2 + $0x80] sm:$0xff]   ;;  %4249 = vmatprep.subr.bf16.mxu1 %v4803_v2  ;;  %4229 = vmatprep.subr.bf16.mxu0 %v4805_v4  ;;  %v4808_v7 = vld [vmem:[%s6341_s2 + $0x88] sm:$0xff]   ;;  %v4812_v11 = vld [vmem:[%s6341_s2 + $0x90] sm:$0xff]   ;;  %s4722_s19 = smul.u32 96, %s6351_s16  ;;  %s4992_s17 = smov 64   ;;  %vm1780_vm4 = vcmask 55296  }
  0x11   : > { %4250 = vmatpush3.bf16.msra.mxu1 %v4804_v3  ;;  %v4813_v12 = vld [vmem:[%s6341_s2 + $0x58] sm:$0xff]   ;;  %v4817_v16 = vld [vmem:[%s6341_s2 + $0x60] sm:$0xff]   ;;  %v4821_v20 = vld [vmem:[%s6341_s2 + $0x68] sm:$0xff]   ;;  %s4993_s20 = smov 48   ;;  %s4035_s26 = sshll.u32 %s6351_s16, 3  ;;  %vm1798_vm5 = vcmask 1042432  }
  0x12   : > { %4251 = vmatprep.subr.bf16.mxu1 %v4807_v6  ;;  %v4814_v13 = vld [vmem:[%s6341_s2 + $0x18] sm:$0xff]   ;;  %v4818_v17 = vld [vmem:[%s6341_s2 + $0x20] sm:$0xff]   ;;  %v4822_v21 = vld [vmem:[%s6341_s2 + $0x28] sm:$0xff]   ;;  %s5127_s30 = scalar_lea.vmem %s6339_s0, %s4722_s19  ;;  %s209_s29 = scalar_lea.vmem %s6340_s1, %s4035_s26  ;;  %vm1799_vm6 = vcmask 1043456   ;;  %vm1794_vm7 = vcmask 56320   ;;  %vm1913_vm8 = vcmask 260096  }
  0x13   : > { %4230 = vmatpush3.bf16.msra.mxu0 %v4806_v5  ;;  %v4815_v14 = vld [vmem:[%s6341_s2 + $0xd8] sm:$0xff]   ;;  %v4819_v18 = vld [vmem:[%s6341_s2 + $0xe0] sm:$0xff]   ;;  %v4823_v22 = vld [vmem:[%s6341_s2 + $0xe8] sm:$0xff]   ;;  %vm2183_vm9 = vcmask 129024   ;;  %s4995_s9 = smov 16   ;;  %vm3775_vm10 = vcmask 392192  }
  0x14   : > { %4231 = vmatprep.subr.bf16.mxu0 %v4809_v8  ;;  %v4816_v15 = vld [vmem:[%s6341_s2 + $0x98] sm:$0xff]   ;;  %v4820_v19 = vld [vmem:[%s6341_s2 + $0xa0] sm:$0xff]   ;;  %v4824_v23 = vld [vmem:[%s6341_s2 + $0xa8] sm:$0xff]   ;;  %s4226_s21 = sshll.u32 %s6351_s16, 5 }
  0x15   : > { %4252 = vmatpush3.bf16.msra.mxu1 %v4808_v7  ;;  %v4825_v24 = vld [vmem:[%s6341_s2 + $0x70] sm:$0xff]   ;;  %v4829_v28 = vld [vmem:[%s6341_s2 + $0x78] sm:$0xff]   ;;  %v217_v31 = vld [vmem:[%s5127_s30 + $0x8] sm:$0xff]  ;;  %s214_s24 = scalar_lea.vmem %s6343_s4, %s4226_s21 }
  0x16   : > { %4253 = vmatprep.subr.bf16.mxu1 %v4811_v10  ;;  %v4826_v25 = vld [vmem:[%s6341_s2 + $0x30] sm:$0xff]   ;;  %v4830_v29 = vld [vmem:[%s6341_s2 + $0x38] sm:$0xff]   ;;  %v216_v35 = vld [vmem:[%s5127_s30] sm:$0xff] }
  0x17   : > { %4232 = vmatpush3.bf16.msra.mxu0 %v4810_v9  ;;  %v4827_v26 = vld [vmem:[%s6341_s2 + $0xf0] sm:$0xff]   ;;  %v4831_v30 = vld [vmem:[%s6341_s2 + $0xf8] sm:$0xff]   ;;  %v4833_v38 = vld [vmem:[%s6341_s2 + $0x140] sm:$0xff]  }
  0x18   : > { %4233 = vmatprep.subr.bf16.mxu0 %v4813_v12  ;;  %v4828_v27 = vld [vmem:[%s6341_s2 + $0xb0] sm:$0xff]   ;;  %v223_v32 = vld [vmem:[%s5127_s30 + $0x38] sm:$0xff]  ;;  %v225_v40 = vld [vmem:[%s5127_s30 + $0x48] sm:$0xff] }
  0x19   : > { %4254 = vmatpush3.bf16.msra.mxu1 %v4812_v11  ;;  %v325_v33 = vpack.c.bf16 %v223_v32, %v217_v31  ;;  %v4832_v34 = vld [vmem:[%s6341_s2 + $0xb8] sm:$0xff]   ;;  %v222_v36 = vld [vmem:[%s5127_s30 + $0x30] sm:$0xff]  ;;  %v4834_v42 = vld [vmem:[%s6341_s2 + $0x100] sm:$0xff]  }
  0x1a   : > { %4255 = vmatprep.subr.bf16.mxu1 %v4815_v14  ;;  %v324_v37 = vpack.c.bf16 %v222_v36, %v216_v35  ;;  %v219_v39 = vld [vmem:[%s5127_s30 + $0x18] sm:$0xff]  ;;  %v218_v43 = vld [vmem:[%s5127_s30 + $0x10] sm:$0xff]  ;;  %v224_v44 = vld [vmem:[%s5127_s30 + $0x40] sm:$0xff] }
  0x1b   : > { %4234 = vmatpush3.bf16.msra.mxu0 %v4814_v13  ;;  %655 = vmatprep.mubr.bf16.mxu0 %v325_v33  ;;  %v327_v41 = vpack.c.bf16 %v225_v40, %v219_v39  ;;  %v326_v45 = vpack.c.bf16 %v224_v44, %v218_v43  ;;  %v4835_v46 = vld [vmem:[%s6341_s2 + $0x148] sm:$0xff]   ;;  %v4837_v48 = vld [vmem:[%s6341_s2 + $0x150] sm:$0xff]   ;;  %v4839_v50 = vld [vmem:[%s6341_s2 + $0x158] sm:$0xff]   ;;  %v4987_v44 = vmov 0.0  }
  0x1c   : > { %4235 = vmatprep.subr.bf16.mxu0 %v4817_v16  ;;  %v4836_v47 = vld [vmem:[%s6341_s2 + $0x108] sm:$0xff]   ;;  %v4838_v49 = vld [vmem:[%s6341_s2 + $0x110] sm:$0xff]   ;;  %v4840_v51 = vld [vmem:[%s6341_s2 + $0x118] sm:$0xff]  }
  0x1d   : > { %4256 = vmatpush3.bf16.msra.mxu1 %v4816_v15  ;;  %696 = vmatprep.mubr.bf16.mxu1 %v327_v41  ;;  %v4841_v52 = vld [vmem:[%s6341_s2 + $0x160] sm:$0xff]   ;;  %v4843_v54 = vld [vmem:[%s6341_s2 + $0x168] sm:$0xff]   ;;  %v227_v57 = vld [vmem:[%s5127_s30 + $0x58] sm:$0xff] }
  0x1e   : > { %4257 = vmatprep.subr.bf16.mxu1 %v4819_v18  ;;  %v4842_v53 = vld [vmem:[%s6341_s2 + $0x120] sm:$0xff]   ;;  %v221_v55 = vld [vmem:[%s5127_s30 + $0x28] sm:$0xff]  ;;  %v4845_v58 = vld [vmem:[%s6341_s2 + $0x170] sm:$0xff]  }
  0x1f   : > { %4236 = vmatpush3.bf16.msra.mxu0 %v4818_v17  ;;  %v4844_v56 = vld [vmem:[%s6341_s2 + $0x128] sm:$0xff]   ;;  %v329_v59 = vpack.c.bf16 %v227_v57, %v221_v55  ;;  %v4846_v60 = vld [vmem:[%s6341_s2 + $0x130] sm:$0xff]   ;;  %v4847_v61 = vld [vmem:[%s6341_s2 + $0x178] sm:$0xff]  }
  0x20   : > { %4237 = vmatprep.subr.bf16.mxu0 %v4821_v20  ;;  %v4848_v62 = vld [vmem:[%s6341_s2 + $0x138] sm:$0xff]   ;;  %v220_v63 = vld [vmem:[%s5127_s30 + $0x20] sm:$0xff]  ;;  %v226_v0 = vld [vmem:[%s5127_s30 + $0x50] sm:$0xff]  ;;  %s4996_s30 = smov 32  }
  0x21   : > { %4258 = vmatpush3.bf16.msra.mxu1 %v4820_v19  ;;  %v328_v1 = vpack.c.bf16 %v226_v0, %v220_v63  ;;  %v4038_v3 = vld [vmem:[%s6342_s3] ss:$0 sm:$0xff]  ;;  %v4089_v63 = vld [vmem:[%s6342_s3 + $0x28] ss:$0 sm:$0xff] }
  0x22   : > { %4259 = vmatprep.subr.bf16.mxu1 %v4823_v22  ;;  %v4849_v43 = vld [vmem:[%s6341_s2 + $0x180] sm:$0xff]  }
  0x23   : > { %4238 = vmatpush3.bf16.msra.mxu0 %v4822_v21 }
  0x24   : > { %4239 = vmatprep.subr.bf16.mxu0 %v4825_v24  ;;  %v746_v24 = vld [vmem:[%s6342_s3 + $0x8] sm:$0xff] }
  0x25   : > { %4260 = vmatpush3.bf16.msra.mxu1 %v4824_v23 }
  0x26   : > { %4261 = vmatprep.subr.bf16.mxu1 %v4827_v26 }
  0x27   : > { %4240 = vmatpush3.bf16.msra.mxu0 %v4826_v25 }
  0x28   : > { %4241 = vmatprep.subr.bf16.mxu0 %v4829_v28 }
  0x29   : > { %4262 = vmatpush3.bf16.msra.mxu1 %v4828_v27  ;;  %v747_v27 = vld [vmem:[%s6342_s3 + $0x10] sm:$0xff] }
  0x2a   : > { %4263 = vmatprep.subr.bf16.mxu1 %v4831_v30 }
  0x2b   : > { %4242 = vmatpush3.bf16.msra.mxu0 %v4830_v29 }
  0x2c   : > { %4271 = vmatprep.subr.bf16.mxu0 %v4833_v38 }
  0x2d   : > { %4264 = vmatpush3.bf16.msra.mxu1 %v4832_v34 }
  0x2e   : > { %656 = vmatmul.mubr.bf16.vlgmr.msra.gmra.mrb[0].mxu0 %v324_v37  ;;  %4410 = vmatprep.subr.bf16.mxu1 %v4987_v44 }
  0x2f   : > { %4272 = vmatpush3.bf16.msra.mxu0 %v4834_v42  ;;  %737 = vmatprep.mubr.bf16.mxu0 %v329_v59 }
  0x30   : > { %697 = vmatmul.mubr.bf16.vlgmr.msra.gmra.mrb[0].mxu1 %v326_v45  ;;  %4273 = vmatprep.subr.bf16.mxu0 %v4835_v46  ;;  %v4850_v45 = vld [vmem:[%s6341_s2 + $0x188] sm:$0xff]  }
  0x31   : > { %4411 = vmatpush3.bf16.msra.mxu1 %v4849_v43  ;;  %4414 = vmatprep.mubr.msk.bf16.mxu1 %vm4988_vm1, %v4987_v44 }
  0x32   : > { %4412 = vmatprep.subr.bf16.mxu1 %v4987_v44 }
  0x33   : > { %4274 = vmatpush3.bf16.msra.mxu0 %v4836_v47 }
  0x34   : > { %4275 = vmatprep.subr.bf16.mxu0 %v4837_v48 }
  0x35   : > { %4413 = vmatpush3.bf16.msra.mxu1 %v4850_v45 }
  0x36   : > { %4418 = vmatprep.subr.bf16.mxu1 %v4987_v44 }
  0x37   : > { %4276 = vmatpush3.bf16.msra.mxu0 %v4838_v49 }
  0x38   : > { %4277 = vmatprep.subr.bf16.mxu0 %v4839_v50 }
  0x3b   : > { %4278 = vmatpush3.bf16.msra.mxu0 %v4840_v51 }
  0x3c   : > { %4279 = vmatprep.subr.bf16.mxu0 %v4841_v52 }
  0x3f   : > { %4280 = vmatpush3.bf16.msra.mxu0 %v4842_v53 }
  0x40   : > { %4281 = vmatprep.subr.bf16.mxu0 %v4843_v54  ;;  %v4087_v54 = vld [vmem:[%s6342_s3 + $0x18] ss:$0 sm:$0xff] }
  0x43   : > { %4282 = vmatpush3.bf16.msra.mxu0 %v4844_v56 }
  0x44   : > { %4283 = vmatprep.subr.bf16.mxu0 %v4845_v58  ;;  %v4088_v58 = vld [vmem:[%s6342_s3 + $0x20] ss:$0 sm:$0xff] }
  0x47   : > { %4284 = vmatpush3.bf16.msra.mxu0 %v4846_v60 }
  0x48   : > { %4285 = vmatprep.subr.bf16.mxu0 %v4847_v61 }
  0x4b   : > { %4286 = vmatpush3.bf16.msra.mxu0 %v4848_v62 }
  0x4c   : > { %4448 = vmatprep.subr.bf16.mxu0 %v4987_v44 }
  0x4e   : > { %738 = vmatmul.mubr.bf16.vlgmr.msra.gmra.mrb[4].mxu0 %v328_v1 }
  0x4f   : > { %4450 = vmatprep.mubr.msk.bf16.mxu0 %vm4988_vm1, %v4987_v44 }
 0x101   : > { %v4243_v2 = vpop.f32.mrb[0].mxu0 }
 0x102   : > { %v4244_v4 = vpop.f32.mrb[1].mxu0 }
 0x103   : > { %v4245_v5 = vadd.f32 %v4244_v4, %v4243_v2  ;;  %v4246_v6 = vpop.f32.mrb[2].mxu0  ;;  %v4265_v7 = vpop.f32.mrb[0].mxu1 }
 0x104   : > { %v4247_v8 = vpop.f32.mrb[3].mxu0  ;;  %v4266_v11 = vpop.f32.mrb[1].mxu1 }
 0x105   : > { %v658_v9 = vadd.f32 %v4245_v5, %v4038_v3  ;;  %v4248_v10 = vadd.f32 %v4247_v8, %v4246_v6  ;;  %v4267_v12 = vadd.f32 %v4266_v11, %v4265_v7  ;;  %v4268_v13 = vpop.f32.mrb[2].mxu1 }
 0x106   : > { %v4269_v15 = vpop.f32.mrb[3].mxu1 }
 0x107   : > { %v661_v14 = vadd.f32 %v4248_v10, %v4038_v3  ;;  %v699_v16 = vadd.f32 %v4267_v12, %v658_v9  ;;  %v4270_v17 = vadd.f32 %v4269_v15, %v4268_v13 }
 0x109   : > { %v702_v18 = vadd.f32 %v4270_v17, %v661_v14 }
 0x121   : > { %v4287_v19 = vpop.f32.mrb[4].mxu0 }
 0x122   : > { %v4288_v20 = vpop.f32.mrb[5].mxu0 }
 0x123   : > { %v4289_v21 = vadd.f32 %v4288_v20, %v4287_v19  ;;  %v4290_v22 = vpop.f32.mrb[6].mxu0 }
 0x124   : > { %v4291_v23 = vpop.f32.mrb[7].mxu0 }
 0x125   : > { %v740_v25 = vadd.f32 %v4289_v21, %v699_v16  ;;  %v4292_v26 = vadd.f32 %v4291_v23, %v4290_v22 }
 0x127   : > { %v743_v28 = vadd.f32 %v4292_v26, %v702_v18  ;;  %v5207_v29 = vadd.f32 %v746_v24, %v740_v25 }
 0x129   : > { %v5209_v30 = vadd.f32 %v747_v27, %v743_v28  ;;  %v753_v31 = vsel %vm752_vm0, %v5207_v29, 0.0 }
 0x12a   : > { %754 = vadd.xlane.f32.xlu0 %v753_v31 }
 0x12b   : > { %v756_v32 = vsel %vm752_vm0, %v5209_v30, 0.0 }
 0x12e   : > { %757 = vadd.xlane.f32.xlu0 %v756_v32 }
 0x1b7   : > { %v755_v33 = vpop.xlane.xlu0 %754 }
 0x1b8   : > { %v760_v34 = vmul.f32 0.03125, %v755_v33 }
 0x1ba   : > { %v762_v35 = vsub.f32 %v5207_v29, %v760_v34 }
 0x1bb   : > { %v758_v36 = vpop.xlane.xlu0 %757 }
 0x1bc   : > { %v761_v37 = vmul.f32 0.03125, %v758_v36  ;;  %v764_v38 = vmul.f32 %v762_v35, %v762_v35 }
 0x1be   : > { %v763_v39 = vsub.f32 %v5209_v30, %v761_v37  ;;  %v766_v40 = vsel %vm752_vm0, %v764_v38, 0.0 }
 0x1bf   : > { %767 = vadd.xlane.f32.xlu1 %v766_v40  ;;  %v4851_v40 = vld [vmem:[%s6341_s2 + $0x190] sm:$0xff]  }
 0x1c0   : > { %v765_v41 = vmul.f32 %v763_v39, %v763_v39  ;;  %4449 = vmatpush3.bf16.msra.mxu0 %v4851_v40 }
 0x1c1   : > { %4462 = vmatprep.subr.bf16.mxu0 %v4987_v44 }
 0x1c2   : > { %v769_v42 = vsel %vm752_vm0, %v765_v41, 0.0 }
 0x1c3   : > { %770 = vadd.xlane.f32.xlu1 %v769_v42 }
 0x24c   : > { %v768_v46 = vpop.xlane.xlu1 %767 }
 0x24d   : > { %v772_v47 = vmul.f32 0.03125, %v768_v46 }
 0x24f   : > { %v774_v48 = vadd.f32 1e-06, %v772_v47 }
 0x250   : > { %v771_v49 = vpop.xlane.xlu1 %770 }
 0x251   : > { %4913 = vrsqrt.f32 %v774_v48  ;;  %v773_v50 = vmul.f32 0.03125, %v771_v49 }
 0x253   : > { %v775_v51 = vadd.f32 1e-06, %v773_v50 }
 0x255   : > { %4915 = vrsqrt.f32 %v775_v51 }
 0x25b   : > { %v4914_v52 = vpop.eup %4913 }
 0x25c   : > { %v778_v53 = vmul.f32 %v4914_v52, %v762_v35 }
 0x25e   : > { %v784_v56 = vmul.f32 %v4087_v54, %v778_v53 }
 0x25f   : > { %v4916_v55 = vpop.eup %4915 }
 0x260   : > { %v779_v57 = vmul.f32 %v4916_v55, %v763_v39  ;;  %v790_v60 = vadd.f32 %v4088_v58, %v784_v56 }
 0x262   : > { %v785_v59 = vmul.f32 %v4087_v54, %v779_v57 }
 0x264   : > { %v791_v61 = vadd.f32 %v4088_v58, %v785_v59 }
 0x266   : > { %v796_v62 = vpack.c.bf16 %v791_v61, %v790_v60 }
 0x268   : > { %4415 = vmatmul.mubr.msk.bf16.vlgmr.msra.gmra.mrb[4].mxu1 %vm752_vm0, %v796_v62 }
 0x269   : > { %4420 = vmatprep.mubr.msk.bf16.mxu1 %vm4988_vm1, %v4987_v44 }
 0x33b   : > { %v851_v0 = vpop.f32.mrb[4].mxu1 }
 0x33c   : > { %v4416_v1 = vpop.f32.mrb[5].mxu1  ;;  %v852_v3 = vadd.f32 %v4089_v63, %v851_v0 }
 0x33d   : > { %v854_v2 = vpop.f32.mrb[6].mxu1 }
 0x33e   : > { %v855_v4 = vadd.f32 %v4089_v63, %v854_v2  ;;  %v4417_v5 = vpop.f32.mrb[7].mxu1 }
 0x340   : > { %v5245_v6 = vpack.c.bf16 %v855_v4, %v852_v3 }
 0x342   : > { %864 = vrot.lane.b32.xlu0 %v5245_v6, %s4989_s12 }
 0x346   : > { %989 = vrot.lane.b32.xlu0 %v5245_v6, %s4990_s13 }
 0x34a   : > { %987 = vrot.lane.b32.xlu0 %v5245_v6, %s4991_s14 }
 0x3b4   : > { %v865_v7 = vpop.permute.xlu0 %864 }
 0x3b5   : > { %v871_v8 = vsel %vm866_vm2, %v865_v7, 0 }
 0x3b6   : > { %4419 = vmatpush3.bf16.xpose.msra.mxu1 %v871_v8 }
 0x3b7   : > { %4424 = vmatprep.subr.bf16.mxu1 %v4987_v44 }
 0x3b8   : > { %v990_v36 = vpop.permute.xlu0 %989 }
 0x3b9   : > { %v995_v38 = vsel %vm866_vm2, %v990_v36, 0 }
 0x3bc   : > { %v988_v39 = vpop.permute.xlu0 %987 }
 0x3bd   : > { %4421 = vmatmul.mubr.msk.bf16.vlgmr.msra.gmra.mrb[8].mxu1 %vm866_vm2, %v5245_v6 }
 0x3be   : > { %4426 = vmatprep.mubr.msk.bf16.mxu1 %vm4988_vm1, %v4987_v44 }
 0x490   : > { %v907_v9 = vpop.f32.mrb[8].mxu1 }
 0x491   : > { %v914_v10 = vmul.f32 0.25, %v907_v9  ;;  %v4422_v11 = vpop.f32.mrb[9].mxu1 }
 0x492   : > { %v910_v12 = vpop.f32.mrb[10].mxu1 }
 0x493   : > { %v915_v13 = vmul.f32 0.25, %v910_v12  ;;  %v4423_v14 = vpop.f32.mrb[11].mxu1  ;;  %v916_v15 = vsel %vm866_vm2, %v914_v10, -inf }
 0x494   : > { %917 = vmax.xlane.f32.xlu1 %v916_v15 }
 0x495   : > { %v919_v16 = vsel %vm866_vm2, %v915_v13, -inf }
 0x498   : > { %920 = vmax.xlane.f32.xlu1 %v919_v16 }
 0x521   : > { %v918_v17 = vpop.xlane.xlu1 %917 }
 0x522   : > { %v922_v18 = vsub.f32 %v914_v10, %v918_v17 }
 0x524   : > { %v924_v19 = vmul.f32 1.442695, %v922_v18 }
 0x525   : > { %v921_v20 = vpop.xlane.xlu1 %920 }
 0x526   : > { %4917 = vpow2.f32 %v924_v19  ;;  %v923_v21 = vsub.f32 %v915_v13, %v921_v20 }
 0x528   : > { %v926_v22 = vmul.f32 1.442695, %v923_v21 }
 0x52a   : > { %4919 = vpow2.f32 %v926_v22  ;;  %v4101_v22 = vld [vmem:[%s6342_s3 + $0x30] ss:$0 sm:$0xff] }
 0x530   : > { %v4918_v23 = vpop.eup %4917 }
 0x531   : > { %v928_v24 = vsel %vm866_vm2, %v4918_v23, 0.0 }
 0x532   : > { %929 = vadd.xlane.f32.xlu1 %v928_v24 }
 0x534   : > { %v4920_v25 = vpop.eup %4919 }
 0x535   : > { %v931_v26 = vsel %vm866_vm2, %v4920_v25, 0.0 }
 0x536   : > { %932 = vadd.xlane.f32.xlu1 %v931_v26 }
 0x547   : > { %939 = vrot.lane.b32.xlu1 %v5245_v6, %s4992_s17 }
 0x5bf   : > { %v930_v27 = vpop.xlane.xlu1 %929 }
 0x5c0   : > { %4921 = vrcp.f32 %v930_v27 }
 0x5c3   : > { %v933_v28 = vpop.xlane.xlu1 %932 }
 0x5c4   : > { %4923 = vrcp.f32 %v933_v28 }
 0x5c7   : > { %v940_v31 = vpop.permute.xlu1 %939 }
 0x5c8   : > { %4425 = vmatpush3.bf16.msra.mxu1 %v940_v31 }
 0x5c9   : > { %4430 = vmatprep.subr.bf16.mxu1 %v4987_v44 }
 0x5ca   : > { %v4922_v32 = vpop.eup %4921 }
 0x5cb   : > { %v936_v34 = vmul.f32 %v4922_v32, %v4918_v23 }
 0x5ce   : > { %v4924_v33 = vpop.eup %4923 }
 0x5cf   : > { %v937_v35 = vmul.f32 %v4924_v33, %v4920_v25 }
 0x5d1   : > { %v938_v37 = vpack.c.bf16 %v937_v35, %v936_v34 }
 0x5d3   : > { %4427 = vmatmul.mubr.msk.bf16.vlgmr.msra.gmra.mrb[12].mxu1 %vm866_vm2, %v938_v37 }
 0x5d4   : > { %4431 = vmatpush3.bf16.xpose.msra.mxu1 %v995_v38  ;;  %4432 = vmatprep.mubr.msk.bf16.mxu1 %vm4988_vm1, %v4987_v44 }
 0x5d5   : > { %4436 = vmatprep.subr.bf16.mxu1 %v4987_v44 }
 0x5db   : > { %4433 = vmatmul.mubr.msk.bf16.vlgmr.msra.gmra.mrb[16].mxu1 %vm866_vm2, %v988_v39 }
 0x5dc   : > { %4438 = vmatprep.mubr.msk.bf16.mxu1 %vm4988_vm1, %v4987_v44 }
 0x6a6   : > { %v979_v41 = vpop.f32.mrb[12].mxu1 }
 0x6a7   : > { %v4428_v42 = vpop.f32.mrb[13].mxu1 }
 0x6a8   : > { %v982_v43 = vpop.f32.mrb[14].mxu1  ;;  %v4853_v42 = vld [vmem:[%s6341_s2 + $0x1a0] sm:$0xff]  }
 0x6a9   : > { %v986_v45 = vpack.c.bf16 %v982_v43, %v979_v41  ;;  %v4429_v46 = vpop.f32.mrb[15].mxu1  ;;  %v4854_v43 = vld [vmem:[%s6341_s2 + $0x1a8] sm:$0xff]  }
 0x6ab   : > { %4451 = vmatmul.mubr.msk.bf16.vlgmr.msra.gmra.mrb[8].mxu0 %vm866_vm2, %v986_v45 }
 0x6ac   : > { %4470 = vmatprep.mubr.msk.bf16.mxu0 %vm4988_vm1, %v4987_v44 }
 0x6ae   : > { %v1031_v47 = vpop.f32.mrb[16].mxu1 }
 0x6af   : > { %v1038_v48 = vmul.f32 0.25, %v1031_v47  ;;  %v4434_v49 = vpop.f32.mrb[17].mxu1 }
 0x6b0   : > { %v1034_v50 = vpop.f32.mrb[18].mxu1 }
 0x6b1   : > { %v1039_v51 = vmul.f32 0.25, %v1034_v50  ;;  %v4435_v52 = vpop.f32.mrb[19].mxu1  ;;  %v1040_v53 = vsel %vm866_vm2, %v1038_v48, -inf }
 0x6b2   : > { %1041 = vmax.xlane.f32.xlu0 %v1040_v53  ;;  %v4102_v53 = vld [vmem:[%s6342_s3 + $0x38] ss:$0 sm:$0xff] }
 0x6b3   : > { %v1043_v54 = vsel %vm866_vm2, %v1039_v51, -inf }
 0x6b4   : > { %1044 = vmax.xlane.f32.xlu1 %v1043_v54 }
 0x73f   : > { %v1042_v55 = vpop.xlane.xlu0 %1041 }
 0x740   : > { %v1046_v56 = vsub.f32 %v1038_v48, %v1042_v55 }
 0x741   : > { %v1045_v57 = vpop.xlane.xlu1 %1044 }
 0x742   : > { %v1048_v58 = vmul.f32 1.442695, %v1046_v56  ;;  %v1047_v59 = vsub.f32 %v1039_v51, %v1045_v57  ;;  %v4103_v57 = vld [vmem:[%s6342_s3 + $0x40] ss:$0 sm:$0xff] }
 0x744   : > { %4925 = vpow2.f32 %v1048_v58  ;;  %v1050_v60 = vmul.f32 1.442695, %v1047_v59 }
 0x746   : > { %4927 = vpow2.f32 %v1050_v60 }
 0x74e   : > { %v4926_v61 = vpop.eup %4925 }
 0x74f   : > { %v1052_v62 = vsel %vm866_vm2, %v4926_v61, 0.0 }
 0x750   : > { %v4928_v63 = vpop.eup %4927  ;;  %1053 = vadd.xlane.f32.xlu0 %v1052_v62  ;;  %v4855_v62 = vld [vmem:[%s6341_s2 + $0x1b0] sm:$0xff]  }
 0x751   : > { %v1055_v0 = vsel %vm866_vm2, %v4928_v63, 0.0  ;;  %4463 = vmatpush3.bf16.msra.mxu0 %v4855_v62 }
 0x752   : > { %4464 = vmatprep.subr.bf16.mxu0 %v4987_v44 }
 0x754   : > { %1056 = vadd.xlane.f32.xlu0 %v1055_v0  ;;  %v4857_v0 = vld [vmem:[%s6341_s2 + $0x1c0] sm:$0xff]  }
 0x76a   : > { %1063 = vrot.lane.b32.xlu0 %v5245_v6, %s4993_s20  ;;  %v4852_v6 = vld [vmem:[%s6341_s2 + $0x198] sm:$0xff]  }
 0x77e   : > { %v1204_v1 = vpop.f32.mrb[8].mxu0 }
 0x77f   : > { %v4452_v2 = vpop.f32.mrb[9].mxu0 }
 0x780   : > { %v1207_v3 = vpop.f32.mrb[10].mxu0  ;;  %v4104_v2 = vld [vmem:[%s6342_s3 + $0x48] ss:$0 sm:$0xff] }
 0x781   : > { %v4453_v4 = vpop.f32.mrb[11].mxu0 }
 0x7dd   : > { %v1054_v5 = vpop.xlane.xlu0 %1053 }
 0x7de   : > { %4929 = vrcp.f32 %v1054_v5 }
 0x7e1   : > { %v1057_v7 = vpop.xlane.xlu0 %1056 }
 0x7e2   : > { %4931 = vrcp.f32 %v1057_v7 }
 0x7e5   : > { %v1064_v8 = vpop.permute.xlu0 %1063 }
 0x7e6   : > { %4437 = vmatpush3.bf16.msra.mxu1 %v1064_v8 }
 0x7e7   : > { %4442 = vmatprep.subr.bf16.mxu1 %v4987_v44 }
 0x7e8   : > { %v4930_v9 = vpop.eup %4929 }
 0x7e9   : > { %v1060_v11 = vmul.f32 %v4930_v9, %v4926_v61 }
 0x7ec   : > { %v4932_v10 = vpop.eup %4931 }
 0x7ed   : > { %v1061_v12 = vmul.f32 %v4932_v10, %v4928_v63  ;;  %v4856_v63 = vld [vmem:[%s6341_s2 + $0x1b8] sm:$0xff]  }
 0x7ee   : > { %4465 = vmatpush3.bf16.msra.mxu0 %v4856_v63 }
 0x7ef   : > { %v1062_v13 = vpack.c.bf16 %v1061_v12, %v1060_v11  ;;  %4466 = vmatprep.subr.bf16.mxu0 %v4987_v44 }
 0x7f1   : > { %4439 = vmatmul.mubr.msk.bf16.vlgmr.msra.gmra.mrb[20].mxu1 %vm866_vm2, %v1062_v13 }
 0x7f2   : > { %4443 = vmatpush3.bf16.msra.mxu1 %v4852_v6  ;;  %4444 = vmatprep.mubr.msk.bf16.mxu1 %vm4988_vm1, %v4987_v44 }
 0x7f3   : > { %4454 = vmatprep.subr.bf16.mxu1 %v4987_v44  ;;  %4467 = vmatpush3.bf16.msra.mxu0 %v4857_v0 }
 0x7f4   : > { %4468 = vmatprep.subr.bf16.mxu0 %v4987_v44 }
 0x8c4   : > { %v1103_v14 = vpop.f32.mrb[20].mxu1 }
 0x8c5   : > { %v4440_v15 = vpop.f32.mrb[21].mxu1 }
 0x8c6   : > { %v1106_v16 = vpop.f32.mrb[22].mxu1 }
 0x8c7   : > { %v1110_v17 = vpack.c.bf16 %v1106_v16, %v1103_v14  ;;  %v4441_v18 = vpop.f32.mrb[23].mxu1 }
 0x8c9   : > { %4445 = vmatmul.mubr.msk.bf16.vlgmr.msra.gmra.mrb[24].mxu1 %vm866_vm2, %v1110_v17 }
 0x8ca   : > { %4458 = vmatprep.mubr.msk.bf16.mxu1 %vm4988_vm1, %v4987_v44  ;;  %4455 = vmatpush3.bf16.msra.mxu1 %v4853_v42 }
 0x8cb   : > { %4456 = vmatprep.subr.bf16.mxu1 %v4987_v44 }
 0x8ce   : > { %4457 = vmatpush3.bf16.msra.mxu1 %v4854_v43 }
 0x8cf   : > { %4474 = vmatprep.subr.bf16.mxu1 %v4987_v44 }
 0x99c   : > { %v1154_v19 = vpop.f32.mrb[24].mxu1 }
 0x99d   : > { %v1205_v20 = vadd.f32 %v1204_v1, %v1154_v19  ;;  %v4446_v21 = vpop.f32.mrb[25].mxu1  ;;  %v4858_v1 = vld [vmem:[%s6341_s2 + $0x1c8] sm:$0xff]  }
 0x99e   : > { %v1157_v23 = vpop.f32.mrb[26].mxu1  ;;  %4469 = vmatpush3.bf16.msra.mxu0 %v4858_v1 }
 0x99f   : > { %v1211_v24 = vadd.f32 %v1205_v20, %v5207_v29  ;;  %v1208_v25 = vadd.f32 %v1207_v3, %v1157_v23  ;;  %v4447_v26 = vpop.f32.mrb[27].mxu1  ;;  %4490 = vmatprep.subr.bf16.mxu0 %v4987_v44 }
 0x9a1   : > { %v5299_v27 = vadd.f32 %v4101_v22, %v1211_v24  ;;  %v1212_v28 = vadd.f32 %v1208_v25, %v5209_v30 }
 0x9a3   : > { %v5302_v31 = vadd.f32 %v4101_v22, %v1212_v28  ;;  %v1222_v32 = vsel %vm752_vm0, %v5299_v27, 0.0  ;;  %v4859_v28 = vld [vmem:[%s6341_s2 + $0x1f0] sm:$0xff]  }
 0x9a4   : > { %1223 = vadd.xlane.f32.xlu1 %v1222_v32 }
 0x9a5   : > { %v1225_v33 = vsel %vm752_vm0, %v5302_v31, 0.0 }
 0x9a8   : > { %1226 = vadd.xlane.f32.xlu1 %v1225_v33  ;;  %v4860_v33 = vld [vmem:[%s6341_s2 + $0x1d0] sm:$0xff]  }
 0xa31   : > { %v1224_v34 = vpop.xlane.xlu1 %1223 }
 0xa32   : > { %v1228_v35 = vmul.f32 0.03125, %v1224_v34  ;;  %v4861_v34 = vld [vmem:[%s6341_s2 + $0x1f8] sm:$0xff]  }
 0xa34   : > { %v1230_v29 = vsub.f32 %v5299_v27, %v1228_v35  ;;  %v5366_v35 = vld [vmem:[%s209_s29] sm:$0x7f] }
 0xa35   : > { %v1227_v36 = vpop.xlane.xlu1 %1226 }
 0xa36   : > { %v1229_v37 = vmul.f32 0.03125, %v1227_v36  ;;  %v1232_v38 = vmul.f32 %v1230_v29, %v1230_v29  ;;  %v1548_v36 = vpack.c.bf16 %v5366_v35, %v5366_v35 }
 0xa38   : > { %v1231_v39 = vsub.f32 %v5302_v31, %v1229_v37  ;;  %v1234_v30 = vsel %vm752_vm0, %v1232_v38, 0.0 }
 0xa39   : > { %1235 = vadd.xlane.f32.xlu1 %v1234_v30  ;;  %v4113_v30 = vld [vmem:[%s6342_s3 + $0x50] ss:$0 sm:$0xff] }
 0xa3a   : > { %v1233_v40 = vmul.f32 %v1231_v39, %v1231_v39 }
 0xa3c   : > { %v1237_v41 = vsel %vm752_vm0, %v1233_v40, 0.0 }
 0xa3d   : > { %1238 = vadd.xlane.f32.xlu1 %v1237_v41 }
 0xac6   : > { %v1236_v45 = vpop.xlane.xlu1 %1235 }
 0xac7   : > { %v1240_v46 = vmul.f32 0.03125, %v1236_v45 }
 0xac9   : > { %v1242_v47 = vadd.f32 1e-06, %v1240_v46  ;;  %v4863_v46 = vld [vmem:[%s6341_s2 + $0x1e0] sm:$0xff]  }
 0xaca   : > { %v1239_v48 = vpop.xlane.xlu1 %1238 }
 0xacb   : > { %4933 = vrsqrt.f32 %v1242_v47  ;;  %v1241_v49 = vmul.f32 0.03125, %v1239_v48 }
 0xacd   : > { %v1243_v50 = vadd.f32 1e-06, %v1241_v49 }
 0xacf   : > { %4935 = vrsqrt.f32 %v1243_v50 }
 0xad5   : > { %v4934_v51 = vpop.eup %4933 }
 0xad6   : > { %v1246_v52 = vmul.f32 %v4934_v51, %v1230_v29  ;;  %v4862_v29 = vld [vmem:[%s6341_s2 + $0x1d8] sm:$0xff]  }
 0xad8   : > { %v1252_v55 = vmul.f32 %v4102_v53, %v1246_v52 }
 0xad9   : > { %v4936_v54 = vpop.eup %4935 }
 0xada   : > { %v1247_v56 = vmul.f32 %v4936_v54, %v1231_v39  ;;  %v1258_v59 = vadd.f32 %v4103_v57, %v1252_v55 }
 0xadc   : > { %v1253_v58 = vmul.f32 %v4102_v53, %v1247_v56 }
 0xade   : > { %v1259_v60 = vadd.f32 %v4103_v57, %v1253_v58 }
 0xae0   : > { %v1264_v61 = vpack.c.bf16 %v1259_v60, %v1258_v59  ;;  %v4120_v60 = vld [vmem:[%s6342_s3 + $0x80] ss:$0 sm:$0xff] }
 0xae2   : > { %4459 = vmatmul.mubr.msk.bf16.vlgmr.msra.gmra.mrb[28].mxu1 %vm752_vm0, %v1264_v61 }
 0xae3   : > { %4478 = vmatprep.mubr.msk.bf16.mxu1 %vm4988_vm1, %v4987_v44  ;;  %4475 = vmatpush3.bf16.msra.mxu1 %v4860_v33 }
 0xae4   : > { %4476 = vmatprep.subr.bf16.mxu1 %v4987_v44 }
 0xae7   : > { %4477 = vmatpush3.bf16.msra.mxu1 %v4862_v29 }
 0xae8   : > { %4482 = vmatprep.subr.bf16.mxu1 %v4987_v44 }
 0xbb5   : > { %v1319_v3 = vpop.f32.mrb[28].mxu1 }
 0xbb6   : > { %v1320_v4 = vadd.f32 %v4104_v2, %v1319_v3  ;;  %v4460_v5 = vpop.f32.mrb[29].mxu1  ;;  %v4865_v3 = vld [vmem:[%s6341_s2 + $0x200] sm:$0xff]  }
 0xbb7   : > { %v1322_v7 = vpop.f32.mrb[30].mxu1 }
 0xbb8   : > { %v1328_v8 = vmul.f32 0.044715, %v1320_v4  ;;  %v1323_v9 = vadd.f32 %v4104_v2, %v1322_v7  ;;  %v4461_v10 = vpop.f32.mrb[31].mxu1  ;;  %v1326_v22 = vmul.f32 0.5, %v1320_v4 }
 0xbba   : > { %v1330_v11 = vmul.f32 %v1328_v8, %v1320_v4  ;;  %v1329_v12 = vmul.f32 0.044715, %v1323_v9  ;;  %v1327_v23 = vmul.f32 0.5, %v1323_v9 }
 0xbbc   : > { %v1332_v6 = vmul.f32 %v1330_v11, %v1320_v4  ;;  %v1331_v13 = vmul.f32 %v1329_v12, %v1323_v9  ;;  %v4128_v12 = vld [vmem:[%s6342_s3 + $0x90] ss:$0 sm:$0xff] }
 0xbbe   : > { %v1334_v14 = vadd.f32 %v1332_v6, %v1320_v4  ;;  %v1333_v15 = vmul.f32 %v1331_v13, %v1323_v9  ;;  %v4866_v4 = vld [vmem:[%s6341_s2 + $0x208] sm:$0xff]   ;;  %v4994_v6 = vmov 65535  }
 0xbbf   : > { %v1800_v13 = vsel %vm1798_vm5, 4294967295, %v4994_v6 }
 0xbc0   : > { %v1336_v16 = vmul.f32 0.7978846, %v1334_v14  ;;  %v1335_v17 = vadd.f32 %v1333_v15, %v1323_v9 }
 0xbc2   : > { %4937 = vtanh.f32 %v1336_v16  ;;  %v1337_v18 = vmul.f32 0.7978846, %v1335_v17  ;;  %v5429_v17 = vsel %vm1799_vm6, %v1800_v13, 0 }
 0xbc4   : > { %4939 = vtanh.f32 %v1337_v18 }
 0xbcc   : > { %v4938_v19 = vpop.eup %4937 }
 0xbcd   : > { %v1340_v20 = vadd.f32 1.0, %v4938_v19 }
 0xbce   : > { %v4940_v21 = vpop.eup %4939 }
 0xbcf   : > { %v1341_v24 = vadd.f32 1.0, %v4940_v21  ;;  %v1342_v25 = vmul.f32 %v1340_v20, %v1326_v22 }
 0xbd1   : > { %v1343_v26 = vmul.f32 %v1341_v24, %v1327_v23 }
 0xbd3   : > { %v1352_v32 = vpack.c.bf16 %v1343_v26, %v1342_v25 }
 0xbd5   : > { %4471 = vmatmul.mubr.msk.bf16.vlgmr.msra.gmra.mrb[12].mxu0 %vm1377_vm3, %v1352_v32  ;;  %v4867_v32 = vld [vmem:[%s6341_s2 + $0x210] sm:$0xff]  }
 0xbd6   : > { %4491 = vmatpush3.bf16.msra.mxu0 %v4859_v28  ;;  %4494 = vmatprep.mubr.msk.bf16.mxu0 %vm4988_vm1, %v4987_v44 }
 0xbd7   : > { %4492 = vmatprep.subr.bf16.mxu0 %v4987_v44 }
 0xbda   : > { %4493 = vmatpush3.bf16.msra.mxu0 %v4861_v34 }
 0xbdb   : > { %4506 = vmatprep.subr.bf16.mxu0 %v4987_v44 }
 0xbdd   : > { %4495 = vmatmul.mubr.msk.bf16.vlgmr.msra.gmra.mrb[16].mxu0 %vm752_vm0, %v1548_v36 }
 0xbde   : > { %4508 = vmatprep.mubr.msk.bf16.mxu0 %vm4988_vm1, %v4987_v44 }
 0xca8   : > { %v1415_v37 = vpop.f32.mrb[12].mxu0 }
 0xca9   : > { %v1422_v38 = vadd.f32 %v1415_v37, %v5299_v27  ;;  %v4472_v39 = vpop.f32.mrb[13].mxu0  ;;  %v4864_v27 = vld [vmem:[%s6341_s2 + $0x1e8] sm:$0xff]   ;;  %v4868_v37 = vld [vmem:[%s6341_s2 + $0x218] sm:$0xff]  }
 0xcaa   : > { %v1418_v40 = vpop.f32.mrb[14].mxu0 }
 0xcab   : > { %v1423_v41 = vadd.f32 %v1418_v40, %v5302_v31  ;;  %v4473_v42 = vpop.f32.mrb[15].mxu0  ;;  %v1429_v43 = vadd.f32 %v4113_v30, %v1422_v38  ;;  %v4124_v31 = vld [vmem:[%s6342_s3 + $0x88] ss:$0 sm:$0xff] }
 0xcad   : > { %v1430_v45 = vadd.f32 %v4113_v30, %v1423_v41 }
 0xcaf   : > { %v1435_v47 = vpack.c.bf16 %v1430_v45, %v1429_v43 }
 0xcb0   : > { %v1664_v48 = vpop.f32.mrb[16].mxu0 }
 0xcb1   : > { %4479 = vmatmul.mubr.msk.bf16.vlgmr.msra.gmra.mrb[32].mxu1 %vm752_vm0, %v1435_v47  ;;  %v1665_v49 = vadd.f32 %v4124_v31, %v1664_v48  ;;  %v4496_v50 = vpop.f32.mrb[17].mxu0 }
 0xcb2   : > { %4483 = vmatpush3.bf16.msra.mxu1 %v4863_v46  ;;  %4486 = vmatprep.mubr.msk.bf16.mxu1 %vm4988_vm1, %v4987_v44  ;;  %v1667_v51 = vpop.f32.mrb[18].mxu0  ;;  %v4134_v46 = vld [vmem:[%s6342_s3 + $0x98] ss:$0 sm:$0xff] }
 0xcb3   : > { %4484 = vmatprep.subr.bf16.mxu1 %v4987_v44  ;;  %v1732_v52 = vpack.c.bf16 %v1665_v49, %v1665_v49  ;;  %v4497_v53 = vpop.f32.mrb[19].mxu0 }
 0xcb5   : > { %v1737_v54 = vsel %vm752_vm0, %v1732_v52, 0 }
 0xcb6   : > { %4485 = vmatpush3.bf16.msra.mxu1 %v4864_v27  ;;  %4507 = vmatpush3.bf16.xpose.msra.mxu0 %v1737_v54 }
 0xcb7   : > { %4498 = vmatprep.subr.bf16.mxu1 %v4987_v44  ;;  %4518 = vmatprep.subr.bf16.mxu0 %v4987_v44 }
 0xcb9   : > { %4487 = vmatmul.mubr.msk.bf16.vlgmr.msra.gmra.mrb[36].mxu1 %vm752_vm0, %v1548_v36 }
 0xcba   : > { %4502 = vmatprep.mubr.msk.bf16.mxu1 %vm4988_vm1, %v4987_v44  ;;  %4499 = vmatpush3.bf16.msra.mxu1 %v4865_v3 }
 0xcbb   : > { %4500 = vmatprep.subr.bf16.mxu1 %v4987_v44 }
 0xcbe   : > { %4501 = vmatpush3.bf16.msra.mxu1 %v4866_v4 }
 0xcbf   : > { %4512 = vmatprep.subr.bf16.mxu1 %v4987_v44 }
 0xcc1   : > { %4503 = vmatmul.mubr.msk.bf16.vlgmr.msra.gmra.mrb[40].mxu1 %vm752_vm0, %v1548_v36 }
 0xcc2   : > { %4514 = vmatprep.mubr.msk.bf16.mxu1 %vm4988_vm1, %v4987_v44 }
 0xd84   : > { %v5402_v55 = vpop.f32.mrb[32].mxu1 }
 0xd85   : > { %v4480_v56 = vpop.f32.mrb[33].mxu1  ;;  %v1494_v57 = vsel %vm752_vm0, %v5402_v55, 0.0 }
 0xd86   : > { %1495 = vadd.xlane.f32.xlu0 %v1494_v57  ;;  %v5406_v58 = vpop.f32.mrb[34].mxu1 }
 0xd87   : > { %v4481_v59 = vpop.f32.mrb[35].mxu1  ;;  %v1497_v28 = vsel %vm752_vm0, %v5406_v58, 0.0 }
 0xd8c   : > { %v1603_v61 = vpop.f32.mrb[36].mxu1 }
 0xd8d   : > { %v1604_v62 = vadd.f32 %v4120_v60, %v1603_v61  ;;  %v4488_v63 = vpop.f32.mrb[37].mxu1  ;;  %v4869_v60 = vld [vmem:[%s6341_s2 + $0x230] sm:$0xff]  }
 0xd8e   : > { %v1606_v0 = vpop.f32.mrb[38].mxu1 }
 0xd8f   : > { %v1731_v1 = vpack.c.bf16 %v1604_v62, %v1604_v62  ;;  %v4489_v2 = vpop.f32.mrb[39].mxu1 }
 0xd91   : > { %4509 = vmatmul.mubr.msk.bf16.vlgmr.msra.gmra.mrb[20].mxu0 %vm752_vm0, %v1731_v1 }
 0xd92   : > { %4522 = vmatprep.mubr.msk.bf16.mxu0 %vm4988_vm1, %v4987_v44  ;;  %4519 = vmatpush3.bf16.msra.mxu0 %v4867_v32 }
 0xd93   : > { %4520 = vmatprep.subr.bf16.mxu0 %v4987_v44 }
 0xd94   : > { %v1725_v14 = vpop.f32.mrb[40].mxu1 }
 0xd95   : > { %v1726_v15 = vadd.f32 %v4128_v12, %v1725_v14  ;;  %v4504_v16 = vpop.f32.mrb[41].mxu1 }
 0xd96   : > { %v1728_v18 = vpop.f32.mrb[42].mxu1  ;;  %4521 = vmatpush3.bf16.msra.mxu0 %v4868_v37 }
 0xd97   : > { %v1793_v19 = vpack.c.bf16 %v1726_v15, %v1726_v15  ;;  %v4505_v20 = vpop.f32.mrb[43].mxu1  ;;  %4534 = vmatprep.subr.bf16.mxu0 %v4987_v44  ;;  %v4119_v15 = vld [vmem:[%s6342_s3 + $0x78] ss:$0 sm:$0xff] }
 0xd98   : > { %v1540_v20 = vld [vmem:[%s6342_s3 + $0x68] sm:$0xff] }
 0xd99   : > { %v1803_v21 = vand.u32 %v5429_v17, %v1793_v19 }
 0xd9b   : > { %4513 = vmatpush3.bf16.msra.mxu1 %v1803_v21  ;;  %v1541_v21 = vld [vmem:[%s6342_s3 + $0x70] sm:$0xff] }
 0xd9c   : > { %4526 = vmatprep.subr.bf16.mxu1 %v4987_v44 }
 0xe13   : > { %v1496_v42 = vpop.xlane.xlu0 %1495 }
 0xe14   : > { %v1500_v43 = vmul.f32 0.03125, %v1496_v42  ;;  %v4874_v42 = vld [vmem:[%s6341_s2 + $0x248] sm:$0xff]  }
 0xe16   : > { %v1502_v27 = vsub.f32 %v5402_v55, %v1500_v43 }
 0xe18   : > { %v1504_v56 = vmul.f32 %v1502_v27, %v1502_v27 }
 0xe1a   : > { %v1506_v57 = vsel %vm752_vm0, %v1504_v56, 0.0 }
 0xe64   : > { %v1773_v5 = vpop.f32.mrb[20].mxu0 }
 0xe65   : > { %v1779_v7 = vmul.f32 0.17677669, %v1773_v5  ;;  %v4510_v8 = vpop.f32.mrb[21].mxu0 }
 0xe66   : > { %v1776_v9 = vpop.f32.mrb[22].mxu0 }
 0xe67   : > { %v4511_v10 = vpop.f32.mrb[23].mxu0  ;;  %v1781_v11 = vsel %vm1780_vm4, %v1779_v7, -inf  ;;  %v4117_v9 = vld [vmem:[%s6342_s3 + $0x58] ss:$0 sm:$0xff] }
 0xe68   : > { %1782 = vmax.xlane.f32.xlu1 %v1781_v11  ;;  %v4118_v11 = vld [vmem:[%s6342_s3 + $0x60] ss:$0 sm:$0xff] }
 0xef5   : > { %v1783_v22 = vpop.xlane.xlu1 %1782 }
 0xef6   : > { %v1784_v23 = vsub.f32 %v1779_v7, %v1783_v22 }
 0xef8   : > { %v1785_v24 = vmul.f32 1.442695, %v1784_v23 }
 0xefa   : > { %4941 = vpow2.f32 %v1785_v24 }
 0xf04   : > { %v4942_v25 = vpop.eup %4941 }
 0xf05   : > { %v1787_v26 = vsel %vm1780_vm4, %v4942_v25, 0.0 }
 0xf06   : > { %1788 = vadd.xlane.f32.xlu1 %v1787_v26  ;;  %v4871_v26 = vld [vmem:[%s6341_s2 + $0x220] sm:$0xff]  }
 0xf0a   : > { %1498 = vadd.xlane.f32.xlu1 %v1497_v28  ;;  %v4872_v28 = vld [vmem:[%s6341_s2 + $0x228] sm:$0xff]  }
 0xf93   : > { %v1789_v33 = vpop.xlane.xlu1 %1788 }
 0xf94   : > { %4943 = vrcp.f32 %v1789_v33 }
 0xf97   : > { %v1499_v45 = vpop.xlane.xlu1 %1498 }
 0xf98   : > { %v1501_v31 = vmul.f32 0.03125, %v1499_v45  ;;  %v4144_v45 = vld [vmem:[%s6342_s3 + $0xa8] ss:$0 sm:$0xff] }
 0xf9a   : > { %v1503_v53 = vsub.f32 %v5406_v58, %v1501_v31 }
 0xf9c   : > { %v1505_v59 = vmul.f32 %v1503_v53, %v1503_v53 }
 0xf9e   : > { %v4944_v34 = vpop.eup %4943  ;;  %v1509_v55 = vsel %vm752_vm0, %v1505_v59, 0.0 }
 0xf9f   : > { %v1791_v29 = vmul.f32 %v4944_v34, %v4942_v25 }
 0xfa1   : > { %v1792_v36 = vpack.c.bf16 %v1791_v29, %v1791_v29 }
 0xfa3   : > { %4515 = vmatmul.mubr.msk.bf16.vlgmr.msra.gmra.mrb[44].mxu1 %vm1794_vm7, %v1792_v36  ;;  %v4138_v36 = vld [vmem:[%s6342_s3 + $0xe0] ss:$0 sm:$0xff] }
 0xfa4   : > { %4530 = vmatprep.mubr.msk.bf16.mxu1 %vm4988_vm1, %v4987_v44  ;;  %4527 = vmatpush3.bf16.msra.mxu1 %v4871_v26 }
 0xfa5   : > { %4528 = vmatprep.subr.bf16.mxu1 %v4987_v44 }
 0xfa8   : > { %4529 = vmatpush3.bf16.msra.mxu1 %v4872_v28 }
 0xfa9   : > { %4542 = vmatprep.subr.bf16.mxu1 %v4987_v44 }
0x1076   : > { %v1839_v38 = vpop.f32.mrb[44].mxu1 }
0x1077   : > { %v1849_v39 = vpack.c.bf16 %v1839_v38, %v1839_v38  ;;  %v4516_v30 = vpop.f32.mrb[45].mxu1  ;;  %v4139_v38 = vld [vmem:[%s6342_s3 + $0xe8] ss:$0 sm:$0xff] }
0x1078   : > { %v1842_v40 = vpop.f32.mrb[46].mxu1 }
0x1079   : > { %v4517_v41 = vpop.f32.mrb[47].mxu1  ;;  %4523 = vmatmul.mubr.msk.bf16.vlgmr.msra.gmra.mrb[24].mxu0 %vm752_vm0, %v1849_v39  ;;  %v4873_v40 = vld [vmem:[%s6341_s2 + $0x240] sm:$0xff]  }
0x107a   : > { %4538 = vmatprep.mubr.msk.bf16.mxu0 %vm4988_vm1, %v4987_v44  ;;  %4535 = vmatpush3.bf16.msra.mxu0 %v4869_v60  ;;  %v4148_v60 = vld [vmem:[%s6342_s3 + $0xb0] ss:$0 sm:$0xff] }
0x107b   : > { %4536 = vmatprep.subr.bf16.mxu0 %v4987_v44 }
0x114c   : > { %v1904_v47 = vpop.f32.mrb[24].mxu0 }
0x114d   : > { %v1905_v48 = vadd.f32 %v4134_v46, %v1904_v47  ;;  %v4524_v49 = vpop.f32.mrb[25].mxu0 }
0x114e   : > { %v1907_v50 = vpop.f32.mrb[26].mxu0 }
0x114f   : > { %v4525_v51 = vpop.f32.mrb[27].mxu0  ;;  %v1910_v52 = vadd.f32 %v1905_v48, %v5366_v35  ;;  %v4870_v35 = vld [vmem:[%s6341_s2 + $0x238] sm:$0xff]  }
0x1150   : > { %4537 = vmatpush3.bf16.msra.mxu0 %v4870_v35 }
0x1151   : > { %v1914_v54 = vsel %vm1913_vm8, %v1910_v52, 0.0  ;;  %4550 = vmatprep.subr.bf16.mxu0 %v4987_v44 }
0x1152   : > { %1915 = vadd.xlane.f32.xlu1 %v1914_v54 }
0x1156   : > { %1507 = vadd.xlane.f32.xlu1 %v1506_v57 }
0x115a   : > { %1510 = vadd.xlane.f32.xlu1 %v1509_v55 }
0x11df   : > { %v1916_v58 = vpop.xlane.xlu1 %1915 }
0x11e0   : > { %v1917_v61 = vmul.f32 0.03125, %v1916_v58 }
0x11e2   : > { %v1918_v62 = vsub.f32 %v1910_v52, %v1917_v61  ;;  %v4140_v52 = vld [vmem:[%s6342_s3 + $0xa0] ss:$0 sm:$0xff] }
0x11e3   : > { %v1508_v63 = vpop.xlane.xlu1 %1507 }
0x11e4   : > { %v1512_v0 = vmul.f32 0.03125, %v1508_v63  ;;  %v1919_v1 = vmul.f32 %v1918_v62, %v1918_v62 }
0x11e6   : > { %v1514_v2 = vadd.f32 1e-06, %v1512_v0  ;;  %v1920_v3 = vsel %vm1913_vm8, %v1919_v1, 0.0 }
0x11e7   : > { %1921 = vadd.xlane.f32.xlu1 %v1920_v3  ;;  %v1511_v4 = vpop.xlane.xlu1 %1510 }
0x11e8   : > { %4945 = vrsqrt.f32 %v1514_v2  ;;  %v1513_v5 = vmul.f32 0.03125, %v1511_v4 }
0x11ea   : > { %v1515_v7 = vadd.f32 1e-06, %v1513_v5 }
0x11ec   : > { %4947 = vrsqrt.f32 %v1515_v7 }
0x11f2   : > { %v4946_v8 = vpop.eup %4945 }
0x11f3   : > { %v1518_v10 = vmul.f32 %v4946_v8, %v1502_v27 }
0x11f5   : > { %v1524_v12 = vmul.f32 %v4117_v9, %v1518_v10 }
0x11f6   : > { %v4948_v6 = vpop.eup %4947 }
0x11f7   : > { %v1530_v13 = vadd.f32 %v4118_v11, %v1524_v12  ;;  %v1519_v14 = vmul.f32 %v4948_v6, %v1503_v53 }
0x11f9   : > { %v1525_v16 = vmul.f32 %v4117_v9, %v1519_v14  ;;  %v5477_v19 = vadd.f32 %v4119_v15, %v1530_v13  ;;  %v4875_v13 = vld [vmem:[%s6341_s2 + $0x250] sm:$0xff]  }
0x11fb   : > { %v1531_v18 = vadd.f32 %v4118_v11, %v1525_v16  ;;  %v1542_v23 = vadd.f32 %v1540_v20, %v5477_v19  ;;  %v4876_v20 = vld [vmem:[%s6341_s2 + $0x258] sm:$0xff]  }
0x11fd   : > { %v5485_v22 = vadd.f32 %v4119_v15, %v1531_v18 }
0x11ff   : > { %v1543_v24 = vadd.f32 %v1541_v21, %v5485_v22  ;;  %v2072_v43 = vpack.c.bf16 %v5485_v22, %v5477_v19 }
0x1201   : > { %v5489_v25 = vpack.c.bf16 %v1543_v24, %v1542_v23 }
0x1203   : > { %4539 = vmatmul.mubr.msk.bf16.vlgmr.msra.gmra.mrb[28].mxu0 %vm752_vm0, %v5489_v25 }
0x1204   : > { %4552 = vmatprep.mubr.msk.bf16.mxu0 %vm4988_vm1, %v4987_v44 }
0x1274   : > { %v1922_v32 = vpop.xlane.xlu1 %1921 }
0x1275   : > { %v1923_v33 = vmul.f32 0.03125, %v1922_v32  ;;  %v4154_v32 = vld [vmem:[%s6342_s3 + $0xb8] ss:$0 sm:$0xff] }
0x1277   : > { %v1924_v34 = vadd.f32 1e-06, %v1923_v33 }
0x1279   : > { %4949 = vrsqrt.f32 %v1924_v34 }
0x1283   : > { %v4950_v29 = vpop.eup %4949 }
0x1284   : > { %v1926_v37 = vmul.f32 %v4950_v29, %v1918_v62 }
0x1286   : > { %v1931_v39 = vmul.f32 %v4138_v36, %v1926_v37 }
0x1288   : > { %v5509_v30 = vadd.f32 %v4139_v38, %v1931_v39 }
0x128a   : > { %v1941_v41 = vpack.c.bf16 %v5509_v30, %v5509_v30 }
0x128c   : > { %4531 = vmatmul.mubr.msk.bf16.vlgmr.msra.gmra.mrb[48].mxu1 %vm752_vm0, %v1941_v41 }
0x128d   : > { %4543 = vmatpush3.bf16.msra.mxu1 %v4873_v40  ;;  %4546 = vmatprep.mubr.msk.bf16.mxu1 %vm4988_vm1, %v4987_v44 }
0x128e   : > { %4544 = vmatprep.subr.bf16.mxu1 %v4987_v44 }
0x1291   : > { %4545 = vmatpush3.bf16.msra.mxu1 %v4874_v42 }
0x1292   : > { %4556 = vmatprep.subr.bf16.mxu1 %v4987_v44 }
0x1294   : > { %4547 = vmatmul.mubr.msk.bf16.vlgmr.msra.gmra.mrb[52].mxu1 %vm752_vm0, %v2072_v43 }
0x1295   : > { %4558 = vmatprep.mubr.msk.bf16.mxu1 %vm4988_vm1, %v4987_v44 }
0x12d6   : > { %v2061_v46 = vpop.f32.mrb[28].mxu0 }
0x12d7   : > { %v4540_v47 = vpop.f32.mrb[29].mxu0  ;;  %v2062_v31 = vadd.f32 %v4144_v45, %v2061_v46  ;;  %v4877_v46 = vld [vmem:[%s6341_s2 + $0x2a0] sm:$0xff]  }
0x12d8   : > { %v2064_v27 = vpop.f32.mrb[30].mxu0  ;;  %v4878_v47 = vld [vmem:[%s6341_s2 + $0x2a8] sm:$0xff]  }
0x12d9   : > { %v2065_v48 = vadd.f32 %v4144_v45, %v2064_v27  ;;  %v4541_v49 = vpop.f32.mrb[31].mxu0  ;;  %v4882_v27 = vld [vmem:[%s6341_s2 + $0x2b8] sm:$0xff]  }
0x12db   : > { %v2135_v50 = vpack.c.bf16 %v2065_v48, %v2062_v31 }
0x12dd   : > { %v2140_v51 = vsel %vm752_vm0, %v2135_v50, 0 }
0x12de   : > { %4551 = vmatpush3.bf16.xpose.msra.mxu0 %v2140_v51  ;;  %v4158_v51 = vld [vmem:[%s6342_s3 + $0xf0] ss:$0 sm:$0xff] }
0x12df   : > { %4562 = vmatprep.subr.bf16.mxu0 %v4987_v44 }
0x135f   : > { %v1996_v53 = vpop.f32.mrb[48].mxu1 }
0x1360   : > { %v1997_v54 = vadd.f32 %v4140_v52, %v1996_v53  ;;  %v4532_v56 = vpop.f32.mrb[49].mxu1  ;;  %v4159_v53 = vld [vmem:[%s6342_s3 + $0xf8] ss:$0 sm:$0xff] }
0x1361   : > { %v1999_v57 = vpop.f32.mrb[50].mxu1 }
0x1362   : > { %v2134_v59 = vpack.c.bf16 %v1997_v54, %v1997_v54  ;;  %v4533_v55 = vpop.f32.mrb[51].mxu1  ;;  %v4879_v57 = vld [vmem:[%s6341_s2 + $0x260] sm:$0xff]  }
0x1363   : > { %v4880_v55 = vld [vmem:[%s6341_s2 + $0x268] sm:$0xff]  }
0x1364   : > { %4553 = vmatmul.mubr.msk.bf16.vlgmr.msra.gmra.mrb[32].mxu0 %vm752_vm0, %v2134_v59 }
0x1365   : > { %4566 = vmatprep.mubr.msk.bf16.mxu0 %vm4988_vm1, %v4987_v44  ;;  %4563 = vmatpush3.bf16.msra.mxu0 %v4875_v13 }
0x1366   : > { %4564 = vmatprep.subr.bf16.mxu0 %v4987_v44 }
0x1367   : > { %v2127_v35 = vpop.f32.mrb[52].mxu1 }
0x1368   : > { %v4548_v58 = vpop.f32.mrb[53].mxu1  ;;  %v2128_v62 = vadd.f32 %v4148_v60, %v2127_v35  ;;  %v4884_v35 = vld [vmem:[%s6341_s2 + $0x2c8] sm:$0xff]  }
0x1369   : > { %v2130_v61 = vpop.f32.mrb[54].mxu1  ;;  %4565 = vmatpush3.bf16.msra.mxu0 %v4876_v20 }
0x136a   : > { %v2131_v63 = vadd.f32 %v4148_v60, %v2130_v61  ;;  %v4549_v0 = vpop.f32.mrb[55].mxu1  ;;  %4578 = vmatprep.subr.bf16.mxu0 %v4987_v44  ;;  %v4883_v60 = vld [vmem:[%s6341_s2 + $0x2c0] sm:$0xff]  }
0x136c   : > { %v2196_v1 = vpack.c.bf16 %v2131_v63, %v2128_v62 }
0x136e   : > { %4557 = vmatpush3.bf16.msra.mxu1 %v2196_v1 }
0x136f   : > { %4570 = vmatprep.subr.bf16.mxu1 %v4987_v44 }
0x1437   : > { %v2176_v2 = vpop.f32.mrb[32].mxu0 }
0x1438   : > { %v2182_v3 = vmul.f32 0.17677669, %v2176_v2  ;;  %v4554_v4 = vpop.f32.mrb[33].mxu0 }
0x1439   : > { %v2179_v5 = vpop.f32.mrb[34].mxu0 }
0x143a   : > { %v4555_v7 = vpop.f32.mrb[35].mxu0  ;;  %v2184_v8 = vsel %vm2183_vm9, %v2182_v3, -inf }
0x143b   : > { %2185 = vmax.xlane.f32.xlu1 %v2184_v8 }
0x14c8   : > { %v2186_v9 = vpop.xlane.xlu1 %2185 }
0x14c9   : > { %v2187_v10 = vsub.f32 %v2182_v3, %v2186_v9  ;;  %v4172_v3 = vld [vmem:[%s6342_s3 + $0xc0] ss:$0 sm:$0xff] }
0x14cb   : > { %v2188_v11 = vmul.f32 1.442695, %v2187_v10 }
0x14cd   : > { %4951 = vpow2.f32 %v2188_v11 }
0x14d7   : > { %v4952_v12 = vpop.eup %4951 }
0x14d8   : > { %v2190_v6 = vsel %vm2183_vm9, %v4952_v12, 0.0 }
0x14d9   : > { %2191 = vadd.xlane.f32.xlu1 %v2190_v6  ;;  %v4169_v6 = vld [vmem:[%s6342_s3 + $0x128] ss:$0 sm:$0xff] }
0x1566   : > { %v2192_v14 = vpop.xlane.xlu1 %2191 }
0x1567   : > { %4953 = vrcp.f32 %v2192_v14 }
0x1571   : > { %v4954_v15 = vpop.eup %4953 }
0x1572   : > { %v2194_v16 = vmul.f32 %v4954_v15, %v4952_v12 }
0x1574   : > { %v2195_v18 = vpack.c.bf16 %v2194_v16, %v2194_v16 }
0x1576   : > { %4559 = vmatmul.mubr.msk.bf16.vlgmr.msra.gmra.mrb[56].mxu1 %vm866_vm2, %v2195_v18 }
0x1577   : > { %4574 = vmatprep.mubr.msk.bf16.mxu1 %vm4988_vm1, %v4987_v44  ;;  %4571 = vmatpush3.bf16.msra.mxu1 %v4877_v46 }
0x1578   : > { %4572 = vmatprep.subr.bf16.mxu1 %v4987_v44 }
0x157b   : > { %4573 = vmatpush3.bf16.msra.mxu1 %v4878_v47  ;;  %v4176_v47 = vld [vmem:[%s6342_s3 + $0xc8] ss:$0 sm:$0xff] }
0x157c   : > { %4590 = vmatprep.subr.bf16.mxu1 %v4987_v44 }
0x1649   : > { %v2234_v21 = vpop.f32.mrb[56].mxu1 }
0x164a   : > { %v2244_v23 = vpack.c.bf16 %v2234_v21, %v2234_v21  ;;  %v4560_v24 = vpop.f32.mrb[57].mxu1 }
0x164b   : > { %v2237_v26 = vpop.f32.mrb[58].mxu1 }
0x164c   : > { %v4561_v28 = vpop.f32.mrb[59].mxu1  ;;  %4567 = vmatmul.mubr.msk.bf16.vlgmr.msra.gmra.mrb[36].mxu0 %vm752_vm0, %v2244_v23 }
0x164d   : > { %4586 = vmatprep.mubr.msk.bf16.mxu0 %vm4988_vm1, %v4987_v44 }
0x171f   : > { %v2299_v33 = vpop.f32.mrb[36].mxu0 }
0x1720   : > { %v2300_v34 = vadd.f32 %v4154_v32, %v2299_v33  ;;  %v4568_v29 = vpop.f32.mrb[37].mxu0  ;;  %v4885_v32 = vld [vmem:[%s6341_s2 + $0x270] sm:$0xff]   ;;  %v4886_v33 = vld [vmem:[%s6341_s2 + $0x280] sm:$0xff]  }
0x1721   : > { %v2302_v36 = vpop.f32.mrb[38].mxu0  ;;  %v4888_v29 = vld [vmem:[%s6341_s2 + $0x288] sm:$0xff]  }
0x1722   : > { %v4569_v37 = vpop.f32.mrb[39].mxu0  ;;  %v2305_v38 = vadd.f32 %v2300_v34, %v5509_v30  ;;  %v4881_v30 = vld [vmem:[%s6341_s2 + $0x2b0] sm:$0xff]   ;;  %v4887_v34 = vld [vmem:[%s6341_s2 + $0x278] sm:$0xff]  }
0x1723   : > { %4579 = vmatpush3.bf16.msra.mxu0 %v4881_v30  ;;  %v4180_v30 = vld [vmem:[%s6342_s3 + $0xd0] ss:$0 sm:$0xff] }
0x1724   : > { %v2308_v39 = vsel %vm1913_vm8, %v2305_v38, 0.0  ;;  %4580 = vmatprep.subr.bf16.mxu0 %v4987_v44 }
0x1725   : > { %2309 = vadd.xlane.f32.xlu1 %v2308_v39 }
0x1727   : > { %4581 = vmatpush3.bf16.msra.mxu0 %v4882_v27 }
0x1728   : > { %4582 = vmatprep.subr.bf16.mxu0 %v4987_v44 }
0x172b   : > { %4583 = vmatpush3.bf16.msra.mxu0 %v4883_v60 }
0x172c   : > { %4584 = vmatprep.subr.bf16.mxu0 %v4987_v44 }
0x172f   : > { %4585 = vmatpush3.bf16.msra.mxu0 %v4884_v35 }
0x1730   : > { %4606 = vmatprep.subr.bf16.mxu0 %v4987_v44 }
0x17b2   : > { %v2310_v40 = vpop.xlane.xlu1 %2309 }
0x17b3   : > { %v2311_v41 = vmul.f32 0.03125, %v2310_v40  ;;  %v4170_v40 = vld [vmem:[%s6342_s3 + $0x100] ss:$0 sm:$0xff] }
0x17b5   : > { %v2312_v42 = vsub.f32 %v2305_v38, %v2311_v41 }
0x17b7   : > { %v2313_v43 = vmul.f32 %v2312_v42, %v2312_v42 }
0x17b9   : > { %v2314_v45 = vsel %vm1913_vm8, %v2313_v43, 0.0 }
0x17ba   : > { %2315 = vadd.xlane.f32.xlu0 %v2314_v45 }
0x1847   : > { %v2316_v31 = vpop.xlane.xlu0 %2315 }
0x1848   : > { %v2317_v48 = vmul.f32 0.03125, %v2316_v31 }
0x184a   : > { %v2318_v49 = vadd.f32 1e-06, %v2317_v48 }
0x184c   : > { %4955 = vrsqrt.f32 %v2318_v49 }
0x1856   : > { %v4956_v50 = vpop.eup %4955 }
0x1857   : > { %v2320_v52 = vmul.f32 %v4956_v50, %v2312_v42  ;;  %v4171_v42 = vld [vmem:[%s6342_s3 + $0x108] ss:$0 sm:$0xff] }
0x1859   : > { %v2325_v54 = vmul.f32 %v4158_v51, %v2320_v52 }
0x185b   : > { %v2330_v56 = vadd.f32 %v4159_v53, %v2325_v54 }
0x185d   : > { %v2335_v59 = vpack.c.bf16 %v2330_v56, %v2330_v56 }
0x185f   : > { %4575 = vmatmul.mubr.msk.bf16.vlgmr.msra.gmra.mrb[60].mxu1 %vm752_vm0, %v2335_v59 }
0x1860   : > { %4591 = vmatpush3.bf16.msra.mxu1 %v4879_v57  ;;  %4594 = vmatprep.mubr.msk.bf16.mxu1 %vm4988_vm1, %v4987_v44 }
0x1861   : > { %4592 = vmatprep.subr.bf16.mxu1 %v4987_v44 }
0x1864   : > { %4593 = vmatpush3.bf16.msra.mxu1 %v4880_v55 }
0x1865   : > { %4598 = vmatprep.subr.bf16.mxu1 %v4987_v44 }
0x1867   : > { %4595 = vmatmul.mubr.msk.bf16.vlgmr.msra.gmra.mrb[64].mxu1 %vm752_vm0, %v5489_v25  ;;  %v4160_v25 = vld [vmem:[%s6342_s3 + $0x120] ss:$0 sm:$0xff] }
0x1868   : > { %4602 = vmatprep.mubr.msk.bf16.mxu1 %vm4988_vm1, %v4987_v44  ;;  %4599 = vmatpush3.bf16.msra.mxu1 %v4885_v32 }
0x1869   : > { %4600 = vmatprep.subr.bf16.mxu1 %v4987_v44 }
0x186c   : > { %4601 = vmatpush3.bf16.msra.mxu1 %v4887_v34  ;;  %v4893_v34 = vld [vmem:[%s6341_s2 + $0x310] sm:$0xff]  }
0x186d   : > { %4614 = vmatprep.subr.bf16.mxu1 %v4987_v44 }
0x1932   : > { %v2390_v58 = vpop.f32.mrb[60].mxu1 }
0x1933   : > { %v2391_v61 = vadd.f32 %v4160_v25, %v2390_v58  ;;  %v4576_v62 = vpop.f32.mrb[61].mxu1 }
0x1934   : > { %v2393_v63 = vpop.f32.mrb[62].mxu1 }
0x1935   : > { %v2396_v0 = vmax.f32 %v2391_v61, 0.0  ;;  %v4577_v1 = vpop.f32.mrb[63].mxu1 }
0x1937   : > { %v2405_v2 = vpack.c.bf16 %v2396_v0, %v2396_v0 }
0x1939   : > { %4587 = vmatmul.mubr.msk.bf16.vlgmr.msra.gmra.mrb[40].mxu0 %vm1377_vm3, %v2405_v2 }
0x193a   : > { %v2560_v4 = vpop.f32.mrb[64].mxu1  ;;  %4610 = vmatprep.mubr.msk.bf16.mxu0 %vm4988_vm1, %v4987_v44  ;;  %4607 = vmatpush3.bf16.msra.mxu0 %v4886_v33 }
0x193b   : > { %v4596_v5 = vpop.f32.mrb[65].mxu1  ;;  %v5618_v8 = vadd.f32 %v4172_v3, %v2560_v4  ;;  %4608 = vmatprep.subr.bf16.mxu0 %v4987_v44 }
0x193c   : > { %v2563_v7 = vpop.f32.mrb[66].mxu1 }
0x193d   : > { %v5620_v9 = vadd.f32 %v4172_v3, %v2563_v7  ;;  %v4597_v10 = vpop.f32.mrb[67].mxu1 }
0x193e   : > { %4609 = vmatpush3.bf16.msra.mxu0 %v4888_v29 }
0x193f   : > { %v2693_v11 = vpack.c.bf16 %v5620_v9, %v5618_v8  ;;  %4620 = vmatprep.subr.bf16.mxu0 %v4987_v44 }
0x1a0c   : > { %v2467_v12 = vpop.f32.mrb[40].mxu0 }
0x1a0d   : > { %v2473_v13 = vadd.f32 %v2467_v12, %v2330_v56  ;;  %v4588_v14 = vpop.f32.mrb[41].mxu0  ;;  %v4891_v12 = vld [vmem:[%s6341_s2 + $0x290] sm:$0xff]  }
0x1a0e   : > { %v2470_v15 = vpop.f32.mrb[42].mxu0 }
0x1a0f   : > { %v4589_v16 = vpop.f32.mrb[43].mxu0  ;;  %v2479_v18 = vadd.f32 %v4169_v6, %v2473_v13 }
0x1a11   : > { %v2482_v20 = vsel %vm1913_vm8, %v2479_v18, 0.0 }
0x1a12   : > { %2483 = vadd.xlane.f32.xlu1 %v2482_v20  ;;  %v4889_v20 = vld [vmem:[%s6341_s2 + $0x300] sm:$0xff]  }
0x1a9f   : > { %v2484_v21 = vpop.xlane.xlu1 %2483 }
0x1aa0   : > { %v2485_v23 = vmul.f32 0.03125, %v2484_v21 }
0x1aa2   : > { %v2486_v24 = vsub.f32 %v2479_v18, %v2485_v23  ;;  %v4890_v23 = vld [vmem:[%s6341_s2 + $0x308] sm:$0xff]  }
0x1aa4   : > { %v2487_v26 = vmul.f32 %v2486_v24, %v2486_v24 }
0x1aa6   : > { %v2488_v28 = vsel %vm1913_vm8, %v2487_v26, 0.0  ;;  %v4892_v26 = vld [vmem:[%s6341_s2 + $0x298] sm:$0xff]  }
0x1aa7   : > { %2489 = vadd.xlane.f32.xlu0 %v2488_v28 }
0x1b34   : > { %v2490_v36 = vpop.xlane.xlu0 %2489 }
0x1b35   : > { %v2491_v37 = vmul.f32 0.03125, %v2490_v36 }
0x1b37   : > { %v2492_v38 = vadd.f32 1e-06, %v2491_v37  ;;  %v2927_v37 = vld [vmem:[%s6342_s3 + $0x140] sm:$0x1] }
0x1b39   : > { %4957 = vrsqrt.f32 %v2492_v38  ;;  %v4894_v38 = vld [vmem:[%s6341_s2 + $0x318] sm:$0xff]  }
0x1b43   : > { %v4958_v39 = vpop.eup %4957 }
0x1b44   : > { %v2494_v41 = vmul.f32 %v4958_v39, %v2486_v24 }
0x1b46   : > { %v2499_v43 = vmul.f32 %v4170_v40, %v2494_v41 }
0x1b48   : > { %v2504_v45 = vadd.f32 %v4171_v42, %v2499_v43 }
0x1b4a   : > { %v5651_v46 = vpack.c.bf16 %v2504_v45, %v2504_v45 }
0x1b4c   : > { %4603 = vmatmul.mubr.msk.bf16.vlgmr.msra.gmra.mrb[68].mxu1 %vm752_vm0, %v5651_v46  ;;  %4611 = vmatmul.mubr.msk.bf16.vlgmr.msra.gmra.mrb[44].mxu0 %vm752_vm0, %v5651_v46  ;;  %v2928_v24 = vshrl.u32 %v5651_v46, 16 }
0x1b4d   : > { %4616 = vmatprep.mubr.msk.bf16.mxu1 %vm4988_vm1, %v4987_v44  ;;  %4622 = vmatprep.mubr.msk.bf16.mxu0 %vm4988_vm1, %v4987_v44 }
0x1c1f   : > { %v2626_v27 = vpop.f32.mrb[68].mxu1  ;;  %v2687_v31 = vpop.f32.mrb[44].mxu0 }
0x1c20   : > { %v2627_v48 = vadd.f32 %v4176_v47, %v2626_v27  ;;  %v2688_v49 = vadd.f32 %v4180_v30, %v2687_v31  ;;  %v4604_v50 = vpop.f32.mrb[69].mxu1  ;;  %v4612_v51 = vpop.f32.mrb[45].mxu0  ;;  %v4186_v47 = vld [vmem:[%s6342_s3 + $0xd8] ss:$0 sm:$0xff] }
0x1c21   : > { %v2629_v52 = vpop.f32.mrb[70].mxu1  ;;  %v2690_v53 = vpop.f32.mrb[46].mxu0 }
0x1c22   : > { %v2694_v54 = vpack.c.bf16 %v2627_v48, %v2627_v48  ;;  %v2767_v56 = vpack.c.bf16 %v2688_v49, %v2688_v49  ;;  %v4605_v57 = vpop.f32.mrb[71].mxu1  ;;  %v4613_v59 = vpop.f32.mrb[47].mxu0 }
0x1c24   : > { %v2699_v55 = vsel %vm752_vm0, %v2694_v54, 0  ;;  %v2772_v60 = vand.u32 %v2767_v56, %v5429_v17 }
0x1c25   : > { %4615 = vmatpush3.bf16.xpose.msra.mxu1 %v2699_v55 }
0x1c26   : > { %4621 = vmatpush3.bf16.msra.mxu0 %v2772_v60  ;;  %4626 = vmatprep.subr.bf16.mxu1 %v4987_v44 }
0x1c27   : > { %4634 = vmatprep.subr.bf16.mxu0 %v4987_v44 }
0x1c2c   : > { %4617 = vmatmul.mubr.msk.bf16.vlgmr.msra.gmra.mrb[72].mxu1 %vm752_vm0, %v2693_v11 }
0x1c2d   : > { %4630 = vmatprep.mubr.msk.bf16.mxu1 %vm4988_vm1, %v4987_v44  ;;  %4627 = vmatpush3.bf16.msra.mxu1 %v4891_v12 }
0x1c2e   : > { %4628 = vmatprep.subr.bf16.mxu1 %v4987_v44 }
0x1c31   : > { %4629 = vmatpush3.bf16.msra.mxu1 %v4892_v26  ;;  %v4900_v26 = vld [vmem:[%s6341_s2 + $0x2f8] sm:$0xff]  }
0x1c32   : > { %4642 = vmatprep.subr.bf16.mxu1 %v4987_v44 }
0x1cff   : > { %v2735_v35 = vpop.f32.mrb[72].mxu1 }
0x1d00   : > { %v2742_v25 = vmul.f32 0.17677669, %v2735_v35  ;;  %v4618_v58 = vpop.f32.mrb[73].mxu1 }
0x1d01   : > { %v2738_v61 = vpop.f32.mrb[74].mxu1 }
0x1d02   : > { %v2743_v62 = vmul.f32 0.17677669, %v2738_v61  ;;  %v4619_v17 = vpop.f32.mrb[75].mxu1  ;;  %v2744_v63 = vsel %vm1794_vm7, %v2742_v25, -inf }
0x1d03   : > { %2745 = vmax.xlane.f32.xlu1 %v2744_v63 }
0x1d04   : > { %v2747_v0 = vsel %vm1794_vm7, %v2743_v62, -inf }
0x1d05   : > { %2748 = vmax.xlane.f32.xlu0 %v2747_v0  ;;  %v4895_v0 = vld [vmem:[%s6341_s2 + $0x2d0] sm:$0xff]  }
0x1d90   : > { %v2746_v1 = vpop.xlane.xlu1 %2745 }
0x1d91   : > { %v2750_v2 = vsub.f32 %v2742_v25, %v2746_v1  ;;  %v4896_v1 = vld [vmem:[%s6341_s2 + $0x2d8] sm:$0xff]  }
0x1d92   : > { %v2749_v3 = vpop.xlane.xlu0 %2748 }
0x1d93   : > { %v2752_v4 = vmul.f32 1.442695, %v2750_v2  ;;  %v2751_v5 = vsub.f32 %v2743_v62, %v2749_v3 }
0x1d95   : > { %4959 = vpow2.f32 %v2752_v4  ;;  %v2754_v7 = vmul.f32 1.442695, %v2751_v5 }
0x1d97   : > { %4961 = vpow2.f32 %v2754_v7 }
0x1d9f   : > { %v4960_v8 = vpop.eup %4959 }
0x1da0   : > { %v2756_v9 = vsel %vm1794_vm7, %v4960_v8, 0.0 }
0x1da1   : > { %v4962_v10 = vpop.eup %4961  ;;  %2757 = vadd.xlane.f32.xlu1 %v2756_v9 }
0x1da2   : > { %v2759_v11 = vsel %vm1794_vm7, %v4962_v10, 0.0 }
0x1da3   : > { %2760 = vadd.xlane.f32.xlu0 %v2759_v11 }
0x1e2e   : > { %v2758_v6 = vpop.xlane.xlu1 %2757 }
0x1e2f   : > { %4963 = vrcp.f32 %v2758_v6 }
0x1e30   : > { %v2761_v13 = vpop.xlane.xlu0 %2760 }
0x1e31   : > { %4965 = vrcp.f32 %v2761_v13 }
0x1e39   : > { %v4964_v14 = vpop.eup %4963 }
0x1e3a   : > { %v2764_v16 = vmul.f32 %v4964_v14, %v4960_v8  ;;  %v4191_v14 = vld [vmem:[%s6342_s3 + $0x118] ss:$0 sm:$0xff] }
0x1e3b   : > { %v4966_v15 = vpop.eup %4965 }
0x1e3c   : > { %v2765_v18 = vmul.f32 %v4966_v15, %v4962_v10  ;;  %v4190_v10 = vld [vmem:[%s6342_s3 + $0x110] ss:$0 sm:$0xff] }
0x1e3e   : > { %v2766_v21 = vpack.c.bf16 %v2765_v18, %v2764_v16 }
0x1e40   : > { %4623 = vmatmul.mubr.msk.bf16.vlgmr.msra.gmra.mrb[48].mxu0 %vm1794_vm7, %v2766_v21  ;;  %v4897_v21 = vld [vmem:[%s6341_s2 + $0x2e0] sm:$0xff]  }
0x1e41   : > { %4635 = vmatpush3.bf16.msra.mxu0 %v4889_v20  ;;  %4638 = vmatprep.mubr.msk.bf16.mxu0 %vm4988_vm1, %v4987_v44 }
0x1e42   : > { %4636 = vmatprep.subr.bf16.mxu0 %v4987_v44 }
0x1e45   : > { %4637 = vmatpush3.bf16.msra.mxu0 %v4890_v23  ;;  %v4898_v23 = vld [vmem:[%s6341_s2 + $0x2e8] sm:$0xff]  }
0x1e46   : > { %4650 = vmatprep.subr.bf16.mxu0 %v4987_v44 }
0x1e48   : > { %4639 = vmatmul.mubr.msk.bf16.vlgmr.msra.gmra.mrb[52].mxu0 %vm752_vm0, %v2928_v24  ;;  %v4899_v24 = vld [vmem:[%s6341_s2 + $0x2f0] sm:$0xff]  }
0x1e49   : > { %4654 = vmatprep.mubr.msk.bf16.mxu0 %vm4988_vm1, %v4987_v44  ;;  %4651 = vmatpush3.bf16.msra.mxu0 %v4895_v0 }
0x1e4a   : > { %4652 = vmatprep.subr.bf16.mxu0 %v4987_v44 }
0x1e4d   : > { %4653 = vmatpush3.bf16.msra.mxu0 %v4896_v1 }
0x1e4e   : > { %4670 = vmatprep.subr.bf16.mxu0 %v4987_v44 }
0x1f13   : > { %v2808_v28 = vpop.f32.mrb[48].mxu0 }
0x1f14   : > { %v4624_v32 = vpop.f32.mrb[49].mxu0 }
0x1f15   : > { %v2811_v33 = vpop.f32.mrb[50].mxu0 }
0x1f16   : > { %v2819_v29 = vpack.c.bf16 %v2811_v33, %v2808_v28  ;;  %v4625_v36 = vpop.f32.mrb[51].mxu0  ;;  %v4198_v28 = vld [vmem:[%s6342_s3 + $0x130] ss:$0 sm:$0xff] }
0x1f18   : > { %4631 = vmatmul.mubr.msk.bf16.vlgmr.msra.gmra.mrb[76].mxu1 %vm752_vm0, %v2819_v29 }
0x1f19   : > { %4643 = vmatpush3.bf16.msra.mxu1 %v4893_v34  ;;  %4646 = vmatprep.mubr.msk.bf16.mxu1 %vm4988_vm1, %v4987_v44 }
0x1f1a   : > { %4644 = vmatprep.subr.bf16.mxu1 %v4987_v44 }
0x1f1b   : > { %v2979_v39 = vpop.f32.mrb[52].mxu0 }
0x1f1c   : > { %v2980_v40 = vadd.f32 %v2979_v39, %v2927_v37  ;;  %v4640_v41 = vpop.f32.mrb[53].mxu0 }
0x1f1d   : > { %v2982_v42 = vpop.f32.mrb[54].mxu0  ;;  %4645 = vmatpush3.bf16.msra.mxu1 %v4894_v38 }
0x1f1e   : > { %v2985_v43 = vmax.f32 %v2980_v40, 0.0  ;;  %v4641_v45 = vpop.f32.mrb[55].mxu0  ;;  %4658 = vmatprep.subr.bf16.mxu1 %v4987_v44 }
0x1f20   : > { %v2990_v46 = vpack.c.bf16 %v2985_v43, %v2985_v43 }
0x1f22   : > { %4647 = vmatmul.mubr.msk.bf16.vlgmr.msra.gmra.mrb[80].mxu1 %vm752_vm0, %v2990_v46 }
0x1f23   : > { %4666 = vmatprep.mubr.msk.bf16.mxu1 %vm4988_vm1, %v4987_v44  ;;  %4659 = vmatpush3.bf16.msra.mxu1 %v4897_v21 }
0x1f24   : > { %4660 = vmatprep.subr.bf16.mxu1 %v4987_v44 }
0x1f27   : > { %4661 = vmatpush3.bf16.msra.mxu1 %v4898_v23 }
0x1f28   : > { %4662 = vmatprep.subr.bf16.mxu1 %v4987_v44 }
0x1f2b   : > { %4663 = vmatpush3.bf16.msra.mxu1 %v4899_v24 }
0x1f2c   : > { %4664 = vmatprep.subr.bf16.mxu1 %v4987_v44 }
0x1f2f   : > { %4665 = vmatpush3.bf16.msra.mxu1 %v4900_v26 }
0x1feb   : > { %v2874_v30 = vpop.f32.mrb[76].mxu1 }
0x1fec   : > { %v2875_v27 = vadd.f32 %v4186_v47, %v2874_v30  ;;  %v4632_v31 = vpop.f32.mrb[77].mxu1 }
0x1fed   : > { %v2877_v48 = vpop.f32.mrb[78].mxu1 }
0x1fee   : > { %v2878_v49 = vadd.f32 %v4186_v47, %v2877_v48  ;;  %v4633_v50 = vpop.f32.mrb[79].mxu1  ;;  %v2881_v51 = vadd.f32 %v2875_v27, %v5477_v19 }
0x1ff0   : > { %v2885_v52 = vsel %vm752_vm0, %v2881_v51, 0.0  ;;  %v2882_v53 = vadd.f32 %v2878_v49, %v5485_v22 }
0x1ff1   : > { %2886 = vadd.xlane.f32.xlu1 %v2885_v52 }
0x1ff2   : > { %v2888_v54 = vsel %vm752_vm0, %v2882_v53, 0.0 }
0x1ff3   : > { %2889 = vadd.xlane.f32.xlu0 %v2888_v54 }
0x1ff5   : > { %v5728_v56 = vpop.f32.mrb[80].mxu1 }
0x1ff6   : > { %v4648_v57 = vpop.f32.mrb[81].mxu1 }
0x1ff7   : > { %v3044_v59 = vpop.f32.mrb[82].mxu1  ;;  %v4901_v57 = vld [vmem:[%s6341_s2 + $0x320] sm:$0xff]  }
0x1ff8   : > { %v4649_v55 = vpop.f32.mrb[83].mxu1  ;;  %v4902_v59 = vld [vmem:[%s6341_s2 + $0x328] sm:$0xff]  }
0x1ff9   : > { %v4903_v55 = vld [vmem:[%s6341_s2 + $0x330] sm:$0xff]  }
0x207e   : > { %v2887_v60 = vpop.xlane.xlu1 %2886 }
0x207f   : > { %v2891_v35 = vmul.f32 0.03125, %v2887_v60  ;;  %v4904_v60 = vld [vmem:[%s6341_s2 + $0x338] sm:$0xff]  }
0x2080   : > { %v2890_v25 = vpop.xlane.xlu0 %2889 }
0x2081   : > { %v2893_v58 = vsub.f32 %v2881_v51, %v2891_v35  ;;  %v2892_v61 = vmul.f32 0.03125, %v2890_v25  ;;  %v4905_v35 = vld [vmem:[%s6341_s2 + $0x340] sm:$0xff]   ;;  %v4906_v25 = vld [vmem:[%s6341_s2 + $0x348] sm:$0xff]  }
0x2083   : > { %v2894_v62 = vsub.f32 %v2882_v53, %v2892_v61  ;;  %v2895_v19 = vmul.f32 %v2893_v58, %v2893_v58  ;;  %v4908_v61 = vld [vmem:[%s6341_s2 + $0x358] sm:$0xff]  }
0x2085   : > { %v2897_v17 = vsel %vm752_vm0, %v2895_v19, 0.0  ;;  %v2896_v63 = vmul.f32 %v2894_v62, %v2894_v62 }
0x2086   : > { %2898 = vadd.xlane.f32.xlu1 %v2897_v17 }
0x2087   : > { %v2900_v22 = vsel %vm752_vm0, %v2896_v63, 0.0 }
0x2088   : > { %2901 = vadd.xlane.f32.xlu0 %v2900_v22 }
0x2113   : > { %v2899_v2 = vpop.xlane.xlu1 %2898 }
0x2114   : > { %v2903_v3 = vmul.f32 0.03125, %v2899_v2 }
0x2115   : > { %v2902_v4 = vpop.xlane.xlu0 %2901 }
0x2116   : > { %v2905_v5 = vadd.f32 1e-06, %v2903_v3  ;;  %v2904_v7 = vmul.f32 0.03125, %v2902_v4 }
0x2118   : > { %4967 = vrsqrt.f32 %v2905_v5  ;;  %v2906_v8 = vadd.f32 1e-06, %v2904_v7 }
0x211a   : > { %4969 = vrsqrt.f32 %v2906_v8 }
0x2122   : > { %v4968_v9 = vpop.eup %4967 }
0x2123   : > { %v2909_v11 = vmul.f32 %v4968_v9, %v2893_v58  ;;  %v4907_v58 = vld [vmem:[%s6341_s2 + $0x350] sm:$0xff]  }
0x2124   : > { %v4970_v12 = vpop.eup %4969 }
0x2125   : > { %v2915_v6 = vmul.f32 %v4190_v10, %v2909_v11  ;;  %v2910_v13 = vmul.f32 %v4970_v12, %v2894_v62  ;;  %v4202_v62 = vld [vmem:[%s6342_s3 + $0x138] ss:$0 sm:$0xff]  ;;  %v3231_v12 = vlaneseq }
0x2127   : > { %v2916_v15 = vmul.f32 %v4190_v10, %v2910_v13  ;;  %v2921_v16 = vadd.f32 %v4191_v14, %v2915_v6  ;;  %v3232_v6 = vshrl.u32 %v3231_v12, 7  ;;  %v2991_v13 = vld [vmem:[%s6342_s3 + $0x148] sm:$0x1] }
0x2129   : > { %v2922_v18 = vadd.f32 %v4191_v14, %v2916_v15  ;;  %v3042_v14 = vadd.f32 %v5728_v56, %v2991_v13  ;;  %v3233_v15 = vsub.s32 0, %v3232_v6  ;;  %v3481_v56 = vsub.s32 6, %v3232_v6 }
0x212b   : > { %v3051_v20 = vpack.c.bf16 %v2922_v18, %v2921_v16  ;;  %v3234_v23 = vrot.slane %v3042_v14, %v3233_v15 }
0x212d   : > { %4655 = vmatmul.mubr.msk.bf16.vlgmr.msra.gmra.mrb[56].mxu0 %vm752_vm0, %v3051_v20 }
0x212e   : > { %4686 = vmatprep.mubr.msk.bf16.mxu0 %vm4988_vm1, %v4987_v44  ;;  %4671 = vmatpush3.bf16.msra.mxu0 %v4901_v57  ;;  %v5845_v57 = vld [vmem:[%s6342_s3 + $0x1d0] sm:$0xff] }
0x212f   : > { %4672 = vmatprep.subr.bf16.mxu0 %v4987_v44 }
0x2132   : > { %4673 = vmatpush3.bf16.msra.mxu0 %v4902_v59 }
0x2133   : > { %4674 = vmatprep.subr.bf16.mxu0 %v4987_v44 }
0x2136   : > { %4675 = vmatpush3.bf16.msra.mxu0 %v4903_v55 }
0x2137   : > { %4676 = vmatprep.subr.bf16.mxu0 %v4987_v44 }
0x213a   : > { %4677 = vmatpush3.bf16.msra.mxu0 %v4904_v60 }
0x213b   : > { %4678 = vmatprep.subr.bf16.mxu0 %v4987_v44 }
0x213e   : > { %4679 = vmatpush3.bf16.msra.mxu0 %v4905_v35 }
0x213f   : > { %4680 = vmatprep.subr.bf16.mxu0 %v4987_v44 }
0x2142   : > { %4681 = vmatpush3.bf16.msra.mxu0 %v4906_v25 }
0x2143   : > { %4682 = vmatprep.subr.bf16.mxu0 %v4987_v44 }
0x2146   : > { %4683 = vmatpush3.bf16.msra.mxu0 %v4907_v58  ;;  %v5858_v58 = vld [vmem:[%s6342_s3 + $0x1d8] sm:$0xff] }
0x2147   : > { %4684 = vmatprep.subr.bf16.mxu0 %v4987_v44 }
0x214a   : > { %4685 = vmatpush3.bf16.msra.mxu0 %v4908_v61  ;;  %v5863_v61 = vld [vmem:[%s6342_s3 + $0x210] sm:$0xff] }
0x2200   : > { %v3106_v32 = vpop.f32.mrb[56].mxu0 }
0x2201   : > { %v3107_v33 = vadd.f32 %v4198_v28, %v3106_v32  ;;  %v4656_v34 = vpop.f32.mrb[57].mxu0 }
0x2202   : > { %v3109_v29 = vpop.f32.mrb[58].mxu0 }
0x2203   : > { %v3115_v36 = vmul.f32 0.044715, %v3107_v33  ;;  %v3110_v37 = vadd.f32 %v4198_v28, %v3109_v29  ;;  %v4657_v38 = vpop.f32.mrb[59].mxu0  ;;  %v3113_v49 = vmul.f32 0.5, %v3107_v33 }
0x2204   : > { %v3429_v38 = vsub.s32 3, %v3232_v6 }
0x2205   : > { %v3117_v39 = vmul.f32 %v3115_v36, %v3107_v33  ;;  %v3116_v40 = vmul.f32 0.044715, %v3110_v37  ;;  %v3114_v50 = vmul.f32 0.5, %v3110_v37  ;;  %v3389_v36 = vsub.s32 1, %v3232_v6 }
0x2207   : > { %v3119_v41 = vmul.f32 %v3117_v39, %v3107_v33  ;;  %v3118_v42 = vmul.f32 %v3116_v40, %v3110_v37  ;;  %v3449_v39 = vsub.s32 4, %v3232_v6  ;;  %v3461_v40 = vsub.s32 5, %v3232_v6 }
0x2209   : > { %v3121_v43 = vadd.f32 %v3119_v41, %v3107_v33  ;;  %v3120_v45 = vmul.f32 %v3118_v42, %v3110_v37  ;;  %v3501_v41 = vsub.s32 7, %v3232_v6 }
0x220b   : > { %v3123_v46 = vmul.f32 0.7978846, %v3121_v43  ;;  %v3122_v47 = vadd.f32 %v3120_v45, %v3110_v37  ;;  %v3409_v37 = vsub.s32 2, %v3232_v6 }
0x220d   : > { %4971 = vtanh.f32 %v3123_v46  ;;  %v3124_v30 = vmul.f32 0.7978846, %v3122_v47 }
0x220f   : > { %4973 = vtanh.f32 %v3124_v30 }
0x2217   : > { %v4972_v27 = vpop.eup %4971 }
0x2218   : > { %v3127_v31 = vadd.f32 1.0, %v4972_v27  ;;  %v5817_v27 = vld [vmem:[%s6342_s3 + $0x150] sm:$0xff] }
0x2219   : > { %v4974_v48 = vpop.eup %4973 }
0x221a   : > { %v3128_v51 = vadd.f32 1.0, %v4974_v48  ;;  %v3129_v52 = vmul.f32 %v3127_v31, %v3113_v49  ;;  %v5822_v31 = vld [vmem:[%s6342_s3 + $0x158] sm:$0xff] }
0x221c   : > { %v3130_v53 = vmul.f32 %v3128_v51, %v3114_v50 }
0x221e   : > { %v3139_v54 = vpack.c.bf16 %v3130_v53, %v3129_v52  ;;  %v5835_v53 = vld [vmem:[%s6342_s3 + $0x190] sm:$0xff] }
0x2220   : > { %4667 = vmatmul.mubr.msk.bf16.vlgmr.msra.gmra.mrb[84].mxu1 %vm1377_vm3, %v3139_v54  ;;  %v5840_v54 = vld [vmem:[%s6342_s3 + $0x198] sm:$0xff] }
0x22f3   : > { %v3206_v19 = vpop.f32.mrb[84].mxu1 }
0x22f4   : > { %v3207_v17 = vadd.f32 %v4202_v62, %v3206_v19  ;;  %v4668_v63 = vpop.f32.mrb[85].mxu1 }
0x22f5   : > { %v3209_v22 = vpop.f32.mrb[86].mxu1 }
0x22f6   : > { %v3215_v0 = vmul.f32 0.044715, %v3207_v17  ;;  %v3210_v1 = vadd.f32 %v4202_v62, %v3209_v22  ;;  %v4669_v2 = vpop.f32.mrb[87].mxu1  ;;  %v3213_v18 = vmul.f32 0.5, %v3207_v17  ;;  %v5868_v62 = vld [vmem:[%s6342_s3 + $0x218] sm:$0xff] }
0x22f8   : > { %v3217_v3 = vmul.f32 %v3215_v0, %v3207_v17  ;;  %v3216_v4 = vmul.f32 0.044715, %v3210_v1  ;;  %v3214_v24 = vmul.f32 0.5, %v3210_v1 }
0x22fa   : > { %v3219_v5 = vmul.f32 %v3217_v3, %v3207_v17  ;;  %v3218_v7 = vmul.f32 %v3216_v4, %v3210_v1 }
0x22fc   : > { %v3221_v8 = vadd.f32 %v3219_v5, %v3207_v17  ;;  %v3220_v9 = vmul.f32 %v3218_v7, %v3210_v1 }
0x22fe   : > { %v3223_v10 = vmul.f32 0.7978846, %v3221_v8  ;;  %v3222_v44 = vadd.f32 %v3220_v9, %v3210_v1 }
0x2300   : > { %4975 = vtanh.f32 %v3223_v10  ;;  %v3224_v11 = vmul.f32 0.7978846, %v3222_v44 }
0x2302   : > { %4977 = vtanh.f32 %v3224_v11 }
0x230a   : > { %v4976_v16 = vpop.eup %4975 }
0x230b   : > { %v3227_v20 = vadd.f32 1.0, %v4976_v16 }
0x230c   : > { %v4978_v21 = vpop.eup %4977 }
0x230d   : > { %v3228_v26 = vadd.f32 1.0, %v4978_v21  ;;  %v3229_v28 = vmul.f32 %v3227_v20, %v3213_v18 }
0x230f   : > { %v3230_v32 = vmul.f32 %v3228_v26, %v3214_v24  ;;  %v3235_v33 = vmul.f32 %v3234_v23, %v3229_v28 }
0x2311   : > { %v3236_v34 = vmul.f32 %v3234_v23, %v3230_v32 }
0x2313   : > { %v3253_v29 = vpack.c.bf16 %v3236_v34, %v3235_v33 }
0x2315   : > { %4687 = vmatmul.mubr.bf16.vlgmr.msra.gmra.mrb[60].mxu0 %v3253_v29 }
0x23e8   : > { %v3336_v42 = vpop.f32.mrb[60].mxu0 }
0x23e9   : > { %v5806_v43 = vrot.slane %v3336_v42, %v3233_v15  ;;  %v5808_v45 = vrot.slane %v3336_v42, %v3389_v36  ;;  %v5810_v46 = vrot.slane %v3336_v42, %v3409_v37  ;;  %v5812_v47 = vrot.slane %v3336_v42, %v3429_v38  ;;  %v4688_v30 = vpop.f32.mrb[61].mxu0 }
0x23ea   : > { %v5824_v48 = vrot.slane %v3336_v42, %v3449_v39  ;;  %v5826_v49 = vrot.slane %v3336_v42, %v3461_v40  ;;  %v5828_v50 = vrot.slane %v3336_v42, %v3481_v56  ;;  %v5830_v51 = vrot.slane %v3336_v42, %v3501_v41  ;;  %v3339_v52 = vpop.f32.mrb[62].mxu0  ;;  %v5927_v42 = vld [vmem:[%s6342_s3 + $0x160] sm:$0xff] }
0x23eb   : > { %v5847_v59 = vrot.slane %v3339_v52, %v3233_v15  ;;  %v5849_v55 = vrot.slane %v3339_v52, %v3389_v36  ;;  %v5851_v60 = vrot.slane %v3339_v52, %v3409_v37  ;;  %v5853_v35 = vrot.slane %v3339_v52, %v3429_v38  ;;  %v4689_v25 = vpop.f32.mrb[63].mxu0 }
0x23ec   : > { %v5870_v19 = vrot.slane %v3339_v52, %v3449_v39  ;;  %v5872_v17 = vrot.slane %v3339_v52, %v3461_v40  ;;  %v5874_v63 = vrot.slane %v3339_v52, %v3481_v56  ;;  %v5876_v22 = vrot.slane %v3339_v52, %v3501_v41 }
0x23ed   : > { %v3451_v0 = vmul.f32 %v5824_v48, %v5817_v27  ;;  %v3452_v1 = vmul.f32 %v5824_v48, %v5822_v31  ;;  %v3463_v2 = vmul.f32 %v5826_v49, %v5835_v53  ;;  %v3464_v3 = vmul.f32 %v5826_v49, %v5840_v54 }
0x23ee   : > { %v3483_v4 = vmul.f32 %v5828_v50, %v5845_v57  ;;  %v3484_v5 = vmul.f32 %v5828_v50, %v5858_v58  ;;  %v3503_v7 = vmul.f32 %v5830_v51, %v5863_v61  ;;  %v3504_v8 = vmul.f32 %v5830_v51, %v5868_v62 }
0x23ef   : > { %v3471_v9 = vadd.f32 %v3463_v2, %v3451_v0  ;;  %v3472_v10 = vadd.f32 %v3464_v3, %v3452_v1  ;;  %v3523_v44 = vmul.f32 %v5847_v59, %v5817_v27  ;;  %v3524_v11 = vmul.f32 %v5847_v59, %v5822_v31  ;;  %v5934_v0 = vld [vmem:[%s6342_s3 + $0x168] sm:$0xff]  ;;  %v5939_v1 = vld [vmem:[%s6342_s3 + $0x1a0] sm:$0xff] }
0x23f0   : > { %v3535_v12 = vmul.f32 %v5849_v55, %v5835_v53  ;;  %v3536_v6 = vmul.f32 %v5849_v55, %v5840_v54  ;;  %v3555_v13 = vmul.f32 %v5851_v60, %v5845_v57  ;;  %v3556_v14 = vmul.f32 %v5851_v60, %v5858_v58 }
0x23f1   : > { %v3491_v15 = vadd.f32 %v3483_v4, %v3471_v9  ;;  %v3492_v16 = vadd.f32 %v3484_v5, %v3472_v10  ;;  %v3575_v18 = vmul.f32 %v5853_v35, %v5863_v61  ;;  %v3576_v20 = vmul.f32 %v5853_v35, %v5868_v62  ;;  %v5947_v5 = vld [vmem:[%s6342_s3 + $0x1a8] sm:$0xff] }
0x23f2   : > { %v3543_v21 = vadd.f32 %v3535_v12, %v3523_v44  ;;  %v3544_v23 = vadd.f32 %v3536_v6, %v3524_v11  ;;  %v3595_v24 = vmul.f32 %v5870_v19, %v5817_v27  ;;  %v3596_v26 = vmul.f32 %v5870_v19, %v5822_v31  ;;  %v5966_v11 = vld [vmem:[%s6342_s3 + $0x220] sm:$0xff] }
0x23f3   : > { %v3511_v28 = vadd.f32 %v3503_v7, %v3491_v15  ;;  %v3512_v32 = vadd.f32 %v3504_v8, %v3492_v16  ;;  %v3607_v33 = vmul.f32 %v5872_v17, %v5835_v53  ;;  %v3608_v34 = vmul.f32 %v5872_v17, %v5840_v54  ;;  %v5952_v7 = vld [vmem:[%s6342_s3 + $0x1e0] sm:$0xff]  ;;  %v5957_v8 = vld [vmem:[%s6342_s3 + $0x1e8] sm:$0xff] }
0x23f4   : > { %v3563_v29 = vadd.f32 %v3555_v13, %v3543_v21  ;;  %v3564_v36 = vadd.f32 %v3556_v14, %v3544_v23  ;;  %v3627_v37 = vmul.f32 %v5874_v63, %v5845_v57  ;;  %v3628_v38 = vmul.f32 %v5874_v63, %v5858_v58  ;;  %v5977_v16 = vld [vmem:[%s6342_s3 + $0x228] sm:$0xff] }
0x23f5   : > { %v4741_v39 = vpack.i.bf16 %v3512_v32, %v3511_v28  ;;  %v3615_v40 = vadd.f32 %v3607_v33, %v3595_v24  ;;  %v3616_v56 = vadd.f32 %v3608_v34, %v3596_v26  ;;  %v3647_v41 = vmul.f32 %v5876_v22, %v5863_v61 }
0x23f6   : > { %v3583_v30 = vadd.f32 %v3575_v18, %v3563_v29  ;;  %v3584_v52 = vadd.f32 %v3576_v20, %v3564_v36  ;;  %v3648_v25 = vmul.f32 %v5876_v22, %v5868_v62  ;;  %v3525_v2 = vmul.f32 %v5847_v59, %v5927_v42  ;;  %v5995_v29 = vld [vmem:[%s6342_s3 + $0x170] sm:$0xff]  ;;  %v6000_v36 = vld [vmem:[%s6342_s3 + $0x178] sm:$0xff] }
0x23f7   : > { %4742 = vrot.lane.b32.xlu1 %v4741_v39, %s4995_s9  ;;  %v3635_v3 = vadd.f32 %v3627_v37, %v3615_v40  ;;  %v3636_v4 = vadd.f32 %v3628_v38, %v3616_v56  ;;  %v3526_v9 = vmul.f32 %v5847_v59, %v5934_v0  ;;  %v3537_v10 = vmul.f32 %v5849_v55, %v5939_v1  ;;  %v6005_v37 = vld [vmem:[%s6342_s3 + $0x1b0] sm:$0xff] }
0x23f8   : > { %v4746_v44 = vpack.i.bf16 %v3584_v52, %v3583_v30  ;;  %v3538_v12 = vmul.f32 %v5849_v55, %v5947_v5  ;;  %v3557_v6 = vmul.f32 %v5851_v60, %v5952_v7  ;;  %v3558_v13 = vmul.f32 %v5851_v60, %v5957_v8  ;;  %v6021_v30 = vld [vmem:[%s6342_s3 + $0x1f0] sm:$0xff] }
0x23f9   : > { %v3655_v14 = vadd.f32 %v3647_v41, %v3635_v3  ;;  %v3656_v15 = vadd.f32 %v3648_v25, %v3636_v4  ;;  %v3545_v18 = vadd.f32 %v3537_v10, %v3525_v2  ;;  %v3577_v20 = vmul.f32 %v5853_v35, %v5966_v11  ;;  %v6016_v41 = vld [vmem:[%s6342_s3 + $0x1b8] sm:$0xff] }
0x23fa   : > { %4747 = vrot.lane.b32.xlu0 %v4746_v44, %s4996_s30  ;;  %v3546_v21 = vadd.f32 %v3538_v12, %v3526_v9  ;;  %v3578_v23 = vmul.f32 %v5853_v35, %v5977_v16  ;;  %v3453_v24 = vmul.f32 %v5824_v48, %v5927_v42  ;;  %v3454_v26 = vmul.f32 %v5824_v48, %v5934_v0  ;;  %v6029_v4 = vld [vmem:[%s6342_s3 + $0x1f8] sm:$0xff]  ;;  %v6034_v9 = vld [vmem:[%s6342_s3 + $0x230] sm:$0xff] }
0x23fb   : > { %v4751_v28 = vpack.i.bf16 %v3656_v15, %v3655_v14  ;;  %v3565_v32 = vadd.f32 %v3557_v6, %v3545_v18  ;;  %v3465_v33 = vmul.f32 %v5826_v49, %v5939_v1  ;;  %v3466_v34 = vmul.f32 %v5826_v49, %v5947_v5  ;;  %6346 = vst [vmem:[#allocation2_spill] sm:$0xff] %v6034_v9  ;;  %v6039_v44 = vld [vmem:[%s6342_s3 + $0x238] sm:$0xff] }
0x23fc   : > { %v3566_v38 = vadd.f32 %v3558_v13, %v3546_v21  ;;  %v3485_v39 = vmul.f32 %v5828_v50, %v5952_v7  ;;  %v3486_v40 = vmul.f32 %v5828_v50, %v5957_v8  ;;  %v3505_v56 = vmul.f32 %v5830_v51, %v5966_v11  ;;  %6347 = vst [vmem:[#allocation3_spill] sm:$0xff] %v6039_v44 }
0x23fd   : > { %4752 = vrot.lane.b32.xlu1 %v4751_v28, %s4993_s20  ;;  %v3585_v52 = vadd.f32 %v3577_v20, %v3565_v32  ;;  %v3473_v25 = vadd.f32 %v3465_v33, %v3453_v24  ;;  %v3474_v2 = vadd.f32 %v3466_v34, %v3454_v26  ;;  %v3506_v3 = vmul.f32 %v5830_v51, %v5977_v16 }
0x23fe   : > { %v3586_v10 = vadd.f32 %v3578_v23, %v3566_v38  ;;  %v3455_v12 = vmul.f32 %v5824_v48, %v5995_v29  ;;  %v3456_v6 = vmul.f32 %v5824_v48, %v6000_v36  ;;  %v3467_v13 = vmul.f32 %v5826_v49, %v6005_v37 }
0x23ff   : > { %v3493_v14 = vadd.f32 %v3485_v39, %v3473_v25  ;;  %v3494_v15 = vadd.f32 %v3486_v40, %v3474_v2  ;;  %v3468_v18 = vmul.f32 %v5826_v49, %v6016_v41  ;;  %v3487_v20 = vmul.f32 %v5828_v50, %v6021_v30 }
0x2400   : > { %v4761_v21 = vpack.i.bf16 %v3586_v10, %v3585_v52  ;;  %v3475_v23 = vadd.f32 %v3467_v13, %v3455_v12  ;;  %v3488_v24 = vmul.f32 %v5828_v50, %v6029_v4  ;;  %v3507_v26 = vmul.f32 %v5830_v51, %v6034_v9 }
0x2401   : > { %v3513_v28 = vadd.f32 %v3505_v56, %v3493_v14  ;;  %v3514_v32 = vadd.f32 %v3506_v3, %v3494_v15  ;;  %v3476_v33 = vadd.f32 %v3468_v18, %v3456_v6  ;;  %v3508_v34 = vmul.f32 %v5830_v51, %v6039_v44 }
0x2402   : > { %4762 = vrot.lane.b32.xlu0 %v4761_v21, %s4996_s30  ;;  %v3495_v38 = vadd.f32 %v3487_v20, %v3475_v23  ;;  %v3597_v39 = vmul.f32 %v5870_v19, %v5927_v42  ;;  %v3598_v40 = vmul.f32 %v5870_v19, %v5934_v0  ;;  %v3609_v52 = vmul.f32 %v5872_v17, %v5939_v1 }
0x2403   : > { %v4756_v25 = vpack.i.bf16 %v3514_v32, %v3513_v28  ;;  %v3496_v2 = vadd.f32 %v3488_v24, %v3476_v33  ;;  %v3610_v56 = vmul.f32 %v5872_v17, %v5947_v5  ;;  %v3629_v3 = vmul.f32 %v5874_v63, %v5952_v7 }
0x2404   : > { %v3515_v10 = vadd.f32 %v3507_v26, %v3495_v38  ;;  %v3617_v12 = vadd.f32 %v3609_v52, %v3597_v39  ;;  %v3630_v6 = vmul.f32 %v5874_v63, %v5957_v8  ;;  %v3649_v13 = vmul.f32 %v5876_v22, %v5966_v11 }
0x2405   : > { %4757 = vrot.lane.b32.xlu1 %v4756_v25, %s4995_s9  ;;  %v3516_v14 = vadd.f32 %v3508_v34, %v3496_v2  ;;  %v3618_v15 = vadd.f32 %v3610_v56, %v3598_v40  ;;  %v3650_v18 = vmul.f32 %v5876_v22, %v5977_v16  ;;  %v3599_v20 = vmul.f32 %v5870_v19, %v5995_v29 }
0x2406   : > { %v3637_v21 = vadd.f32 %v3629_v3, %v3617_v12  ;;  %v3600_v23 = vmul.f32 %v5870_v19, %v6000_v36  ;;  %v3611_v24 = vmul.f32 %v5872_v17, %v6005_v37  ;;  %v3612_v26 = vmul.f32 %v5872_v17, %v6016_v41 }
0x2407   : > { %v4771_v28 = vpack.i.bf16 %v3516_v14, %v3515_v10  ;;  %v3638_v32 = vadd.f32 %v3630_v6, %v3618_v15  ;;  %v3631_v33 = vmul.f32 %v5874_v63, %v6021_v30  ;;  %v3632_v34 = vmul.f32 %v5874_v63, %v6029_v4 }
0x2408   : > { %v3657_v38 = vadd.f32 %v3649_v13, %v3637_v21  ;;  %v3619_v39 = vadd.f32 %v3611_v24, %v3599_v20  ;;  %v3620_v40 = vadd.f32 %v3612_v26, %v3600_v23  ;;  %v3651_v52 = vmul.f32 %v5876_v22, %v6034_v9 }
0x2409   : > { %4772 = vrot.lane.b32.xlu0 %v4771_v28, %s4995_s9  ;;  %v3658_v25 = vadd.f32 %v3650_v18, %v3638_v32  ;;  %v3652_v2 = vmul.f32 %v5876_v22, %v6039_v44  ;;  %v3527_v56 = vmul.f32 %v5847_v59, %v5995_v29  ;;  %v3528_v3 = vmul.f32 %v5847_v59, %v6000_v36  ;;  %v6109_v28 = vld [vmem:[%s6342_s3 + $0x180] sm:$0xff]  ;;  %v6114_v32 = vld [vmem:[%s6342_s3 + $0x188] sm:$0xff] }
0x240a   : > { %v3639_v10 = vadd.f32 %v3631_v33, %v3619_v39  ;;  %v3640_v12 = vadd.f32 %v3632_v34, %v3620_v40  ;;  %v3539_v6 = vmul.f32 %v5849_v55, %v6005_v37  ;;  %v3540_v13 = vmul.f32 %v5849_v55, %v6016_v41  ;;  %v6119_v33 = vld [vmem:[%s6342_s3 + $0x1c0] sm:$0xff] }
0x240b   : > { %v4766_v14 = vpack.i.bf16 %v3658_v25, %v3657_v38  ;;  %v3559_v15 = vmul.f32 %v5851_v60, %v6021_v30  ;;  %v3560_v18 = vmul.f32 %v5851_v60, %v6029_v4  ;;  %v3579_v20 = vmul.f32 %v5853_v35, %v6034_v9  ;;  %v6127_v38 = vld [vmem:[%s6342_s3 + $0x1c8] sm:$0xff] }
0x240c   : > { %v3659_v21 = vadd.f32 %v3651_v52, %v3639_v10  ;;  %v3660_v23 = vadd.f32 %v3652_v2, %v3640_v12  ;;  %v3547_v24 = vadd.f32 %v3539_v6, %v3527_v56  ;;  %v3548_v26 = vadd.f32 %v3540_v13, %v3528_v3  ;;  %v6138_v3 = vld [vmem:[%s6342_s3 + $0x200] sm:$0xff]  ;;  %v6143_v10 = vld [vmem:[%s6342_s3 + $0x208] sm:$0xff] }
0x240d   : > { %4767 = vrot.lane.b32.xlu1 %v4766_v14, %s4993_s20  ;;  %v3580_v34 = vmul.f32 %v5853_v35, %v6039_v44  ;;  %v3529_v39 = vmul.f32 %v5847_v59, %v6109_v28  ;;  %v3530_v40 = vmul.f32 %v5847_v59, %v6114_v32  ;;  %v3541_v52 = vmul.f32 %v5849_v55, %v6119_v33  ;;  %v6148_v59 = vld [vmem:[%s6342_s3 + $0x240] sm:$0xff]  ;;  %v6155_v6 = vld [vmem:[%s6342_s3 + $0x248] sm:$0xff] }
0x240e   : > { %v4781_v25 = vpack.i.bf16 %v3660_v23, %v3659_v21  ;;  %v3567_v2 = vadd.f32 %v3559_v15, %v3547_v24  ;;  %v3568_v56 = vadd.f32 %v3560_v18, %v3548_v26  ;;  %v3542_v12 = vmul.f32 %v5849_v55, %v6127_v38 }
0x240f   : > { %v3549_v13 = vadd.f32 %v3541_v52, %v3529_v39  ;;  %v3561_v14 = vmul.f32 %v5851_v60, %v6138_v3  ;;  %v3562_v15 = vmul.f32 %v5851_v60, %v6143_v10  ;;  %v3581_v18 = vmul.f32 %v5853_v35, %v6148_v59 }
0x2410   : > { %4782 = vrot.lane.b32.xlu0 %v4781_v25, %s4993_s20  ;;  %v3587_v21 = vadd.f32 %v3579_v20, %v3567_v2  ;;  %v3588_v23 = vadd.f32 %v3580_v34, %v3568_v56  ;;  %v3550_v55 = vadd.f32 %v3542_v12, %v3530_v40  ;;  %v3582_v24 = vmul.f32 %v5853_v35, %v6155_v6 }
0x2411   : > { %v3569_v26 = vadd.f32 %v3561_v14, %v3549_v13  ;;  %v3457_v39 = vmul.f32 %v5824_v48, %v6109_v28  ;;  %v3458_v52 = vmul.f32 %v5824_v48, %v6114_v32  ;;  %v3469_v60 = vmul.f32 %v5826_v49, %v6119_v33 }
0x2412   : > { %v4776_v44 = vpack.i.bf16 %v3588_v23, %v3587_v21  ;;  %v3570_v9 = vadd.f32 %v3562_v15, %v3550_v55  ;;  %v3470_v20 = vmul.f32 %v5826_v49, %v6127_v38  ;;  %v3489_v34 = vmul.f32 %v5828_v50, %v6138_v3 }
0x2413   : > { %v3589_v40 = vadd.f32 %v3581_v18, %v3569_v26  ;;  %v3477_v35 = vadd.f32 %v3469_v60, %v3457_v39  ;;  %v3490_v25 = vmul.f32 %v5828_v50, %v6143_v10  ;;  %v3509_v2 = vmul.f32 %v5830_v51, %v6148_v59 }
0x2414   : > { %4777 = vrot.lane.b32.xlu1 %v4776_v44, %s4996_s30  ;;  %v3590_v48 = vadd.f32 %v3582_v24, %v3570_v9  ;;  %v3478_v56 = vadd.f32 %v3470_v20, %v3458_v52  ;;  %v3510_v12 = vmul.f32 %v5830_v51, %v6155_v6  ;;  %v3601_v49 = vmul.f32 %v5870_v19, %v6109_v28 }
0x2415   : > { %v3497_v13 = vadd.f32 %v3489_v34, %v3477_v35  ;;  %v3602_v14 = vmul.f32 %v5870_v19, %v6114_v32  ;;  %v3613_v50 = vmul.f32 %v5872_v17, %v6119_v33  ;;  %v3614_v15 = vmul.f32 %v5872_v17, %v6127_v38  ;;  %v4909_v34 = vld [vmem:[%s6341_s2 + $0x370] sm:$0xff]  }
0x2416   : > { %v4791_v18 = vpack.i.bf16 %v3590_v48, %v3589_v40  ;;  %v3498_v44 = vadd.f32 %v3490_v25, %v3478_v56  ;;  %v3633_v9 = vmul.f32 %v5874_v63, %v6138_v3  ;;  %v3634_v51 = vmul.f32 %v5874_v63, %v6143_v10  ;;  %4710 = vmatprep.mubr.msk.bf16.mxu0 %vm1377_vm3, %v4909_v34 }
0x2417   : > { %v3517_v21 = vadd.f32 %v3509_v2, %v3497_v13  ;;  %v3621_v23 = vadd.f32 %v3613_v50, %v3601_v49  ;;  %v3622_v55 = vadd.f32 %v3614_v15, %v3602_v14  ;;  %v3653_v19 = vmul.f32 %v5876_v22, %v6148_v59 }
0x2418   : > { %4792 = vrot.lane.b32.xlu0 %v4791_v18, %s4996_s30  ;;  %v3518_v24 = vadd.f32 %v3510_v12, %v3498_v44  ;;  %v3654_v17 = vmul.f32 %v5876_v22, %v6155_v6  ;;  %v3379_v26 = vmul.f32 %v5806_v43, %v5817_v27  ;;  %v3380_v39 = vmul.f32 %v5806_v43, %v5822_v31 }
0x2419   : > { %v3641_v52 = vadd.f32 %v3633_v9, %v3621_v23  ;;  %v3642_v63 = vadd.f32 %v3634_v51, %v3622_v55  ;;  %v3391_v60 = vmul.f32 %v5808_v45, %v5835_v53  ;;  %v3392_v20 = vmul.f32 %v5808_v45, %v5840_v54 }
0x241a   : > { %v4786_v40 = vpack.i.bf16 %v3518_v24, %v3517_v21  ;;  %v3411_v22 = vmul.f32 %v5810_v46, %v5845_v57  ;;  %v3412_v27 = vmul.f32 %v5810_v46, %v5858_v58  ;;  %v3431_v31 = vmul.f32 %v5812_v47, %v5863_v61 }
0x241b   : > { %v3661_v35 = vadd.f32 %v3653_v19, %v3641_v52  ;;  %v3662_v25 = vadd.f32 %v3654_v17, %v3642_v63  ;;  %v3399_v53 = vadd.f32 %v3391_v60, %v3379_v26  ;;  %v3400_v2 = vadd.f32 %v3392_v20, %v3380_v39 }
0x241c   : > { %4787 = vrot.lane.b32.xlu1 %v4786_v40, %s4995_s9  ;;  %v3432_v54 = vmul.f32 %v5812_v47, %v5868_v62  ;;  %v3381_v57 = vmul.f32 %v5806_v43, %v5927_v42  ;;  %v3382_v58 = vmul.f32 %v5806_v43, %v5934_v0  ;;  %v3393_v12 = vmul.f32 %v5808_v45, %v5939_v1 }
0x241d   : > { %v4796_v48 = vpack.i.bf16 %v3662_v25, %v3661_v35  ;;  %v3419_v56 = vadd.f32 %v3411_v22, %v3399_v53  ;;  %v3420_v61 = vadd.f32 %v3412_v27, %v3400_v2  ;;  %v3394_v49 = vmul.f32 %v5808_v45, %v5947_v5 }
0x241e   : > { %v3413_v13 = vmul.f32 %v5810_v46, %v5952_v7  ;;  %v3414_v62 = vmul.f32 %v5810_v46, %v5957_v8  ;;  %v3433_v42 = vmul.f32 %v5812_v47, %v5966_v11  ;;  %v3401_v50 = vadd.f32 %v3393_v12, %v3381_v57  ;;  %v4911_v11 = vld [vmem:[%s6341_s2 + $0x360] sm:$0xff]  }
0x241f   : > { %v3439_v14 = vadd.f32 %v3431_v31, %v3419_v56  ;;  %v3440_v0 = vadd.f32 %v3432_v54, %v3420_v61  ;;  %v3434_v15 = vmul.f32 %v5812_v47, %v5977_v16  ;;  %v3402_v1 = vadd.f32 %v3394_v49, %v3382_v58  ;;  %4698 = vmatprep.mubr.msk.bf16.mxu1 %vm1377_vm3, %v4911_v11 }
0x2420   : > { %4797 = vrot.lane.b32.xlu1 %v4796_v48, %s4993_s20  ;;  %v3383_v5 = vmul.f32 %v5806_v43, %v5995_v29  ;;  %v3384_v7 = vmul.f32 %v5806_v43, %v6000_v36  ;;  %v3395_v8 = vmul.f32 %v5808_v45, %v6005_v37  ;;  %v3421_v18 = vadd.f32 %v3413_v13, %v3401_v50  ;;  %v6348_v36 = vld [vmem:[#allocation2_spill] sm:$0xff]  ;;  %v6349_v37 = vld [vmem:[#allocation3_spill] sm:$0xff] }
0x2421   : > { %v3396_v16 = vmul.f32 %v5808_v45, %v6016_v41  ;;  %v3415_v44 = vmul.f32 %v5810_v46, %v6021_v30  ;;  %v3416_v29 = vmul.f32 %v5810_v46, %v6029_v4  ;;  %v3422_v9 = vadd.f32 %v3414_v62, %v3402_v1 }
0x2422   : > { %v3403_v51 = vadd.f32 %v3395_v8, %v3383_v5  ;;  %v3435_v21 = vmul.f32 %v5812_v47, %v6348_v36  ;;  %v3436_v23 = vmul.f32 %v5812_v47, %v6349_v37  ;;  %v3441_v55 = vadd.f32 %v3433_v42, %v3421_v18 }
0x2423   : > { %v3404_v19 = vadd.f32 %v3396_v16, %v3384_v7  ;;  %v3385_v41 = vmul.f32 %v5806_v43, %v6109_v28  ;;  %v3386_v30 = vmul.f32 %v5806_v43, %v6114_v32  ;;  %v3442_v24 = vadd.f32 %v3434_v15, %v3422_v9 }
0x2424   : > { %v3423_v4 = vadd.f32 %v3415_v44, %v3403_v51  ;;  %v3397_v17 = vmul.f32 %v5808_v45, %v6119_v33  ;;  %v3398_v26 = vmul.f32 %v5808_v45, %v6127_v38  ;;  %v3417_v52 = vmul.f32 %v5810_v46, %v6138_v3 }
0x2425   : > { %v3424_v39 = vadd.f32 %v3416_v29, %v3404_v19  ;;  %v3418_v63 = vmul.f32 %v5810_v46, %v6143_v10  ;;  %v3437_v28 = vmul.f32 %v5812_v47, %v6148_v59  ;;  %v3438_v20 = vmul.f32 %v5812_v47, %v6155_v6 }
0x2426   : > { %v3443_v60 = vadd.f32 %v3435_v21, %v3423_v4  ;;  %v3405_v43 = vadd.f32 %v3397_v17, %v3385_v41  ;;  %v3406_v32 = vadd.f32 %v3398_v26, %v3386_v30 }
0x2427   : > { %v3444_v33 = vadd.f32 %v3436_v23, %v3424_v39 }
0x2428   : > { %v3425_v34 = vadd.f32 %v3417_v52, %v3405_v43  ;;  %v3426_v40 = vadd.f32 %v3418_v63, %v3406_v32 }
0x242a   : > { %v6274_v45 = vadd.f32 %v3437_v28, %v3425_v34  ;;  %v6276_v38 = vadd.f32 %v3438_v20, %v3426_v40 }
0x2469   : > { %v4743_v3 = vpop.permute.xlu1 %4742 }
0x246a   : > { %v4745_v22 = vunpack.i.h.bf16 %v4743_v3  ;;  %v4744_v27 = vunpack.i.l.bf16 %v4743_v3 }
0x246c   : > { %v3759_v46 = vsel %vm866_vm2, %v3439_v14, %v4744_v27  ;;  %v3760_v10 = vsel %vm866_vm2, %v3440_v0, %v4745_v22  ;;  %v4748_v59 = vpop.permute.xlu0 %4747 }
0x246d   : > { %v4750_v31 = vunpack.i.h.bf16 %v4748_v59  ;;  %v4749_v35 = vunpack.i.l.bf16 %v4748_v59  ;;  %v4912_v59 = vld [vmem:[%s6341_s2 + $0x368] sm:$0xff]  }
0x246f   : > { %v3768_v25 = vsel %vm752_vm0, %v3760_v10, %v4750_v31  ;;  %v3767_v47 = vsel %vm752_vm0, %v3759_v46, %v4749_v35  ;;  %v4753_v6 = vpop.permute.xlu1 %4752 }
0x2470   : > { %v4755_v53 = vunpack.i.h.bf16 %v4753_v6  ;;  %v4754_v2 = vunpack.i.l.bf16 %v4753_v6 }
0x2472   : > { %v3776_v54 = vsel %vm3775_vm10, %v3767_v47, %v4754_v2  ;;  %v3777_v57 = vsel %vm3775_vm10, %v3768_v25, %v4755_v53 }
0x2473   : > { %v3788_v58 = vpack.c.bf16 %v3777_v57, %v3776_v54 }
0x2474   : > { %v4763_v61 = vpop.permute.xlu0 %4762 }
0x2475   : > { %4714 = vmatprep.subr.msk.bf16.mxu1 %vm1377_vm3, %v3788_v58  ;;  %4718 = vmatprep.subr.msk.bf16.mxu0 %vm1377_vm3, %v3788_v58  ;;  %v3809_v48 = vsel %vm1377_vm3, %v3788_v58, 0  ;;  %v4765_v42 = vunpack.i.h.bf16 %v4763_v61  ;;  %v4764_v14 = vunpack.i.l.bf16 %v4763_v61 }
0x2476   : > { %4691 = vmatpush3.bf16.xpose.msra.mxu1 %v3809_v48  ;;  %4703 = vmatpush3.bf16.xpose.msra.mxu0 %v3809_v48 }
0x2477   : > { %v4758_v56 = vpop.permute.xlu1 %4757 }
0x2478   : > { %v4760_v12 = vunpack.i.h.bf16 %v4758_v56  ;;  %v4759_v49 = vunpack.i.l.bf16 %v4758_v56 }
0x247a   : > { %v3762_v13 = vsel %vm866_vm2, %v3442_v24, %v4760_v12  ;;  %v3761_v62 = vsel %vm866_vm2, %v3441_v55, %v4759_v49 }
0x247b   : > { %v4773_v0 = vpop.permute.xlu0 %4772  ;;  %v3769_v5 = vsel %vm752_vm0, %v3761_v62, %v4764_v14  ;;  %v3770_v7 = vsel %vm752_vm0, %v3762_v13, %v4765_v42 }
0x247c   : > { %v4775_v16 = vunpack.i.h.bf16 %v4773_v0  ;;  %v4774_v44 = vunpack.i.l.bf16 %v4773_v0 }
0x247e   : > { %v3764_v37 = vsel %vm866_vm2, %v3444_v33, %v4775_v16  ;;  %v3763_v23 = vsel %vm866_vm2, %v3443_v60, %v4774_v44 }
0x247f   : > { %v4768_v50 = vpop.permute.xlu1 %4767 }
0x2480   : > { %v4770_v15 = vunpack.i.h.bf16 %v4768_v50  ;;  %v4769_v1 = vunpack.i.l.bf16 %v4768_v50 }
0x2482   : > { %v3778_v8 = vsel %vm3775_vm10, %v3769_v5, %v4769_v1  ;;  %v3779_v11 = vsel %vm3775_vm10, %v3770_v7, %v4770_v15  ;;  %v4783_v29 = vpop.permute.xlu0 %4782 }
0x2483   : > { %v3789_v18 = vpack.c.bf16 %v3779_v11, %v3778_v8  ;;  %v4785_v55 = vunpack.i.h.bf16 %v4783_v29  ;;  %v4784_v19 = vunpack.i.l.bf16 %v4783_v29 }
0x2485   : > { %4715 = vmatprep.subr.msk.bf16.mxu1 %vm1377_vm3, %v3789_v18  ;;  %4719 = vmatprep.subr.msk.bf16.mxu0 %vm1377_vm3, %v3789_v18  ;;  %v3812_v9 = vsel %vm1377_vm3, %v3789_v18, 0 }
0x2486   : > { %v4778_v51 = vpop.permute.xlu1 %4777  ;;  %4693 = vmatpush3.bf16.xpose.msra.mxu1 %v3812_v9  ;;  %4705 = vmatpush3.bf16.xpose.msra.mxu0 %v3812_v9 }
0x2487   : > { %v4780_v36 = vunpack.i.h.bf16 %v4778_v51  ;;  %v4779_v21 = vunpack.i.l.bf16 %v4778_v51 }
0x2489   : > { %v3771_v41 = vsel %vm752_vm0, %v3763_v23, %v4779_v21  ;;  %v3772_v30 = vsel %vm752_vm0, %v3764_v37, %v4780_v36 }
0x248a   : > { %v3780_v24 = vsel %vm3775_vm10, %v3771_v41, %v4784_v19  ;;  %v3781_v4 = vsel %vm3775_vm10, %v3772_v30, %v4785_v55  ;;  %v4793_v52 = vpop.permute.xlu0 %4792 }
0x248b   : > { %v3790_v17 = vpack.c.bf16 %v3781_v4, %v3780_v24  ;;  %v4795_v32 = vunpack.i.h.bf16 %v4793_v52  ;;  %v4794_v20 = vunpack.i.l.bf16 %v4793_v52 }
0x248d   : > { %4716 = vmatprep.subr.msk.bf16.mxu1 %vm1377_vm3, %v3790_v17  ;;  %4720 = vmatprep.subr.msk.bf16.mxu0 %vm1377_vm3, %v3790_v17  ;;  %v3815_v26 = vsel %vm1377_vm3, %v3790_v17, 0 }
0x248e   : > { %v4788_v39 = vpop.permute.xlu1 %4787  ;;  %4695 = vmatpush3.bf16.xpose.msra.mxu1 %v3815_v26  ;;  %4707 = vmatpush3.bf16.xpose.msra.mxu0 %v3815_v26 }
0x248f   : > { %v4790_v63 = vunpack.i.h.bf16 %v4788_v39  ;;  %v4789_v28 = vunpack.i.l.bf16 %v4788_v39 }
0x2491   : > { %v3766_v60 = vsel %vm866_vm2, %v6276_v38, %v4790_v63  ;;  %v3765_v43 = vsel %vm866_vm2, %v6274_v45, %v4789_v28  ;;  %v4910_v38 = vld [vmem:[%s6341_s2 + $0x378] sm:$0xff]  }
0x2492   : > { %v4798_v33 = vpop.permute.xlu1 %4797  ;;  %v3773_v3 = vsel %vm752_vm0, %v3765_v43, %v4794_v20  ;;  %v3774_v22 = vsel %vm752_vm0, %v3766_v60, %v4795_v32 }
0x2493   : > { %v4800_v34 = vunpack.i.h.bf16 %v4798_v33  ;;  %v4799_v40 = vunpack.i.l.bf16 %v4798_v33 }
0x2495   : > { %v3782_v27 = vsel %vm3775_vm10, %v3773_v3, %v4799_v40  ;;  %v3783_v46 = vsel %vm3775_vm10, %v3774_v22, %v4800_v34 }
0x2496   : > { %v3791_v10 = vpack.c.bf16 %v3783_v46, %v3782_v27 }
0x2498   : > { %4717 = vmatprep.subr.msk.bf16.mxu1 %vm1377_vm3, %v3791_v10  ;;  %4721 = vmatprep.subr.msk.bf16.mxu0 %vm1377_vm3, %v3791_v10  ;;  %v3818_v45 = vsel %vm1377_vm3, %v3791_v10, 0 }
0x2499   : > { %4697 = vmatpush3.bf16.xpose.msra.mxu1 %v3818_v45  ;;  %4709 = vmatpush3.bf16.xpose.msra.mxu0 %v3818_v45 }
0x24a0   : > { %4711 = vmatmul.mubr.msk.bf16.vlgmr.msra.gmra.mrb[64].mxu0 %vm1377_vm3, %v4910_v38  ;;  %4699 = vmatmul.mubr.msk.bf16.vlgmr.msra.gmra.mrb[88].mxu1 %vm1377_vm3, %v4912_v59 }
0x2573   : > { %v4712_v31 = vpop.f32.mrb[64].mxu0  ;;  %v4700_v35 = vpop.f32.mrb[88].mxu1 }
0x2574   : > { %v3923_v25 = vpop.f32.mrb[65].mxu0  ;;  %v3854_v47 = vpop.f32.mrb[89].mxu1 }
0x2575   : > { %3942 = vrot.lane.b32.xlu0 %v3923_v25, %s4992_s17  ;;  %v4713_v6 = vpop.f32.mrb[66].mxu0  ;;  %v4701_v53 = vpop.f32.mrb[90].mxu1 }
0x2576   : > { %v3926_v2 = vpop.f32.mrb[67].mxu0  ;;  %v3857_v54 = vpop.f32.mrb[91].mxu1 }
0x2577   : > { %3944 = vrot.lane.b32.xlu1 %v3926_v2, %s4992_s17 }
0x2579   : > { %3946 = vrot.lane.b32.xlu0 %v4712_v31, %s4992_s17 }
0x257b   : > { %3948 = vrot.lane.b32.xlu1 %v4713_v6, %s4992_s17 }
0x25e7   : > { %v3943_v57 = vpop.permute.xlu0 %3942 }
0x25e8   : > { %v3954_v58 = vsel %vm1377_vm3, %v3854_v47, %v3943_v57 }
0x25e9   : > { %3958 = vst [vmem:[%s214_s24] sm:$0xff] %v3954_v58  ;;  %v3945_v48 = vpop.permute.xlu1 %3944 }
0x25ea   : > { %v3955_v56 = vsel %vm1377_vm3, %v3857_v54, %v3945_v48 }
0x25eb   : > { %3959 = vst [vmem:[%s214_s24 + $0x8] sm:$0xff] %v3955_v56  ;;  %v3947_v61 = vpop.permute.xlu0 %3946 }
0x25ec   : > { %v3956_v12 = vsel %vm1377_vm3, %v4700_v35, %v3947_v61 }
0x25ed   : > { %3960 = vst [vmem:[%s214_s24 + $0x10] sm:$0xff] %v3956_v12  ;;  %v3949_v49 = vpop.permute.xlu1 %3948 }
0x25ee   : > { %v3957_v13 = vsel %vm1377_vm3, %v4701_v53, %v3949_v49 }
0x25ef   : > { %3961 = vst [vmem:[%s214_s24 + $0x18] sm:$0xff] %v3957_v13 }
0x25f0 PF: > { %s14_s15 = sadd.s32 1, %s4985_s15  }
0x25f1   : > { %p11_p4 = scmp.ge.s32.totalorder %s14_s15, 4  }
0x25f3   :  { %13 = sbr.rel (!%p11_p4) target bundleno = 1 (0x1), region = 69 }

</bundles_post_ra>
